<compile_context>
chip_gen: v6e
topology: v6e:2x2x1
jax: 0.10.0
libtpu: 0.0.40
codegen_flags: <defaults>
</compile_context>

<pallas_src>
import jax
import jax.numpy as jnp
import numpy as np
from jax.experimental import pallas as pl
from jax.experimental.pallas import tpu as pltpu


def _make_vq_kernel(n_tokens, tile_n, tiles_per_part, codebook_size):
    K = codebook_size

    def kernel(x_ref, e_ref, e2_ref, quant_ref, ind_ref, csum_ref, esum_ref, sqerr_ref):
        c = pl.program_id(0)   # partial / core axis ("parallel")
        i = pl.program_id(1)   # token-tile axis ("arbitrary"; stats accumulate along it)

        x = x_ref[...]         # (tile_n, D) f32
        e = e_ref[...]         # (K, D) f32, resident codebook
        e2 = e2_ref[...]       # (1, K) f32, precomputed ||e||^2

        # argmax of -(||x||^2 - 2 x E^T + ||e||^2) == argmax of (2 x E^T - ||e||^2)
        xe = jnp.dot(x, e.T, preferred_element_type=jnp.float32)        # (tile_n, K) MXU
        score = 2.0 * xe - e2

        lane_iota = jax.lax.broadcasted_iota(jnp.int32, (tile_n, K), 1)
        maxv = jnp.max(score, axis=-1, keepdims=True)
        ind = jnp.min(jnp.where(score >= maxv, lane_iota, K), axis=-1)  # (tile_n,) first-max

        ind_ref[...] = ind.reshape(1, 1, tile_n)                        # lane-dense int32 store

        onehot = (lane_iota == ind[:, None]).astype(jnp.float32)        # (tile_n, K)
        q = jnp.dot(onehot, e, preferred_element_type=jnp.float32)      # (tile_n, D) MXU lookup
        quant_ref[...] = q.astype(quant_ref.dtype)

        # Mask padded tail rows out of the EMA statistics / commitment loss.
        row0 = (c * tiles_per_part + i) * tile_n
        rows = row0 + jax.lax.broadcasted_iota(jnp.int32, (tile_n, 1), 0)
        valid = (rows < n_tokens).astype(jnp.float32)                   # (tile_n, 1)

        @pl.when(i == 0)
        def _():
            csum_ref[...] = jnp.zeros_like(csum_ref)
            esum_ref[...] = jnp.zeros_like(esum_ref)
            sqerr_ref[...] = jnp.zeros_like(sqerr_ref)

        onehot_m = onehot * valid
        csum_ref[...] += jnp.sum(onehot_m, axis=0, keepdims=True)[None]                    # (1,1,K)
        esum_ref[...] += jnp.dot(onehot_m.T, x, preferred_element_type=jnp.float32)[None]  # (1,K,D)
        diff = (q - x) * valid
        sqerr_ref[...] += jnp.sum(diff * diff, axis=0, keepdims=True)[None]                # (1,1,D)

    return kernel


def vq_forward(x_bdn, embed, cluster_size, embed_avg, *,
               decay=0.99, epsilon=1e-5, commitment_weight=1.0,
               training=True, tile_n=256, num_partials=2):
    """Functional equivalent of VectorQuantization.forward (training mode).

    Returns (quantize (b, d, n), embed_ind (b, n), loss (1,), new_buffers).
    """
    B, D, T = x_bdn.shape
    K = embed.shape[0]

    x_btd = jnp.transpose(x_bdn, (0, 2, 1))                 # 'b d n -> b n d'
    # project_in = Identity (codebook_dim == dim)
    xf = x_btd.reshape(B * T, D).astype(jnp.float32)        # preprocess '... d -> (...) d'
    N = B * T

    num_partials = max(1, int(num_partials))
    assert tile_n % 8 == 0
    tokens_per_part = -(-N // num_partials)
    tiles_per_part = max(1, -(-tokens_per_part // tile_n))
    n_tiles = num_partials * tiles_per_part
    N_pad = n_tiles * tile_n
    if N_pad != N:
        xf = jnp.pad(xf, ((0, N_pad - N), (0, 0)))

    ef = embed.astype(jnp.float32)
    e2 = jnp.sum(ef * ef, axis=1)[None, :]                  # (1, K) hoisted ||e||^2

    out_dtype = x_bdn.dtype
    out_shapes = (
        jax.ShapeDtypeStruct((N_pad, D), out_dtype),                 # quantize
        jax.ShapeDtypeStruct((n_tiles, 1, tile_n), jnp.int32),       # embed_ind (lane-dense)
        jax.ShapeDtypeStruct((num_partials, 1, K), jnp.float32),     # one-hot counts (partials)
        jax.ShapeDtypeStruct((num_partials, K, D), jnp.float32),     # embed_sum (partials)
        jax.ShapeDtypeStruct((num_partials, 1, D), jnp.float32),     # sq-error lanes (partials)
    )

    kernel = _make_vq_kernel(N, tile_n, tiles_per_part, K)
    tpp = tiles_per_part

    quant, ind, csum, esum, sqerr = pl.pallas_call(
        kernel,
        out_shape=out_shapes,
        grid_spec=pltpu.PrefetchScalarGridSpec(
            num_scalar_prefetch=0,
            grid=(num_partials, tiles_per_part),
            in_specs=[
                pl.BlockSpec((tile_n, D), lambda c, i: (c * tpp + i, 0)),   # token tiles
                pl.BlockSpec((K, D), lambda c, i: (0, 0)),                  # codebook, resident
                pl.BlockSpec((1, K), lambda c, i: (0, 0)),                  # ||e||^2, resident
            ],
            out_specs=[
                pl.BlockSpec((tile_n, D), lambda c, i: (c * tpp + i, 0)),
                pl.BlockSpec((1, 1, tile_n), lambda c, i: (c * tpp + i, 0, 0)),
                pl.BlockSpec((1, 1, K), lambda c, i: (c, 0, 0)),            # per-partial acc
                pl.BlockSpec((1, K, D), lambda c, i: (c, 0, 0)),            # per-partial acc
                pl.BlockSpec((1, 1, D), lambda c, i: (c, 0, 0)),            # per-partial acc
            ],
        ),
        compiler_params=pltpu.CompilerParams(
            dimension_semantics=("parallel", "arbitrary")),
    )(xf, ef, e2)

    embed_ind = ind.reshape(-1)[:N].reshape(B, T)           # postprocess_emb
    quantize = quant[:N].reshape(B, T, D)                   # STE: numerically equal to quantize

    loss = jnp.zeros((1,), jnp.float32)
    new_cs, new_ea, new_embed = cluster_size, embed_avg, embed
    if training:
        if commitment_weight > 0:
            commit_loss = jnp.sum(sqerr) / (N * D)          # F.mse_loss(quantize.detach(), x)
            loss = loss + commit_loss * commitment_weight
        # EMA buffer updates (same order as PyTorch; quantize above used pre-update embed).
        csum_tot = jnp.sum(csum.reshape(num_partials, K), axis=0)
        esum_tot = jnp.sum(esum, axis=0)
        new_cs = cluster_size * decay + csum_tot * (1.0 - decay)
        new_ea = embed_avg * decay + esum_tot * (1.0 - decay)
        n_total = jnp.sum(new_cs)
        smoothed = (new_cs + epsilon) / (n_total + K * epsilon) * n_total
        new_embed = new_ea / smoothed[:, None]

    # project_out = Identity, then 'b n d -> b d n'
    quantize_out = jnp.transpose(quantize, (0, 2, 1))
    return quantize_out, embed_ind, loss, (new_cs, new_ea, new_embed)


if __name__ == "__main__":
    key = jax.random.PRNGKey(0)
    B, D, T, K = 2, 32, 8, 64          # batch, dim, seq, codebook_size
    kx, ke = jax.random.split(key)
    x = jax.random.normal(kx, (B, D, T), jnp.float32)

    # Deterministic buffer init: inited=True (kmeans skipped), embed ~ N(0,1),
    # cluster_size = ones, embed_avg = embed (per EuclideanCodebook buffers).
    embed = jax.random.normal(ke, (K, D), jnp.float32)
    cluster_size = jnp.ones((K,), jnp.float32)
    embed_avg = embed

    q, ind, loss, (ncs, nea, nemb) = vq_forward(x, embed, cluster_size, embed_avg)
    jax.block_until_ready((q, ind, loss, ncs, nea, nemb))

    # Pure-JAX reference check of the full forward (hot path + EMA updates).
    xb = jnp.transpose(x, (0, 2, 1)).reshape(-1, D)
    dist_ref = -(jnp.sum(xb ** 2, 1, keepdims=True) - 2.0 * xb @ embed.T
                 + jnp.sum(embed ** 2, 1)[None, :])
    ind_ref = jnp.argmax(dist_ref, -1)
    q_ref = jnp.transpose(embed[ind_ref].reshape(B, T, D), (0, 2, 1))
    loss_ref = jnp.mean((embed[ind_ref] - xb) ** 2)

    onehot_ref = jax.nn.one_hot(ind_ref, K, dtype=jnp.float32)
    cs_ref = cluster_size * 0.99 + onehot_ref.sum(0) * 0.01
    ea_ref = embed_avg * 0.99 + (onehot_ref.T @ xb) * 0.01
    n_tot = cs_ref.sum()
    emb_ref = ea_ref / ((cs_ref + 1e-5) / (n_tot + K * 1e-5) * n_tot)[:, None]

    np.testing.assert_array_equal(np.asarray(ind).reshape(-1), np.asarray(ind_ref))
    np.testing.assert_allclose(np.asarray(q), np.asarray(q_ref), rtol=1e-4, atol=1e-4)
    np.testing.assert_allclose(float(loss[0]), float(loss_ref), rtol=1e-4, atol=1e-5)
    np.testing.assert_allclose(np.asarray(ncs), np.asarray(cs_ref), rtol=1e-5, atol=1e-5)
    np.testing.assert_allclose(np.asarray(nea), np.asarray(ea_ref), rtol=1e-5, atol=1e-5)
    np.testing.assert_allclose(np.asarray(nemb), np.asarray(emb_ref), rtol=1e-4, atol=1e-5)

    print("KERNEL_OK")
</pallas_src>

<mosaic_0001>
module attributes {stable_mosaic.version = 11 : i64} {
  func.func @kernel(%arg0: i32, %arg1: i32, %arg2: memref<256x32xf32, #tpu.memory_space<vmem>>, %arg3: memref<64x32xf32, #tpu.memory_space<vmem>>, %arg4: memref<1x64xf32, #tpu.memory_space<vmem>>, %arg5: memref<256x32xf32, #tpu.memory_space<vmem>>, %arg6: memref<1x1x256xi32, #tpu.memory_space<vmem>>, %arg7: memref<1x1x64xf32, #tpu.memory_space<vmem>>, %arg8: memref<1x64x32xf32, #tpu.memory_space<vmem>>, %arg9: memref<1x1x32xf32, #tpu.memory_space<vmem>>) attributes {dimension_semantics = [#tpu.dimension_semantics<parallel>, #tpu.dimension_semantics<arbitrary>], iteration_bounds = array<i64: 2, 1>, scalar_prefetch = 0 : i64, scratch_operands = 0 : i64, tpu.core_type = #tpu.core_type<tc>, window_params = [{transform_indices = @transform_0, window_bounds = array<i64: 256, 32>}, {pipeline_mode = #tpu.pipeline_mode<synchronous>, transform_indices = @transform_1, window_bounds = array<i64: 64, 32>}, {pipeline_mode = #tpu.pipeline_mode<synchronous>, transform_indices = @transform_2, window_bounds = array<i64: 1, 64>}, {transform_indices = @transform_3, window_bounds = array<i64: 256, 32>}, {transform_indices = @transform_4, window_bounds = array<i64: 1, 1, 256>}, {transform_indices = @transform_5, window_bounds = array<i64: 1, 1, 64>}, {transform_indices = @transform_6, window_bounds = array<i64: 1, 64, 32>}, {transform_indices = @transform_7, window_bounds = array<i64: 1, 1, 32>}]} {
    %c0 = arith.constant 0 : index
    %c0_0 = arith.constant 0 : index
    %0 = vector.load %arg2[%c0, %c0_0] : memref<256x32xf32, #tpu.memory_space<vmem>>, vector<256x32xf32>
    %c0_1 = arith.constant 0 : index
    %c0_2 = arith.constant 0 : index
    %1 = vector.load %arg3[%c0_1, %c0_2] : memref<64x32xf32, #tpu.memory_space<vmem>>, vector<64x32xf32>
    %c0_3 = arith.constant 0 : index
    %c0_4 = arith.constant 0 : index
    %2 = vector.load %arg4[%c0_3, %c0_4] : memref<1x64xf32, #tpu.memory_space<vmem>>, vector<1x64xf32>
    %3 = tpu.transpose %1, [1, 0] : vector<64x32xf32> -> vector<32x64xf32>
    %cst = arith.constant dense<0.000000e+00> : vector<256x64xf32>
    %4 = tpu.matmul %0, %3, %cst {dimension_numbers = #tpu.dot_dimension_numbers<[1], [0], [0], [1], [0, 0, 1, 1], [], []>} : vector<256x32xf32>, vector<32x64xf32>, vector<256x64xf32> -> vector<256x64xf32>
    %cst_5 = arith.constant 2.000000e+00 : f32
    %5 = vector.broadcast %cst_5 : f32 to vector<256x64xf32>
    %6 = arith.mulf %5, %4 : vector<256x64xf32>
    %7 = vector.broadcast %2 : vector<1x64xf32> to vector<256x64xf32>
    %8 = arith.subf %6, %7 : vector<256x64xf32>
    %9 = tpu.iota {dimensions = array<i32: 1>} : vector<256x64xi32>
    %cst_6 = arith.constant dense<0xFF800000> : vector<256xf32>
    %10 = vector.multi_reduction <maximumf>, %8, %cst_6 [1] : vector<256x64xf32> to vector<256xf32>
    %11 = vector.shape_cast %10 : vector<256xf32> to vector<256x1xf32>
    %12 = vector.broadcast %11 : vector<256x1xf32> to vector<256x64xf32>
    %13 = arith.cmpf oge, %8, %12 : vector<256x64xf32>
    %c64_i32 = arith.constant 64 : i32
    %14 = vector.broadcast %c64_i32 : i32 to vector<256x64xi32>
    %15 = arith.select %13, %9, %14 : vector<256x64xi1>, vector<256x64xi32>
    %cst_7 = arith.constant dense<2147483647> : vector<256xi32>
    %16 = vector.multi_reduction <minsi>, %15, %cst_7 [1] : vector<256x64xi32> to vector<256xi32>
    %17 = vector.shape_cast %16 : vector<256xi32> to vector<1x1x256xi32>
    %c0_8 = arith.constant 0 : index
    %c0_9 = arith.constant 0 : index
    %c0_10 = arith.constant 0 : index
    %18 = vector.load %arg6[%c0_8, %c0_9, %c0_10] : memref<1x1x256xi32, #tpu.memory_space<vmem>>, vector<1x1x256xi32>
    tpu.vector_store %arg6[%c0_8, %c0_9, %c0_10], %17 {strides = array<i32>} : memref<1x1x256xi32, #tpu.memory_space<vmem>>, vector<1x1x256xi32>,
    %19 = vector.shape_cast %16 : vector<256xi32> to vector<256x1xi32>
    %20 = vector.broadcast %19 : vector<256x1xi32> to vector<256x64xi32>
    %21 = arith.cmpi eq, %9, %20 : vector<256x64xi32>
    %22 = arith.extui %21 : vector<256x64xi1> to vector<256x64xi32>
    %23 = arith.sitofp %22 : vector<256x64xi32> to vector<256x64xf32>
    %cst_11 = arith.constant dense<0.000000e+00> : vector<256x32xf32>
    %24 = tpu.matmul %23, %1, %cst_11 {dimension_numbers = #tpu.dot_dimension_numbers<[1], [0], [0], [1], [0, 0, 1, 1], [], []>} : vector<256x64xf32>, vector<64x32xf32>, vector<256x32xf32> -> vector<256x32xf32>
    %c0_12 = arith.constant 0 : index
    %c0_13 = arith.constant 0 : index
    %25 = vector.load %arg5[%c0_12, %c0_13] : memref<256x32xf32, #tpu.memory_space<vmem>>, vector<256x32xf32>
    tpu.vector_store %arg5[%c0_12, %c0_13], %24 {strides = array<i32>} : memref<256x32xf32, #tpu.memory_space<vmem>>, vector<256x32xf32>,
    %c1_i32 = arith.constant 1 : i32
    %26 = arith.muli %arg0, %c1_i32 : i32
    %27 = arith.addi %26, %arg1 : i32
    %c256_i32 = arith.constant 256 : i32
    %28 = arith.muli %27, %c256_i32 : i32
    %29 = tpu.iota {dimensions = array<i32: 0>} : vector<256x1xi32>
    %30 = vector.broadcast %28 : i32 to vector<256x1xi32>
    %31 = arith.addi %30, %29 : vector<256x1xi32>
    %c16_i32 = arith.constant 16 : i32
    %32 = vector.broadcast %c16_i32 : i32 to vector<256x1xi32>
    %33 = arith.cmpi slt, %31, %32 : vector<256x1xi32>
    %34 = arith.extui %33 : vector<256x1xi1> to vector<256x1xi32>
    %35 = arith.sitofp %34 : vector<256x1xi32> to vector<256x1xf32>
    %c0_i32 = arith.constant 0 : i32
    %36 = arith.cmpi eq, %arg1, %c0_i32 : i32
    %37 = arith.extui %36 : i1 to i32
    %c0_i32_14 = arith.constant 0 : i32
    %38 = arith.cmpi ne, %37, %c0_i32_14 : i32
    scf.if %38 {
      %cst_36 = arith.constant 0.000000e+00 : f32
      %63 = vector.broadcast %cst_36 : f32 to vector<1x1x64xf32>
      %c0_37 = arith.constant 0 : index
      %c0_38 = arith.constant 0 : index
      %c0_39 = arith.constant 0 : index
      %64 = vector.load %arg7[%c0_37, %c0_38, %c0_39] : memref<1x1x64xf32, #tpu.memory_space<vmem>>, vector<1x1x64xf32>
      tpu.vector_store %arg7[%c0_37, %c0_38, %c0_39], %63 {strides = array<i32>} : memref<1x1x64xf32, #tpu.memory_space<vmem>>, vector<1x1x64xf32>,
      %cst_40 = arith.constant 0.000000e+00 : f32
      %65 = vector.broadcast %cst_40 : f32 to vector<1x64x32xf32>
      %c0_41 = arith.constant 0 : index
      %c0_42 = arith.constant 0 : index
      %c0_43 = arith.constant 0 : index
      %66 = vector.load %arg8[%c0_41, %c0_42, %c0_43] : memref<1x64x32xf32, #tpu.memory_space<vmem>>, vector<1x64x32xf32>
      tpu.vector_store %arg8[%c0_41, %c0_42, %c0_43], %65 {strides = array<i32>} : memref<1x64x32xf32, #tpu.memory_space<vmem>>, vector<1x64x32xf32>,
      %cst_44 = arith.constant 0.000000e+00 : f32
      %67 = vector.broadcast %cst_44 : f32 to vector<1x1x32xf32>
      %c0_45 = arith.constant 0 : index
      %c0_46 = arith.constant 0 : index
      %c0_47 = arith.constant 0 : index
      %68 = vector.load %arg9[%c0_45, %c0_46, %c0_47] : memref<1x1x32xf32, #tpu.memory_space<vmem>>, vector<1x1x32xf32>
      tpu.vector_store %arg9[%c0_45, %c0_46, %c0_47], %67 {strides = array<i32>} : memref<1x1x32xf32, #tpu.memory_space<vmem>>, vector<1x1x32xf32>,
    } else {
    }
    %39 = vector.broadcast %35 : vector<256x1xf32> to vector<256x64xf32>
    %40 = arith.mulf %23, %39 : vector<256x64xf32>
    %c0_15 = arith.constant 0 : index
    %c0_16 = arith.constant 0 : index
    %c0_17 = arith.constant 0 : index
    %41 = vector.load %arg7[%c0_15, %c0_16, %c0_17] : memref<1x1x64xf32, #tpu.memory_space<vmem>>, vector<1x1x64xf32>
    %cst_18 = arith.constant dense<0.000000e+00> : vector<64xf32>
    %42 = vector.multi_reduction <add>, %40, %cst_18 [0] : vector<256x64xf32> to vector<64xf32>
    %43 = vector.shape_cast %42 : vector<64xf32> to vector<1x64xf32>
    %44 = vector.shape_cast %43 : vector<1x64xf32> to vector<1x1x64xf32>
    %45 = arith.addf %41, %44 : vector<1x1x64xf32>
    %c0_19 = arith.constant 0 : index
    %c0_20 = arith.constant 0 : index
    %c0_21 = arith.constant 0 : index
    %46 = vector.load %arg7[%c0_19, %c0_20, %c0_21] : memref<1x1x64xf32, #tpu.memory_space<vmem>>, vector<1x1x64xf32>
    tpu.vector_store %arg7[%c0_19, %c0_20, %c0_21], %45 {strides = array<i32>} : memref<1x1x64xf32, #tpu.memory_space<vmem>>, vector<1x1x64xf32>,
    %c0_22 = arith.constant 0 : index
    %c0_23 = arith.constant 0 : index
    %c0_24 = arith.constant 0 : index
    %47 = vector.load %arg8[%c0_22, %c0_23, %c0_24] : memref<1x64x32xf32, #tpu.memory_space<vmem>>, vector<1x64x32xf32>
    %48 = tpu.transpose %40, [1, 0] : vector<256x64xf32> -> vector<64x256xf32>
    %cst_25 = arith.constant dense<0.000000e+00> : vector<64x32xf32>
    %49 = tpu.matmul %48, %0, %cst_25 {dimension_numbers = #tpu.dot_dimension_numbers<[1], [0], [0], [1], [0, 0, 1, 1], [], []>} : vector<64x256xf32>, vector<256x32xf32>, vector<64x32xf32> -> vector<64x32xf32>
    %50 = vector.shape_cast %49 : vector<64x32xf32> to vector<1x64x32xf32>
    %51 = arith.addf %47, %50 : vector<1x64x32xf32>
    %c0_26 = arith.constant 0 : index
    %c0_27 = arith.constant 0 : index
    %c0_28 = arith.constant 0 : index
    %52 = vector.load %arg8[%c0_26, %c0_27, %c0_28] : memref<1x64x32xf32, #tpu.memory_space<vmem>>, vector<1x64x32xf32>
    tpu.vector_store %arg8[%c0_26, %c0_27, %c0_28], %51 {strides = array<i32>} : memref<1x64x32xf32, #tpu.memory_space<vmem>>, vector<1x64x32xf32>,
    %53 = arith.subf %24, %0 : vector<256x32xf32>
    %54 = vector.broadcast %35 : vector<256x1xf32> to vector<256x32xf32>
    %55 = arith.mulf %53, %54 : vector<256x32xf32>
    %c0_29 = arith.constant 0 : index
    %c0_30 = arith.constant 0 : index
    %c0_31 = arith.constant 0 : index
    %56 = vector.load %arg9[%c0_29, %c0_30, %c0_31] : memref<1x1x32xf32, #tpu.memory_space<vmem>>, vector<1x1x32xf32>
    %57 = arith.mulf %55, %55 : vector<256x32xf32>
    %cst_32 = arith.constant dense<0.000000e+00> : vector<32xf32>
    %58 = vector.multi_reduction <add>, %57, %cst_32 [0] : vector<256x32xf32> to vector<32xf32>
    %59 = vector.shape_cast %58 : vector<32xf32> to vector<1x32xf32>
    %60 = vector.shape_cast %59 : vector<1x32xf32> to vector<1x1x32xf32>
    %61 = arith.addf %56, %60 : vector<1x1x32xf32>
    %c0_33 = arith.constant 0 : index
    %c0_34 = arith.constant 0 : index
    %c0_35 = arith.constant 0 : index
    %62 = vector.load %arg9[%c0_33, %c0_34, %c0_35] : memref<1x1x32xf32, #tpu.memory_space<vmem>>, vector<1x1x32xf32>
    tpu.vector_store %arg9[%c0_33, %c0_34, %c0_35], %61 {strides = array<i32>} : memref<1x1x32xf32, #tpu.memory_space<vmem>>, vector<1x1x32xf32>,
    return
  }
  func.func @transform_0(%arg0: i32, %arg1: i32) -> (i32, i32) {
    %c1_i32 = arith.constant 1 : i32
    %0 = arith.muli %arg0, %c1_i32 : i32
    %1 = arith.addi %0, %arg1 : i32
    %c0_i32 = arith.constant 0 : i32
    %c0_i32_0 = arith.constant 0 : i32
    return %1, %c0_i32 : i32, i32
  }
  func.func @transform_1(%arg0: i32, %arg1: i32) -> (i32, i32) {
    %c0_i32 = arith.constant 0 : i32
    %c0_i32_0 = arith.constant 0 : i32
    %c0_i32_1 = arith.constant 0 : i32
    return %c0_i32, %c0_i32_0 : i32, i32
  }
  func.func @transform_2(%arg0: i32, %arg1: i32) -> (i32, i32) {
    %c0_i32 = arith.constant 0 : i32
    %c0_i32_0 = arith.constant 0 : i32
    %c0_i32_1 = arith.constant 0 : i32
    return %c0_i32, %c0_i32_0 : i32, i32
  }
  func.func @transform_3(%arg0: i32, %arg1: i32) -> (i32, i32) {
    %c1_i32 = arith.constant 1 : i32
    %0 = arith.muli %arg0, %c1_i32 : i32
    %1 = arith.addi %0, %arg1 : i32
    %c0_i32 = arith.constant 0 : i32
    %c0_i32_0 = arith.constant 0 : i32
    return %1, %c0_i32 : i32, i32
  }
  func.func @transform_4(%arg0: i32, %arg1: i32) -> (i32, i32, i32) {
    %c1_i32 = arith.constant 1 : i32
    %0 = arith.muli %arg0, %c1_i32 : i32
    %1 = arith.addi %0, %arg1 : i32
    %c0_i32 = arith.constant 0 : i32
    %c0_i32_0 = arith.constant 0 : i32
    %c0_i32_1 = arith.constant 0 : i32
    return %1, %c0_i32, %c0_i32_0 : i32, i32, i32
  }
  func.func @transform_5(%arg0: i32, %arg1: i32) -> (i32, i32, i32) {
    %c0_i32 = arith.constant 0 : i32
    %c0_i32_0 = arith.constant 0 : i32
    %c0_i32_1 = arith.constant 0 : i32
    return %arg0, %c0_i32, %c0_i32_0 : i32, i32, i32
  }
  func.func @transform_6(%arg0: i32, %arg1: i32) -> (i32, i32, i32) {
    %c0_i32 = arith.constant 0 : i32
    %c0_i32_0 = arith.constant 0 : i32
    %c0_i32_1 = arith.constant 0 : i32
    return %arg0, %c0_i32, %c0_i32_0 : i32, i32, i32
  }
  func.func @transform_7(%arg0: i32, %arg1: i32) -> (i32, i32, i32) {
    %c0_i32 = arith.constant 0 : i32
    %c0_i32_0 = arith.constant 0 : i32
    %c0_i32_1 = arith.constant 0 : i32
    return %arg0, %c0_i32, %c0_i32_0 : i32, i32, i32
  }
}

</mosaic_0001>

<bundles_post_ra>
// kernel: tpu_custom_call.1
= control target key start
LH: loop header
LB: loop body
LE: loop exit
PB: predicated region body
PF: predicated region fallthrough
CT: control target
= control target key end

     0   :  { %s9379_s0 = inlined_call_operand.vmem [shape: f32[512,32], index: 0, kind: input, shape index: {}]   ;;  %s9380_s1 = inlined_call_operand.vmem [shape: f32[64,32], index: 1, kind: input, shape index: {}]   ;;  %s9381_s2 = inlined_call_operand.vmem [shape: f32[1,64], index: 2, kind: input, shape index: {}]   ;;  %s9382_s3 = inlined_call_operand.vmem [shape: f32[512,32], index: 3, kind: output, shape index: {0}]   ;;  %s9383_s4 = inlined_call_operand.hbm [shape: s32[2,1,256], index: 4, kind: output, shape index: {1}]   ;;  %s9384_s5 = inlined_call_operand.hbm [shape: f32[2,1,64], index: 5, kind: output, shape index: {2}]   ;;  %s9385_s6 = inlined_call_operand.vmem [shape: f32[2,64,32], index: 6, kind: output, shape index: {3}]   ;;  %s9386_s7 = inlined_call_operand.hbm [shape: f32[2,1,32], index: 7, kind: output, shape index: {4}]  }
   0x1   :  { %9452 = sst [smem:[#allocation61_spill]] %s9379_s0 }
   0x2   :  { %9453 = sst [smem:[#allocation62_spill]] %s9380_s1 }
   0x3   :  { %13 = vsyncpa [#allocation3], 0 }
   0x4   :  { %15 = vsyncpa [#allocation3 + $0x1], 0 }
   0x5   :  { %16 = vsyncpa [#allocation5], 0 }
   0x6   :  { %18 = vsyncpa [#allocation5 + $0x1], 0  ;;  %s6504_s24 = smov 0   ;;  %s6506_s25 = smov 0  }
   0x7   :  { %s6508_s26 = smov 0   ;;  %s6510_s27 = smov 0  }
   0x8   :  { %s6512_s28 = smov 0   ;;  %s6514_s29 = smov 0  }
   0x9 LB: > { %s5680_s30 = sadd.s32 4294967295, %s6456_s29   ;;  %s9450_s8 = sadd.s32 4294967294, %s6456_s29   ;;  %s6456_s29 = sphi %s6514_s29, %s24_s29   ;;  %s6452_s28 = sphi %s6512_s28, %s9618_s28   ;;  %s6448_s27 = sphi %s6510_s27, %s9617_s27   ;;  %s6444_s26 = sphi %s6508_s26, %s9616_s26   ;;  %s6440_s25 = sphi %s6506_s25, %s9615_s25   ;;  %s6436_s24 = sphi %s6504_s24, %s9614_s24  }
   0xa   : > { %s36_s9 = sadd.s32 1, %s6452_s28  ;;  %s143_s10 = sadd.s32 1, %s6444_s26 }
   0xb   : > { %p38_p0 = scmp.ge.s32.totalorder %s36_s9, 2  ;;  %p153_p1 = scmp.ne.s32.totalorder %s6444_s26, %s6440_s25 }
   0xc   : > { %p154_p2 = scmp.eq.s32.totalorder %s5680_s30, 1  ;;  %p159_p3 = scmp.ne.s32.totalorder %s6440_s25, %s6436_s24 }
   0xd   : > { %s9620_s9 = smov (%p38_p0, %s36_s9), 0  ;;  %p160_p5 = scmp.eq.s32.totalorder %s9450_s8, 1 }
   0xe   : > { %p6546_p4 = por %p154_p2, %p153_p1  ;;  %s140_s12 = ssub.s32 %s6452_s28, %s9620_s9 }
   0xf   : > { %p5684_p6 = scmp.ge.s32.totalorder %s6456_s29, 1  ;;  %p141_p7 = scmp.eq.s32.totalorder %s140_s12, 0 }
  0x10   : > { %p6555_p8 = por %p160_p5, %p159_p3  ;;  %p273_p9 = scmp.lt.s32.totalorder %s6456_s29, 3 }
  0x11   : > { %s6561_s14 = scalar_select %p141_p7, %s6444_s26, %s143_s10  }
  0x12   : > { %p274_p10 = pnand %p5684_p6, %p273_p9 }
  0x14   : > { %277 = sbr.rel (%p274_p10) target bundleno = 1163 (0x48b), region = 32 }
  0x19   : > { %s9456_s1 = sld [smem:[#allocation62_spill]]  ;;  %vm388_vm0 = vcmask 261120   ;;  %s6570_s19 = sshll.u32 %s6448_s27, 5  ;;  %v6689_v41 = vld [vmem:[%s9381_s2] ss:$0 sm:$0xff]  ;;  %vm806_vm1 = vcmask 523264  }
  0x1a   : > { %p327_p11 = scmp.lt.s32.totalorder %s6570_s19, 63  ;;  %s9457_s0 = sld [smem:[#allocation61_spill]] }
  0x1b   : > { %s5797_s10 = sshll.u32 %s6448_s27, 8  ;;  %p342_p12 = scmp.lt.s32.totalorder %s6448_s27, 1 }
  0x1c   : > { %s6577_s20 = scalar_select %p327_p11, %s6570_s19, 63 }
  0x1d   : > { %s343_s18 = scalar_select %p342_p12, %s6448_s27, 1 }
  0x1e   : > { %s5687_s23 = sshll.u32 %s6577_s20, 3  ;;  %s9021_s20 = sand.u32 1, %s6440_s25  }
  0x1f   : > { %v386_v0 = vld [vmem:[%s9456_s1 + $0x38] sm:$0xff]  ;;  %v385_v1 = vld [vmem:[%s9456_s1 + $0x30] sm:$0xff]  ;;  %v384_v2 = vld [vmem:[%s9456_s1 + $0x28] sm:$0xff]  ;;  %s8624_s16 = scalar_lea.vmem %s9382_s3, %s5687_s23  ;;  %s5837_s21 = sshll.u32 %s343_s18, 6 }
  0x20   : > { %5975 = vmatprep.subr.msk.mxu0 %vm388_vm0, %v386_v0  ;;  %6103 = vmatprep.subr.mxu1 %v386_v0  ;;  %v383_v3 = vld [vmem:[%s9456_s1 + $0x20] sm:$0xff]  ;;  %s6592_s17 = scalar_lea.vmem %s9457_s0, %s5687_s23  ;;  %v382_v5 = vld [vmem:[%s9456_s1 + $0x18] sm:$0xff]  ;;  %v381_v6 = vld [vmem:[%s9456_s1 + $0x10] sm:$0xff]  ;;  %s9037_s23 = scalar_lea.vmem [#allocation4], %s9021_s20 }
  0x21   : > { %5976 = vmatpush3.xpose.msk.msra.mxu0 %vm388_vm0, %v386_v0  ;;  %6111 = vmatpush3.msra.mxu1 %v386_v0  ;;  %v347_v4 = vld [vmem:[%s6592_s17] sm:$0xff]  ;;  %v380_v7 = vld [vmem:[%s9456_s1 + $0x8] sm:$0xff]  ;;  %v6614_v9 = vld [vmem:[%s6592_s17 + $0xf8] sm:$0xff]  ;;  %s9099_s12 = scalar_lea.vmem %s9385_s6, %s5837_s21  ;;  %s9451_s15 = sshll.u32 %s6448_s27, 4 }
  0x22   : > { %5977 = vmatprep.subr.msk.mxu0 %vm388_vm0, %v385_v1  ;;  %6104 = vmatprep.subr.mxu1 %v385_v1  ;;  %v379_v8 = vld [vmem:[%s9456_s1] sm:$0xff]  ;;  %v348_v10 = vld [vmem:[%s6592_s17 + $0x8] sm:$0xff]  ;;  %v349_v11 = vld [vmem:[%s6592_s17 + $0x10] sm:$0xff]  ;;  %s9160_s21 = scalar_lea.hbm %s9384_s5, %s9451_s15  ;;  %s5492_s22 = sshll.u32 %s9037_s23, 4  ;;  %s5493_s22 = int_to_ptr.vmem [resolvable:$true] %s5492_s22 }
  0x23   : > { %6112 = vmatpush3.msra.mxu1 %v385_v1  ;;  %5991 = vmatprep.mubr.msk.f32.mxu0 %vm388_vm0, %v347_v4  ;;  %v350_v12 = vld [vmem:[%s6592_s17 + $0x18] sm:$0xff]  ;;  %v351_v13 = vld [vmem:[%s6592_s17 + $0x20] sm:$0xff]  ;;  %v352_v14 = vld [vmem:[%s6592_s17 + $0x28] sm:$0xff]  ;;  %s6324_s8 = scalar_lea.vmem %s5493_s22, 16 }
  0x24   : > { %6105 = vmatprep.subr.mxu1 %v384_v2  ;;  %v353_v15 = vld [vmem:[%s6592_s17 + $0x30] sm:$0xff]  ;;  %v354_v16 = vld [vmem:[%s6592_s17 + $0x38] sm:$0xff]  ;;  %v355_v17 = vld [vmem:[%s6592_s17 + $0x40] sm:$0xff]  ;;  %p6325_p13 = scmp.ne.s32.totalorder %s5493_s22, %s6324_s8 }
  0x25   : > { %5978 = vmatpush3.xpose.msk.msra.mxu0 %vm388_vm0, %v385_v1  ;;  %6113 = vmatpush3.msra.mxu1 %v384_v2  ;;  %v356_v18 = vld [vmem:[%s6592_s17 + $0x48] sm:$0xff]  ;;  %v357_v19 = vld [vmem:[%s6592_s17 + $0x50] sm:$0xff]  ;;  %v358_v20 = vld [vmem:[%s6592_s17 + $0x58] sm:$0xff] }
  0x26   : > { %5979 = vmatprep.subr.msk.mxu0 %vm388_vm0, %v384_v2  ;;  %6106 = vmatprep.subr.mxu1 %v383_v3  ;;  %v359_v21 = vld [vmem:[%s6592_s17 + $0x60] sm:$0xff]  ;;  %v360_v22 = vld [vmem:[%s6592_s17 + $0x68] sm:$0xff]  ;;  %v361_v23 = vld [vmem:[%s6592_s17 + $0x70] sm:$0xff]  ;;  %p6326_p0 = pnand %p6325_p13, %p6546_p4 }
  0x27   : > { %6114 = vmatpush3.msra.mxu1 %v383_v3  ;;  %v362_v24 = vld [vmem:[%s6592_s17 + $0x78] sm:$0xff]  ;;  %v363_v25 = vld [vmem:[%s6592_s17 + $0x80] sm:$0xff]  ;;  %v364_v26 = vld [vmem:[%s6592_s17 + $0x88] sm:$0xff] }
  0x28   : > { %6107 = vmatprep.subr.mxu1 %v382_v5  ;;  %v365_v27 = vld [vmem:[%s6592_s17 + $0x90] sm:$0xff]  ;;  %v366_v28 = vld [vmem:[%s6592_s17 + $0x98] sm:$0xff]  ;;  %v367_v29 = vld [vmem:[%s6592_s17 + $0xa0] sm:$0xff]  ;;  %p6327_p1 = pneg %p6326_p0 }
  0x29   : > { %5980 = vmatpush3.xpose.msk.msra.mxu0 %vm388_vm0, %v384_v2  ;;  %6115 = vmatpush3.msra.mxu1 %v382_v5  ;;  %v368_v30 = vld [vmem:[%s6592_s17 + $0xa8] sm:$0xff]  ;;  %v369_v31 = vld [vmem:[%s6592_s17 + $0xb0] sm:$0xff]  ;;  %v370_v32 = vld [vmem:[%s6592_s17 + $0xb8] sm:$0xff] }
  0x2a   : > { %5981 = vmatprep.subr.msk.mxu0 %vm388_vm0, %v383_v3  ;;  %6108 = vmatprep.subr.mxu1 %v381_v6  ;;  %v371_v33 = vld [vmem:[%s6592_s17 + $0xc0] sm:$0xff]  ;;  %v372_v34 = vld [vmem:[%s6592_s17 + $0xc8] sm:$0xff]  ;;  %v373_v35 = vld [vmem:[%s6592_s17 + $0xd0] sm:$0xff] }
  0x2b   : > { %6116 = vmatpush3.msra.mxu1 %v381_v6  ;;  %v374_v36 = vld [vmem:[%s6592_s17 + $0xd8] sm:$0xff]  ;;  %v375_v37 = vld [vmem:[%s6592_s17 + $0xe0] sm:$0xff]  ;;  %v376_v38 = vld [vmem:[%s6592_s17 + $0xe8] sm:$0xff] }
  0x2c   : > { %6109 = vmatprep.subr.mxu1 %v380_v7  ;;  %v377_v39 = vld [vmem:[%s6592_s17 + $0xf0] sm:$0xff] }
  0x2d   : > { %5982 = vmatpush3.xpose.msk.msra.mxu0 %vm388_vm0, %v383_v3  ;;  %6117 = vmatpush3.msra.mxu1 %v380_v7 }
  0x2e   : > { %5983 = vmatprep.subr.msk.mxu0 %vm388_vm0, %v382_v5  ;;  %6110 = vmatprep.subr.mxu1 %v379_v8 }
  0x2f   : > { %6118 = vmatpush3.msra.mxu1 %v379_v8 }
  0x30   : > { %5919 = vmatprep.subr.mxu1 %v6614_v9 }
  0x31   : > { %5984 = vmatpush3.xpose.msk.msra.mxu0 %vm388_vm0, %v382_v5 }
  0x32   : > { %5985 = vmatprep.subr.msk.mxu0 %vm388_vm0, %v381_v6 }
  0x35   : > { %5986 = vmatpush3.xpose.msk.msra.mxu0 %vm388_vm0, %v381_v6 }
  0x36   : > { %5987 = vmatprep.subr.msk.mxu0 %vm388_vm0, %v380_v7 }
  0x39   : > { %5988 = vmatpush3.xpose.msk.msra.mxu0 %vm388_vm0, %v380_v7 }
  0x3a   : > { %5989 = vmatprep.subr.msk.mxu0 %vm388_vm0, %v379_v8 }
  0x3d   : > { %5990 = vmatpush3.xpose.msk.msra.mxu0 %vm388_vm0, %v379_v8 }
  0x3e   : > { %6039 = vmatprep.subr.mxu0 %v386_v0 }
  0x40   : > { %5992 = vmatmul.mubr.msk.f32.vlgmr.msra.gmra.mxu0 %vm388_vm0, %v348_v10 }
  0x41   : > { %5994 = vmatprep.mubr.msk.f32.mxu0 %vm388_vm0, %v349_v11  ;;  %6040 = vmatpush3.msra.mxu0 %v386_v0 }
  0x42   : > { %6041 = vmatprep.subr.mxu0 %v385_v1 }
  0x43   : > { %6042 = vmatpush3.msra.mxu0 %v385_v1 }
  0x44   : > { %5995 = vmatmul.mubr.msk.f32.gmra.mxu0 %vm388_vm0, %v350_v12  ;;  %6043 = vmatprep.subr.mxu0 %v384_v2 }
  0x45   : > { %5997 = vmatprep.mubr.msk.f32.mxu0 %vm388_vm0, %v351_v13  ;;  %6044 = vmatpush3.msra.mxu0 %v384_v2 }
  0x46   : > { %6045 = vmatprep.subr.mxu0 %v383_v3 }
  0x47   : > { %6046 = vmatpush3.msra.mxu0 %v383_v3 }
  0x48   : > { %5998 = vmatmul.mubr.msk.f32.gmra.mxu0 %vm388_vm0, %v352_v14  ;;  %6047 = vmatprep.subr.mxu0 %v382_v5 }
  0x49   : > { %6000 = vmatprep.mubr.msk.f32.mxu0 %vm388_vm0, %v353_v15  ;;  %6048 = vmatpush3.msra.mxu0 %v382_v5 }
  0x4a   : > { %6049 = vmatprep.subr.mxu0 %v381_v6 }
  0x4b   : > { %6050 = vmatpush3.msra.mxu0 %v381_v6 }
  0x4c   : > { %6001 = vmatmul.mubr.msk.f32.gmra.mxu0 %vm388_vm0, %v354_v16  ;;  %6051 = vmatprep.subr.mxu0 %v380_v7 }
  0x4d   : > { %6003 = vmatprep.mubr.msk.f32.mxu0 %vm388_vm0, %v355_v17  ;;  %6052 = vmatpush3.msra.mxu0 %v380_v7 }
  0x4e   : > { %6053 = vmatprep.subr.mxu0 %v379_v8 }
  0x4f   : > { %6054 = vmatpush3.msra.mxu0 %v379_v8 }
  0x50   : > { %6004 = vmatmul.mubr.msk.f32.gmra.mxu0 %vm388_vm0, %v356_v18 }
  0x51   : > { %6006 = vmatprep.mubr.msk.f32.mxu0 %vm388_vm0, %v357_v19 }
  0x54   : > { %6007 = vmatmul.mubr.msk.f32.gmra.mxu0 %vm388_vm0, %v358_v20 }
  0x55   : > { %6009 = vmatprep.mubr.msk.f32.mxu0 %vm388_vm0, %v359_v21 }
  0x58   : > { %6010 = vmatmul.mubr.msk.f32.gmra.mxu0 %vm388_vm0, %v360_v22 }
  0x59   : > { %6012 = vmatprep.mubr.msk.f32.mxu0 %vm388_vm0, %v361_v23 }
  0x5c   : > { %6013 = vmatmul.mubr.msk.f32.gmra.mxu0 %vm388_vm0, %v362_v24 }
  0x5d   : > { %6015 = vmatprep.mubr.msk.f32.mxu0 %vm388_vm0, %v363_v25 }
  0x60   : > { %6016 = vmatmul.mubr.msk.f32.gmra.mxu0 %vm388_vm0, %v364_v26 }
  0x61   : > { %6018 = vmatprep.mubr.msk.f32.mxu0 %vm388_vm0, %v365_v27 }
  0x64   : > { %6019 = vmatmul.mubr.msk.f32.gmra.mxu0 %vm388_vm0, %v366_v28 }
  0x65   : > { %6021 = vmatprep.mubr.msk.f32.mxu0 %vm388_vm0, %v367_v29 }
  0x68   : > { %6022 = vmatmul.mubr.msk.f32.gmra.mxu0 %vm388_vm0, %v368_v30 }
  0x69   : > { %6024 = vmatprep.mubr.msk.f32.mxu0 %vm388_vm0, %v369_v31 }
  0x6c   : > { %6025 = vmatmul.mubr.msk.f32.gmra.mxu0 %vm388_vm0, %v370_v32 }
  0x6d   : > { %6027 = vmatprep.mubr.msk.f32.mxu0 %vm388_vm0, %v371_v33 }
  0x70   : > { %6028 = vmatmul.mubr.msk.f32.gmra.mxu0 %vm388_vm0, %v372_v34 }
  0x71   : > { %6030 = vmatprep.mubr.msk.f32.mxu0 %vm388_vm0, %v373_v35 }
  0x74   : > { %6031 = vmatmul.mubr.msk.f32.gmra.mxu0 %vm388_vm0, %v374_v36 }
  0x75   : > { %6033 = vmatprep.mubr.msk.f32.mxu0 %vm388_vm0, %v375_v37 }
  0x78   : > { %6034 = vmatmul.mubr.msk.f32.gmra.mxu0 %vm388_vm0, %v376_v38 }
  0x79   : > { %6036 = vmatprep.mubr.msk.f32.mxu0 %vm388_vm0, %v377_v39 }
  0x7c   : > { %6037 = vmatmul.mubr.msk.f32.gmra.mxu0 %vm388_vm0, %v6614_v9 }
 0x100   : > { %v5993_v40 = vpop.f32.mrf.mxu0 }
 0x101   : > { %v735_v42 = vmul.f32 2.0, %v5993_v40 }
 0x102   : > { %v575_v43 = vpop.f32.mrf.mxu0 }
 0x103   : > { %v734_v44 = vmul.f32 2.0, %v575_v43  ;;  %v6692_v45 = vsub.f32 %v735_v42, %v6689_v41 }
 0x104   : > { %v5996_v46 = vpop.f32.mrf.mxu0 }
 0x105   : > { %v737_v47 = vmul.f32 2.0, %v5996_v46  ;;  %v810_v48 = vsel %vm806_vm1, %v6692_v45, -inf  ;;  %v6697_v49 = vsub.f32 %v734_v44, %v6689_v41 }
 0x106   : > { %811 = vmax.xlane.f32.xlu1 %v810_v48  ;;  %v585_v50 = vpop.f32.mrf.mxu0 }
 0x107   : > { %v736_v51 = vmul.f32 2.0, %v585_v50  ;;  %v807_v52 = vsel %vm806_vm1, %v6697_v49, -inf  ;;  %v6702_v53 = vsub.f32 %v737_v47, %v6689_v41 }
 0x108   : > { %808 = vmax.xlane.f32.xlu0 %v807_v52  ;;  %v5999_v54 = vpop.f32.mrf.mxu0 }
 0x109   : > { %v739_v55 = vmul.f32 2.0, %v5999_v54  ;;  %v816_v56 = vsel %vm806_vm1, %v6702_v53, -inf  ;;  %v6707_v57 = vsub.f32 %v736_v51, %v6689_v41 }
 0x10a   : > { %817 = vmax.xlane.f32.xlu1 %v816_v56  ;;  %v595_v58 = vpop.f32.mrf.mxu0 }
 0x10b   : > { %v738_v59 = vmul.f32 2.0, %v595_v58  ;;  %v6710_v60 = vsub.f32 %v739_v55, %v6689_v41  ;;  %v813_v63 = vsel %vm806_vm1, %v6707_v57, -inf }
 0x10c   : > { %v6002_v61 = vpop.f32.mrf.mxu0 }
 0x10d   : > { %v741_v62 = vmul.f32 2.0, %v6002_v61  ;;  %v822_v0 = vsel %vm806_vm1, %v6710_v60, -inf  ;;  %v6717_v1 = vsub.f32 %v738_v59, %v6689_v41 }
 0x10e   : > { %814 = vmax.xlane.f32.xlu1 %v813_v63  ;;  %823 = vmax.xlane.f32.xlu0 %v822_v0  ;;  %v605_v2 = vpop.f32.mrf.mxu0 }
 0x10f   : > { %v740_v3 = vmul.f32 2.0, %v605_v2  ;;  %v6720_v4 = vsub.f32 %v741_v62, %v6689_v41  ;;  %v819_v7 = vsel %vm806_vm1, %v6717_v1, -inf }
 0x110   : > { %v6005_v5 = vpop.f32.mrf.mxu0 }
 0x111   : > { %v743_v6 = vmul.f32 2.0, %v6005_v5  ;;  %v828_v8 = vsel %vm806_vm1, %v6720_v4, -inf  ;;  %v6727_v9 = vsub.f32 %v740_v3, %v6689_v41 }
 0x112   : > { %820 = vmax.xlane.f32.xlu1 %v819_v7  ;;  %829 = vmax.xlane.f32.xlu0 %v828_v8  ;;  %v615_v10 = vpop.f32.mrf.mxu0 }
 0x113   : > { %v742_v11 = vmul.f32 2.0, %v615_v10  ;;  %v6730_v12 = vsub.f32 %v743_v6, %v6689_v41  ;;  %v825_v15 = vsel %vm806_vm1, %v6727_v9, -inf }
 0x114   : > { %v6008_v13 = vpop.f32.mrf.mxu0 }
 0x115   : > { %v745_v14 = vmul.f32 2.0, %v6008_v13  ;;  %v834_v16 = vsel %vm806_vm1, %v6730_v12, -inf  ;;  %v6737_v17 = vsub.f32 %v742_v11, %v6689_v41 }
 0x116   : > { %826 = vmax.xlane.f32.xlu1 %v825_v15  ;;  %835 = vmax.xlane.f32.xlu0 %v834_v16  ;;  %v625_v18 = vpop.f32.mrf.mxu0 }
 0x117   : > { %v744_v19 = vmul.f32 2.0, %v625_v18  ;;  %v6740_v20 = vsub.f32 %v745_v14, %v6689_v41  ;;  %v831_v23 = vsel %vm806_vm1, %v6737_v17, -inf }
 0x118   : > { %v6011_v21 = vpop.f32.mrf.mxu0 }
 0x119   : > { %v747_v22 = vmul.f32 2.0, %v6011_v21  ;;  %v840_v24 = vsel %vm806_vm1, %v6740_v20, -inf  ;;  %v6747_v25 = vsub.f32 %v744_v19, %v6689_v41 }
 0x11a   : > { %832 = vmax.xlane.f32.xlu1 %v831_v23  ;;  %841 = vmax.xlane.f32.xlu0 %v840_v24  ;;  %v635_v26 = vpop.f32.mrf.mxu0 }
 0x11b   : > { %v746_v27 = vmul.f32 2.0, %v635_v26  ;;  %v6750_v28 = vsub.f32 %v747_v22, %v6689_v41  ;;  %v837_v31 = vsel %vm806_vm1, %v6747_v25, -inf }
 0x11c   : > { %v6014_v29 = vpop.f32.mrf.mxu0 }
 0x11d   : > { %v749_v30 = vmul.f32 2.0, %v6014_v29  ;;  %v846_v32 = vsel %vm806_vm1, %v6750_v28, -inf  ;;  %v6757_v33 = vsub.f32 %v746_v27, %v6689_v41 }
 0x11e   : > { %838 = vmax.xlane.f32.xlu1 %v837_v31  ;;  %847 = vmax.xlane.f32.xlu0 %v846_v32  ;;  %v645_v34 = vpop.f32.mrf.mxu0 }
 0x11f   : > { %v6760_v35 = vsub.f32 %v749_v30, %v6689_v41  ;;  %v748_v37 = vmul.f32 2.0, %v645_v34  ;;  %v843_v39 = vsel %vm806_vm1, %v6757_v33, -inf }
 0x120   : > { %v6017_v36 = vpop.f32.mrf.mxu0 }
 0x121   : > { %v751_v38 = vmul.f32 2.0, %v6017_v36  ;;  %v852_v40 = vsel %vm806_vm1, %v6760_v35, -inf  ;;  %v6775_v51 = vsub.f32 %v748_v37, %v6689_v41 }
 0x122   : > { %844 = vmax.xlane.f32.xlu1 %v843_v39  ;;  %853 = vmax.xlane.f32.xlu0 %v852_v40  ;;  %v655_v42 = vpop.f32.mrf.mxu0 }
 0x123   : > { %v750_v43 = vmul.f32 2.0, %v655_v42  ;;  %v6767_v44 = vsub.f32 %v751_v38, %v6689_v41  ;;  %v849_v61 = vsel %vm806_vm1, %v6775_v51, -inf }
 0x124   : > { %v6020_v46 = vpop.f32.mrf.mxu0 }
 0x125   : > { %v753_v47 = vmul.f32 2.0, %v6020_v46  ;;  %v858_v48 = vsel %vm806_vm1, %v6767_v44, -inf  ;;  %v6772_v50 = vsub.f32 %v750_v43, %v6689_v41 }
 0x126   : > { %859 = vmax.xlane.f32.xlu1 %v858_v48  ;;  %v665_v52 = vpop.f32.mrf.mxu0 }
 0x127   : > { %v752_v54 = vmul.f32 2.0, %v665_v52  ;;  %v855_v55 = vsel %vm806_vm1, %v6772_v50, -inf  ;;  %v6780_v56 = vsub.f32 %v753_v47, %v6689_v41 }
 0x128   : > { %856 = vmax.xlane.f32.xlu0 %v855_v55  ;;  %v6023_v58 = vpop.f32.mrf.mxu0 }
 0x129   : > { %v755_v59 = vmul.f32 2.0, %v6023_v58  ;;  %v864_v62 = vsel %vm806_vm1, %v6780_v56, -inf  ;;  %v6790_v3 = vsub.f32 %v752_v54, %v6689_v41 }
 0x12a   : > { %850 = vmax.xlane.f32.xlu1 %v849_v61  ;;  %v675_v63 = vpop.f32.mrf.mxu0 }
 0x12b   : > { %v754_v0 = vmul.f32 2.0, %v675_v63  ;;  %v6787_v2 = vsub.f32 %v755_v59, %v6689_v41  ;;  %v861_v13 = vsel %vm806_vm1, %v6790_v3, -inf }
 0x12c   : > { %865 = vmax.xlane.f32.xlu0 %v864_v62  ;;  %v6026_v5 = vpop.f32.mrf.mxu0 }
 0x12d   : > { %v757_v6 = vmul.f32 2.0, %v6026_v5  ;;  %v870_v7 = vsel %vm806_vm1, %v6787_v2, -inf  ;;  %v6795_v8 = vsub.f32 %v754_v0, %v6689_v41 }
 0x12e   : > { %871 = vmax.xlane.f32.xlu1 %v870_v7  ;;  %v685_v10 = vpop.f32.mrf.mxu0  ;;  %v9387_v7 = vlaneseq }
 0x12f   : > { %v756_v11 = vmul.f32 2.0, %v685_v10  ;;  %v6800_v14 = vsub.f32 %v757_v6, %v6689_v41  ;;  %v867_v19 = vsel %vm806_vm1, %v6795_v8, -inf }
 0x130   : > { %862 = vmax.xlane.f32.xlu0 %v861_v13  ;;  %v6029_v15 = vpop.f32.mrf.mxu0  ;;  %v6852_v10 = vand.u32 127, %v9387_v7 }
 0x131   : > { %v759_v16 = vmul.f32 2.0, %v6029_v15  ;;  %v876_v18 = vsel %vm806_vm1, %v6800_v14, -inf  ;;  %v6807_v21 = vsub.f32 %v756_v11, %v6689_v41 }
 0x132   : > { %877 = vmax.xlane.f32.xlu1 %v876_v18  ;;  %v695_v22 = vpop.f32.mrf.mxu0  ;;  %9458 = vst [vmem:[#allocation9_spill] sm:$0xff] %v6852_v10 }
 0x133   : > { %v758_v23 = vmul.f32 2.0, %v695_v22  ;;  %v6810_v24 = vsub.f32 %v759_v16, %v6689_v41  ;;  %v873_v30 = vsel %vm806_vm1, %v6807_v21, -inf }
 0x134   : > { %868 = vmax.xlane.f32.xlu0 %v867_v19  ;;  %v6032_v26 = vpop.f32.mrf.mxu0 }
 0x135   : > { %v761_v27 = vmul.f32 2.0, %v6032_v26  ;;  %v882_v29 = vsel %vm806_vm1, %v6810_v24, -inf  ;;  %v6817_v31 = vsub.f32 %v758_v23, %v6689_v41 }
 0x136   : > { %883 = vmax.xlane.f32.xlu1 %v882_v29  ;;  %v705_v32 = vpop.f32.mrf.mxu0 }
 0x137   : > { %v760_v34 = vmul.f32 2.0, %v705_v32  ;;  %v6820_v36 = vsub.f32 %v761_v27, %v6689_v41  ;;  %v879_v40 = vsel %vm806_vm1, %v6817_v31, -inf }
 0x138   : > { %874 = vmax.xlane.f32.xlu0 %v873_v30  ;;  %v6035_v37 = vpop.f32.mrf.mxu0 }
 0x139   : > { %v763_v38 = vmul.f32 2.0, %v6035_v37  ;;  %v888_v39 = vsel %vm806_vm1, %v6820_v36, -inf  ;;  %v6827_v42 = vsub.f32 %v760_v34, %v6689_v41 }
 0x13a   : > { %889 = vmax.xlane.f32.xlu1 %v888_v39  ;;  %v715_v43 = vpop.f32.mrf.mxu0 }
 0x13b   : > { %v762_v46 = vmul.f32 2.0, %v715_v43  ;;  %v6830_v47 = vsub.f32 %v763_v38, %v6689_v41  ;;  %v885_v55 = vsel %vm806_vm1, %v6827_v42, -inf }
 0x13c   : > { %880 = vmax.xlane.f32.xlu0 %v879_v40  ;;  %v6038_v48 = vpop.f32.mrf.mxu0 }
 0x13d   : > { %v765_v52 = vmul.f32 2.0, %v6038_v48  ;;  %v894_v54 = vsel %vm806_vm1, %v6830_v47, -inf  ;;  %v6837_v58 = vsub.f32 %v762_v46, %v6689_v41 }
 0x13e   : > { %895 = vmax.xlane.f32.xlu1 %v894_v54  ;;  %v725_v59 = vpop.f32.mrf.mxu0 }
 0x13f   : > { %v6840_v61 = vsub.f32 %v765_v52, %v6689_v41  ;;  %v764_v62 = vmul.f32 2.0, %v725_v59  ;;  %v891_v0 = vsel %vm806_vm1, %v6837_v58, -inf }
 0x140   : > { %886 = vmax.xlane.f32.xlu0 %v885_v55 }
 0x141   : > { %v900_v63 = vsel %vm806_vm1, %v6840_v61, -inf  ;;  %v6847_v5 = vsub.f32 %v764_v62, %v6689_v41 }
 0x142   : > { %901 = vmax.xlane.f32.xlu1 %v900_v63 }
 0x143   : > { %v897_v6 = vsel %vm806_vm1, %v6847_v5, -inf }
 0x144   : > { %892 = vmax.xlane.f32.xlu0 %v891_v0 }
 0x148   : > { %898 = vmax.xlane.f32.xlu0 %v897_v6 }
 0x18f   : > { %v812_v11 = vpop.xlane.xlu1 %811 }
 0x190   : > { %vm904_vm2 = vcmp.ge.f32.partialorder %v6692_v45, %v812_v11 }
 0x191   : > { %v936_v13 = vsel %vm904_vm2, %v6852_v10, 64  ;;  %v809_v15 = vpop.xlane.xlu0 %808 }
 0x192   : > { %vm903_vm3 = vcmp.ge.f32.partialorder %v6697_v49, %v809_v15  ;;  %v6858_v41 = vsel %vm806_vm1, %v936_v13, 2147483647 }
 0x193   : > { %v935_v16 = vsel %vm903_vm3, %v6852_v10, 64  ;;  %v818_v18 = vpop.xlane.xlu1 %817  ;;  %v984_v19 = vshra.s32 %v6858_v41, 16 }
 0x194   : > { %v6863_v22 = vsel %vm806_vm1, %v935_v16, 2147483647  ;;  %vm906_vm4 = vcmp.ge.f32.partialorder %v6702_v53, %v818_v18 }
 0x195   : > { %v938_v45 = vsel %vm906_vm4, %v6852_v10, 64  ;;  %v6867_v23 = vcvt.s32.f32 %v984_v19  ;;  %v969_v26 = vshra.s32 %v6863_v22, 16 }
 0x196   : > { %v6871_v49 = vsel %vm806_vm1, %v938_v45, 2147483647 }
 0x197   : > { %v815_v27 = vpop.xlane.xlu1 %814  ;;  %v824_v29 = vpop.xlane.xlu0 %823  ;;  %987 = vmin.xlane.f32.xlu1 %v6867_v23  ;;  %v1014_v30 = vshra.s32 %v6871_v49, 16  ;;  %v6879_v34 = vcvt.s32.f32 %v969_v26 }
 0x198   : > { %vm905_vm5 = vcmp.ge.f32.partialorder %v6707_v57, %v815_v27  ;;  %vm908_vm6 = vcmp.ge.f32.partialorder %v6710_v60, %v824_v29 }
 0x199   : > { %v937_v53 = vsel %vm905_vm5, %v6852_v10, 64  ;;  %v940_v32 = vsel %vm908_vm6, %v6852_v10, 64  ;;  %v6891_v60 = vcvt.s32.f32 %v1014_v30 }
 0x19a   : > { %v6882_v37 = vsel %vm806_vm1, %v940_v32, 2147483647  ;;  %v6885_v38 = vsel %vm806_vm1, %v937_v53, 2147483647 }
 0x19b   : > { %v821_v39 = vpop.xlane.xlu1 %820  ;;  %v830_v40 = vpop.xlane.xlu0 %829  ;;  %972 = vmin.xlane.f32.xlu1 %v6879_v34  ;;  %v1044_v57 = vshra.s32 %v6882_v37, 16  ;;  %v999_v52 = vshra.s32 %v6885_v38, 16 }
 0x19c   : > { %vm907_vm7 = vcmp.ge.f32.partialorder %v6717_v1, %v821_v39  ;;  %vm910_vm8 = vcmp.ge.f32.partialorder %v6720_v4, %v830_v40 }
 0x19d   : > { %v939_v43 = vsel %vm907_vm7, %v6852_v10, 64  ;;  %v942_v46 = vsel %vm910_vm8, %v6852_v10, 64  ;;  %v6895_v48 = vcvt.s32.f32 %v1044_v57  ;;  %v6912_v6 = vcvt.s32.f32 %v999_v52 }
 0x19e   : > { %v6899_v54 = vsel %vm806_vm1, %v942_v46, 2147483647  ;;  %v6902_v55 = vsel %vm806_vm1, %v939_v43, 2147483647 }
 0x19f   : > { %v827_v59 = vpop.xlane.xlu1 %826  ;;  %v836_v1 = vpop.xlane.xlu0 %835  ;;  %1017 = vmin.xlane.f32.xlu1 %v6891_v60  ;;  %1047 = vmin.xlane.f32.xlu0 %v6895_v48  ;;  %v1074_v4 = vshra.s32 %v6899_v54, 16  ;;  %v1029_v62 = vshra.s32 %v6902_v55, 16 }
 0x1a0   : > { %vm909_vm9 = vcmp.ge.f32.partialorder %v6727_v9, %v827_v59  ;;  %vm912_vm10 = vcmp.ge.f32.partialorder %v6730_v12, %v836_v1 }
 0x1a1   : > { %v941_v63 = vsel %vm909_vm9, %v6852_v10, 64  ;;  %v944_v0 = vsel %vm912_vm10, %v6852_v10, 64  ;;  %v6914_v11 = vcvt.s32.f32 %v1074_v4  ;;  %v6927_v18 = vcvt.s32.f32 %v1029_v62 }
 0x1a2   : > { %v6917_v13 = vsel %vm806_vm1, %v944_v0, 2147483647  ;;  %v6920_v15 = vsel %vm806_vm1, %v941_v63, 2147483647 }
 0x1a3   : > { %v833_v16 = vpop.xlane.xlu1 %832  ;;  %v842_v9 = vpop.xlane.xlu0 %841  ;;  %1002 = vmin.xlane.f32.xlu1 %v6912_v6  ;;  %1077 = vmin.xlane.f32.xlu0 %v6914_v11  ;;  %v1104_v12 = vshra.s32 %v6917_v13, 16  ;;  %v1059_v27 = vshra.s32 %v6920_v15, 16 }
 0x1a4   : > { %vm911_vm11 = vcmp.ge.f32.partialorder %v6737_v17, %v833_v16  ;;  %vm914_vm12 = vcmp.ge.f32.partialorder %v6740_v20, %v842_v9 }
 0x1a5   : > { %v943_v19 = vsel %vm911_vm11, %v6852_v10, 64  ;;  %v946_v45 = vsel %vm914_vm12, %v6852_v10, 64  ;;  %v6931_v26 = vcvt.s32.f32 %v1104_v12  ;;  %v6948_v57 = vcvt.s32.f32 %v1059_v27 }
 0x1a6   : > { %v6935_v29 = vsel %vm806_vm1, %v946_v45, 2147483647  ;;  %v6938_v30 = vsel %vm806_vm1, %v943_v19, 2147483647 }
 0x1a7   : > { %v839_v53 = vpop.xlane.xlu1 %838  ;;  %v848_v17 = vpop.xlane.xlu0 %847  ;;  %1032 = vmin.xlane.f32.xlu1 %v6927_v18  ;;  %1107 = vmin.xlane.f32.xlu0 %v6931_v26  ;;  %v1134_v20 = vshra.s32 %v6935_v29, 16  ;;  %v1089_v32 = vshra.s32 %v6938_v30, 16 }
 0x1a8   : > { %vm913_vm13 = vcmp.ge.f32.partialorder %v6747_v25, %v839_v53  ;;  %vm916_vm14 = vcmp.ge.f32.partialorder %v6750_v28, %v848_v17 }
 0x1a9   : > { %v945_v39 = vsel %vm913_vm13, %v6852_v10, 64  ;;  %v948_v40 = vsel %vm916_vm14, %v6852_v10, 64  ;;  %v6950_v43 = vcvt.s32.f32 %v1134_v20  ;;  %v6963_v1 = vcvt.s32.f32 %v1089_v32 }
 0x1aa   : > { %v6953_v46 = vsel %vm806_vm1, %v948_v40, 2147483647  ;;  %v6956_v52 = vsel %vm806_vm1, %v945_v39, 2147483647 }
 0x1ab   : > { %v845_v59 = vpop.xlane.xlu1 %844  ;;  %v854_v25 = vpop.xlane.xlu0 %853  ;;  %1062 = vmin.xlane.f32.xlu1 %v6948_v57  ;;  %1137 = vmin.xlane.f32.xlu0 %v6950_v43  ;;  %v1164_v28 = vshra.s32 %v6953_v46, 16  ;;  %v1119_v0 = vshra.s32 %v6956_v52, 16 }
 0x1ac   : > { %vm915_vm15 = vcmp.ge.f32.partialorder %v6757_v33, %v845_v59  ;;  %vm918_vm2 = vcmp.ge.f32.partialorder %v6760_v35, %v854_v25 }
 0x1ad   : > { %v947_v4 = vsel %vm915_vm15, %v6852_v10, 64  ;;  %v950_v62 = vsel %vm918_vm2, %v6852_v10, 64  ;;  %v6967_v63 = vcvt.s32.f32 %v1164_v28  ;;  %v6981_v45 = vcvt.s32.f32 %v1119_v0 }
 0x1ae   : > { %v6971_v16 = vsel %vm806_vm1, %v950_v62, 2147483647  ;;  %v6974_v9 = vsel %vm806_vm1, %v947_v4, 2147483647 }
 0x1af   : > { %v860_v12 = vpop.xlane.xlu1 %859  ;;  %1092 = vmin.xlane.f32.xlu1 %v6963_v1  ;;  %1167 = vmin.xlane.f32.xlu0 %v6967_v63  ;;  %v1194_v33 = vshra.s32 %v6971_v16, 16  ;;  %v1149_v53 = vshra.s32 %v6974_v9, 16 }
 0x1b0   : > { %vm920_vm3 = vcmp.ge.f32.partialorder %v6767_v44, %v860_v12 }
 0x1b1   : > { %v952_v35 = vsel %vm920_vm3, %v6852_v10, 64  ;;  %v857_v19 = vpop.xlane.xlu0 %856  ;;  %v6983_v27 = vcvt.s32.f32 %v1194_v33  ;;  %v6999_v59 = vcvt.s32.f32 %v1149_v53 }
 0x1b2   : > { %vm919_vm4 = vcmp.ge.f32.partialorder %v6772_v50, %v857_v19  ;;  %v6988_v17 = vsel %vm806_vm1, %v952_v35, 2147483647 }
 0x1b3   : > { %v951_v20 = vsel %vm919_vm4, %v6852_v10, 64  ;;  %v851_v32 = vpop.xlane.xlu1 %850  ;;  %1122 = vmin.xlane.f32.xlu1 %v6981_v45  ;;  %1197 = vmin.xlane.f32.xlu0 %v6983_v27  ;;  %v1224_v44 = vshra.s32 %v6988_v17, 16 }
 0x1b4   : > { %vm917_vm5 = vcmp.ge.f32.partialorder %v6775_v51, %v851_v32  ;;  %v6996_v39 = vsel %vm806_vm1, %v951_v20, 2147483647 }
 0x1b5   : > { %v949_v40 = vsel %vm917_vm5, %v6852_v10, 64  ;;  %v866_v50 = vpop.xlane.xlu0 %865  ;;  %v7001_v25 = vcvt.s32.f32 %v1224_v44  ;;  %v1209_v28 = vshra.s32 %v6996_v39, 16 }
 0x1b6   : > { %vm922_vm6 = vcmp.ge.f32.partialorder %v6780_v56, %v866_v50  ;;  %v7006_v4 = vsel %vm806_vm1, %v949_v40, 2147483647 }
 0x1b7   : > { %v954_v62 = vsel %vm922_vm6, %v6852_v10, 64  ;;  %v872_v51 = vpop.xlane.xlu1 %871  ;;  %1152 = vmin.xlane.f32.xlu1 %v6999_v59  ;;  %1227 = vmin.xlane.f32.xlu0 %v7001_v25  ;;  %v1179_v0 = vshra.s32 %v7006_v4, 16  ;;  %v7019_v19 = vcvt.s32.f32 %v1209_v28 }
 0x1b8   : > { %v7013_v12 = vsel %vm806_vm1, %v954_v62, 2147483647  ;;  %vm924_vm7 = vcmp.ge.f32.partialorder %v6787_v2, %v872_v51 }
 0x1b9   : > { %v956_v33 = vsel %vm924_vm7, %v6852_v10, 64  ;;  %v863_v56 = vpop.xlane.xlu0 %862  ;;  %v7017_v35 = vcvt.s32.f32 %v1179_v0  ;;  %v1254_v53 = vshra.s32 %v7013_v12, 16 }
 0x1ba   : > { %vm921_vm8 = vcmp.ge.f32.partialorder %v6790_v3, %v863_v56  ;;  %v7024_v20 = vsel %vm806_vm1, %v956_v33, 2147483647 }
 0x1bb   : > { %v953_v32 = vsel %vm921_vm8, %v6852_v10, 64  ;;  %v878_v44 = vpop.xlane.xlu1 %877  ;;  %1182 = vmin.xlane.f32.xlu1 %v7017_v35  ;;  %1212 = vmin.xlane.f32.xlu0 %v7019_v19  ;;  %v1284_v2 = vshra.s32 %v7024_v20, 16  ;;  %v7037_v62 = vcvt.s32.f32 %v1254_v53 }
 0x1bc   : > { %v7031_v40 = vsel %vm806_vm1, %v953_v32, 2147483647  ;;  %vm926_vm9 = vcmp.ge.f32.partialorder %v6800_v14, %v878_v44 }
 0x1bd   : > { %v958_v50 = vsel %vm926_vm9, %v6852_v10, 64  ;;  %v869_v3 = vpop.xlane.xlu0 %868  ;;  %v7035_v28 = vcvt.s32.f32 %v1284_v2  ;;  %v1239_v51 = vshra.s32 %v7031_v40, 16 }
 0x1be   : > { %vm923_vm10 = vcmp.ge.f32.partialorder %v6795_v8, %v869_v3  ;;  %v7042_v0 = vsel %vm806_vm1, %v958_v50, 2147483647 }
 0x1bf   : > { %v955_v33 = vsel %vm923_vm10, %v6852_v10, 64  ;;  %v884_v56 = vpop.xlane.xlu1 %883  ;;  %1287 = vmin.xlane.f32.xlu1 %v7035_v28  ;;  %1257 = vmin.xlane.f32.xlu0 %v7037_v62  ;;  %v1314_v14 = vshra.s32 %v7042_v0, 16  ;;  %v7055_v2 = vcvt.s32.f32 %v1239_v51 }
 0x1c0   : > { %v7049_v32 = vsel %vm806_vm1, %v955_v33, 2147483647  ;;  %vm928_vm11 = vcmp.ge.f32.partialorder %v6810_v24, %v884_v56 }
 0x1c1   : > { %v960_v53 = vsel %vm928_vm11, %v6852_v10, 64  ;;  %v875_v8 = vpop.xlane.xlu0 %874  ;;  %v7053_v44 = vcvt.s32.f32 %v1314_v14  ;;  %9460 = vst [vmem:[#allocation11_spill] sm:$0xff] %v7055_v2  ;;  %v1269_v50 = vshra.s32 %v7049_v32, 16 }
 0x1c2   : > { %vm925_vm12 = vcmp.ge.f32.partialorder %v6807_v21, %v875_v8  ;;  %v7060_v3 = vsel %vm806_vm1, %v960_v53, 2147483647 }
 0x1c3   : > { %9459 = vst [vmem:[#allocation10_spill] sm:$0xff] %v7053_v44  ;;  %v957_v7 = vsel %vm925_vm12, %v6852_v10, 64  ;;  %v890_v33 = vpop.xlane.xlu1 %889  ;;  %1317 = vmin.xlane.f32.xlu1 %v7053_v44  ;;  %1242 = vmin.xlane.f32.xlu0 %v7055_v2  ;;  %v1344_v24 = vshra.s32 %v7060_v3, 16  ;;  %v7073_v53 = vcvt.s32.f32 %v1269_v50 }
 0x1c4   : > { %v7067_v56 = vsel %vm806_vm1, %v957_v7, 2147483647  ;;  %vm930_vm13 = vcmp.ge.f32.partialorder %v6820_v36, %v890_v33 }
 0x1c5   : > { %v962_v51 = vsel %vm930_vm13, %v6852_v10, 64  ;;  %v881_v21 = vpop.xlane.xlu0 %880  ;;  %v7071_v14 = vcvt.s32.f32 %v1344_v24  ;;  %9462 = vst [vmem:[#allocation13_spill] sm:$0xff] %v7073_v53  ;;  %v1299_v8 = vshra.s32 %v7067_v56, 16 }
 0x1c6   : > { %vm927_vm14 = vcmp.ge.f32.partialorder %v6817_v31, %v881_v21  ;;  %v7078_v2 = vsel %vm806_vm1, %v962_v51, 2147483647 }
 0x1c7   : > { %9461 = vst [vmem:[#allocation12_spill] sm:$0xff] %v7071_v14  ;;  %v959_v44 = vsel %vm927_vm14, %v6852_v10, 64  ;;  %v896_v7 = vpop.xlane.xlu1 %895  ;;  %1347 = vmin.xlane.f32.xlu1 %v7071_v14  ;;  %1272 = vmin.xlane.f32.xlu0 %v7073_v53  ;;  %v1374_v36 = vshra.s32 %v7078_v2, 16  ;;  %v7091_v51 = vcvt.s32.f32 %v1299_v8 }
 0x1c8   : > { %v7085_v33 = vsel %vm806_vm1, %v959_v44, 2147483647  ;;  %vm932_vm15 = vcmp.ge.f32.partialorder %v6830_v47, %v896_v7 }
 0x1c9   : > { %v964_v50 = vsel %vm932_vm15, %v6852_v10, 64  ;;  %v887_v31 = vpop.xlane.xlu0 %886  ;;  %v7089_v24 = vcvt.s32.f32 %v1374_v36  ;;  %9464 = vst [vmem:[#allocation15_spill] sm:$0xff] %v7091_v51  ;;  %v1329_v21 = vshra.s32 %v7085_v33, 16 }
 0x1ca   : > { %vm929_vm2 = vcmp.ge.f32.partialorder %v6827_v42, %v887_v31  ;;  %v7096_v53 = vsel %vm806_vm1, %v964_v50, 2147483647 }
 0x1cb   : > { %9463 = vst [vmem:[#allocation14_spill] sm:$0xff] %v7089_v24  ;;  %v961_v14 = vsel %vm929_vm2, %v6852_v10, 64  ;;  %1377 = vmin.xlane.f32.xlu1 %v7089_v24  ;;  %v902_v44 = vpop.xlane.xlu1 %901  ;;  %1302 = vmin.xlane.f32.xlu0 %v7091_v51  ;;  %v1404_v47 = vshra.s32 %v7096_v53, 16  ;;  %v7109_v50 = vcvt.s32.f32 %v1329_v21 }
 0x1cc   : > { %v7103_v7 = vsel %vm806_vm1, %v961_v14, 2147483647  ;;  %vm934_vm3 = vcmp.ge.f32.partialorder %v6840_v61, %v902_v44 }
 0x1cd   : > { %v966_v8 = vsel %vm934_vm3, %v6852_v10, 64  ;;  %v893_v42 = vpop.xlane.xlu0 %892  ;;  %v7107_v36 = vcvt.s32.f32 %v1404_v47  ;;  %v1359_v31 = vshra.s32 %v7103_v7, 16 }
 0x1ce   : > { %vm931_vm4 = vcmp.ge.f32.partialorder %v6837_v58, %v893_v42  ;;  %v7114_v51 = vsel %vm806_vm1, %v966_v8, 2147483647 }
 0x1cf   : > { %v963_v24 = vsel %vm931_vm4, %v6852_v10, 64  ;;  %1407 = vmin.xlane.f32.xlu1 %v7107_v36  ;;  %1332 = vmin.xlane.f32.xlu0 %v7109_v50  ;;  %v1434_v61 = vshra.s32 %v7114_v51, 16  ;;  %v7125_v47 = vcvt.s32.f32 %v1359_v31 }
 0x1d0   : > { %v7121_v14 = vsel %vm806_vm1, %v963_v24, 2147483647 }
 0x1d1   : > { %v899_v21 = vpop.xlane.xlu0 %898  ;;  %v7123_v44 = vcvt.s32.f32 %v1434_v61  ;;  %9465 = vst [vmem:[#allocation16_spill] sm:$0xff] %v7125_v47  ;;  %v1389_v58 = vshra.s32 %v7121_v14, 16 }
 0x1d2   : > { %vm933_vm5 = vcmp.ge.f32.partialorder %v6847_v5, %v899_v21  ;;  %v983_v5 = vand.u32 65535, %v6858_v41 }
 0x1d3   : > { %v965_v8 = vsel %vm933_vm5, %v6852_v10, 64  ;;  %1437 = vmin.xlane.f32.xlu1 %v7123_v44  ;;  %1362 = vmin.xlane.f32.xlu0 %v7125_v47  ;;  %v7135_v24 = vcvt.s32.f32 %v1389_v58  ;;  %v968_v47 = vand.u32 65535, %v6863_v22 }
 0x1d4   : > { %v7133_v42 = vsel %vm806_vm1, %v965_v8, 2147483647  ;;  %v985_v10 = vcvt.s32.f32 %v983_v5 }
 0x1d5   : > { %9466 = vst [vmem:[#allocation17_spill] sm:$0xff] %v7133_v42  ;;  %9467 = vst [vmem:[#allocation18_spill] sm:$0xff] %v7135_v24  ;;  %v1419_v61 = vshra.s32 %v7133_v42, 16  ;;  %v970_v42 = vcvt.s32.f32 %v968_v47 }
 0x1d7   : > { %1392 = vmin.xlane.f32.xlu0 %v7135_v24  ;;  %v7139_v31 = vcvt.s32.f32 %v1419_v61  ;;  %v1013_v61 = vand.u32 65535, %v6871_v49  ;;  %v1043_v24 = vand.u32 65535, %v6882_v37 }
 0x1d9   : > { %9468 = vst [vmem:[#allocation19_spill] sm:$0xff] %v7139_v31 }
 0x1db   : > { %1422 = vmin.xlane.f32.xlu0 %v7139_v31  ;;  %v1015_v31 = vcvt.s32.f32 %v1013_v61 }
 0x220   : > { %v7143_v21 = vpop.xlane.xlu1 %987 }
 0x221   : > { %vm989_vm6 = vcmp.eq.f32.partialorder %v6867_v23, %v7143_v21  ;;  %v1045_v23 = vcvt.s32.f32 %v1043_v24 }
 0x222   : > { %v990_v58 = vsel %vm989_vm6, %v985_v10, inf  ;;  %v998_v10 = vand.u32 65535, %v6885_v38  ;;  %v1028_v38 = vand.u32 65535, %v6902_v55  ;;  %v1058_v55 = vand.u32 65535, %v6920_v15 }
 0x223   : > { %991 = vmin.xlane.f32.xlu1 %v990_v58  ;;  %v1073_v58 = vand.u32 65535, %v6899_v54  ;;  %v1103_v54 = vand.u32 65535, %v6917_v13  ;;  %v1133_v13 = vand.u32 65535, %v6935_v29  ;;  %v1088_v15 = vand.u32 65535, %v6938_v30 }
 0x224   : > { %v7148_v8 = vpop.xlane.xlu1 %972  ;;  %v1163_v29 = vand.u32 65535, %v6953_v46  ;;  %v1118_v30 = vand.u32 65535, %v6956_v52  ;;  %v1193_v46 = vand.u32 65535, %v6971_v16  ;;  %v1223_v16 = vand.u32 65535, %v6988_v17 }
 0x225   : > { %vm974_vm7 = vcmp.eq.f32.partialorder %v6879_v34, %v7148_v8  ;;  %v1075_v24 = vcvt.s32.f32 %v1073_v58  ;;  %v1208_v17 = vand.u32 65535, %v6996_v39  ;;  %v1283_v39 = vand.u32 65535, %v7024_v20 }
 0x226   : > { %v975_v41 = vsel %vm974_vm7, %v970_v42, inf  ;;  %v1000_v42 = vcvt.s32.f32 %v998_v10  ;;  %v1195_v52 = vcvt.s32.f32 %v1193_v46  ;;  %v1313_v20 = vand.u32 65535, %v7042_v0 }
 0x227   : > { %976 = vmin.xlane.f32.xlu1 %v975_v41  ;;  %v1030_v41 = vcvt.s32.f32 %v1028_v38  ;;  %v1090_v38 = vcvt.s32.f32 %v1088_v15  ;;  %v1343_v0 = vand.u32 65535, %v7060_v3  ;;  %v1373_v3 = vand.u32 65535, %v7078_v2 }
 0x228   : > { %v7154_v5 = vpop.xlane.xlu1 %1017  ;;  %v7156_v22 = vpop.xlane.xlu0 %1047  ;;  %v1403_v2 = vand.u32 65535, %v7096_v53  ;;  %v1433_v53 = vand.u32 65535, %v7114_v51  ;;  %v1388_v51 = vand.u32 65535, %v7121_v14 }
 0x229   : > { %vm1019_vm8 = vcmp.eq.f32.partialorder %v6891_v60, %v7154_v5  ;;  %vm1049_vm9 = vcmp.eq.f32.partialorder %v6895_v48, %v7156_v22 }
 0x22a   : > { %v1020_v49 = vsel %vm1019_vm8, %v1015_v31, inf  ;;  %v1050_v34 = vsel %vm1049_vm9, %v1045_v23, inf  ;;  %v1105_v23 = vcvt.s32.f32 %v1103_v54  ;;  %v1165_v54 = vcvt.s32.f32 %v1163_v29 }
 0x22b   : > { %1021 = vmin.xlane.f32.xlu1 %v1020_v49  ;;  %1051 = vmin.xlane.f32.xlu0 %v1050_v34  ;;  %v1060_v49 = vcvt.s32.f32 %v1058_v55  ;;  %v1135_v34 = vcvt.s32.f32 %v1133_v13  ;;  %v1210_v29 = vcvt.s32.f32 %v1208_v17 }
 0x22c   : > { %v7164_v37 = vpop.xlane.xlu1 %1002  ;;  %v7166_v47 = vpop.xlane.xlu0 %1077 }
 0x22d   : > { %vm1004_vm10 = vcmp.eq.f32.partialorder %v6912_v6, %v7164_v37  ;;  %vm1079_vm11 = vcmp.eq.f32.partialorder %v6914_v11, %v7166_v47 }
 0x22e   : > { %v1005_v60 = vsel %vm1004_vm10, %v1000_v42, inf  ;;  %v1080_v48 = vsel %vm1079_vm11, %v1075_v24, inf }
 0x22f   : > { %1006 = vmin.xlane.f32.xlu1 %v1005_v60  ;;  %1081 = vmin.xlane.f32.xlu0 %v1080_v48  ;;  %v1148_v60 = vand.u32 65535, %v6974_v9 }
 0x230   : > { %v7174_v31 = vpop.xlane.xlu1 %1032  ;;  %v7176_v61 = vpop.xlane.xlu0 %1107 }
 0x231   : > { %vm1034_vm12 = vcmp.eq.f32.partialorder %v6927_v18, %v7174_v31  ;;  %vm1109_vm13 = vcmp.eq.f32.partialorder %v6931_v26, %v7176_v61  ;;  %v1150_v55 = vcvt.s32.f32 %v1148_v60 }
 0x232   : > { %v1035_v6 = vsel %vm1034_vm12, %v1030_v41, inf  ;;  %v1110_v11 = vsel %vm1109_vm13, %v1105_v23, inf  ;;  %v1120_v23 = vcvt.s32.f32 %v1118_v30 }
 0x233   : > { %1036 = vmin.xlane.f32.xlu1 %v1035_v6  ;;  %1111 = vmin.xlane.f32.xlu0 %v1110_v11  ;;  %v1225_v6 = vcvt.s32.f32 %v1223_v16  ;;  %v1178_v11 = vand.u32 65535, %v7006_v4 }
 0x234   : > { %v7184_v10 = vpop.xlane.xlu1 %1062  ;;  %v7186_v58 = vpop.xlane.xlu0 %1137 }
 0x235   : > { %vm1064_vm14 = vcmp.eq.f32.partialorder %v6948_v57, %v7184_v10  ;;  %vm1139_vm15 = vcmp.eq.f32.partialorder %v6950_v43, %v7186_v58  ;;  %v1180_v4 = vcvt.s32.f32 %v1178_v11  ;;  %v9472_v11 = vld [vmem:[#allocation13_spill] sm:$0xff] }
 0x236   : > { %v1065_v18 = vsel %vm1064_vm14, %v1060_v49, inf  ;;  %v1140_v26 = vsel %vm1139_vm15, %v1135_v34, inf }
 0x237   : > { %1066 = vmin.xlane.f32.xlu1 %v1065_v18  ;;  %1141 = vmin.xlane.f32.xlu0 %v1140_v26 }
 0x238   : > { %v7194_v42 = vpop.xlane.xlu1 %1092  ;;  %v7196_v24 = vpop.xlane.xlu0 %1167 }
 0x239   : > { %vm1094_vm2 = vcmp.eq.f32.partialorder %v6963_v1, %v7194_v42  ;;  %vm1169_vm3 = vcmp.eq.f32.partialorder %v6967_v63, %v7196_v24 }
 0x23a   : > { %v1095_v57 = vsel %vm1094_vm2, %v1090_v38, inf  ;;  %v1170_v43 = vsel %vm1169_vm3, %v1165_v54, inf  ;;  %v1285_v54 = vcvt.s32.f32 %v1283_v39 }
 0x23b   : > { %1096 = vmin.xlane.f32.xlu1 %v1095_v57  ;;  %1171 = vmin.xlane.f32.xlu0 %v1170_v43  ;;  %v1315_v43 = vcvt.s32.f32 %v1313_v20 }
 0x23c   : > { %v7205_v48 = vpop.xlane.xlu1 %1122  ;;  %v7207_v41 = vpop.xlane.xlu0 %1197 }
 0x23d   : > { %vm1124_vm4 = vcmp.eq.f32.partialorder %v6981_v45, %v7205_v48  ;;  %vm1199_vm5 = vcmp.eq.f32.partialorder %v6983_v27, %v7207_v41  ;;  %v9401_v45 = vmov 0  }
 0x23e   : > { %v1125_v1 = vsel %vm1124_vm4, %v1120_v23, inf  ;;  %v1200_v63 = vsel %vm1199_vm5, %v1195_v52, inf  ;;  %6259 = vset.pattern.permute.xlu1 %v9401_v45  ;;  %v9469_v23 = vld [vmem:[#allocation10_spill] sm:$0xff] }
 0x23f   : > { %1126 = vmin.xlane.f32.xlu1 %v1125_v1  ;;  %1201 = vmin.xlane.f32.xlu0 %v1200_v63  ;;  %v1345_v63 = vcvt.s32.f32 %v1343_v0 }
 0x240   : > { %v7214_v9 = vpop.xlane.xlu1 %1152  ;;  %v7216_v13 = vpop.xlane.xlu0 %1227 }
 0x241   : > { %vm1154_vm6 = vcmp.eq.f32.partialorder %v6999_v59, %v7214_v9  ;;  %vm1229_vm7 = vcmp.eq.f32.partialorder %v7001_v25, %v7216_v13  ;;  %v1253_v59 = vand.u32 65535, %v7013_v12  ;;  %v1238_v12 = vand.u32 65535, %v7031_v40 }
 0x242   : > { %v1155_v27 = vsel %vm1154_vm6, %v1150_v55, inf  ;;  %v1230_v49 = vsel %vm1229_vm7, %v1225_v6, inf  ;;  %v1268_v40 = vand.u32 65535, %v7049_v32  ;;  %v1298_v32 = vand.u32 65535, %v7067_v56  ;;  %v9471_v6 = vld [vmem:[#allocation12_spill] sm:$0xff] }
 0x243   : > { %1156 = vmin.xlane.f32.xlu1 %v1155_v27  ;;  %1231 = vmin.xlane.f32.xlu0 %v1230_v49  ;;  %v1255_v30 = vcvt.s32.f32 %v1253_v59  ;;  %v1240_v60 = vcvt.s32.f32 %v1238_v12  ;;  %v1328_v56 = vand.u32 65535, %v7085_v33  ;;  %v9473_v59 = vld [vmem:[#allocation14_spill] sm:$0xff]  ;;  %v1405_v12 = vcvt.s32.f32 %v1403_v2 }
 0x244   : > { %v7225_v34 = vpop.xlane.xlu1 %1182  ;;  %v7227_v15 = vpop.xlane.xlu0 %1212  ;;  %v1270_v55 = vcvt.s32.f32 %v1268_v40  ;;  %v1300_v39 = vcvt.s32.f32 %v1298_v32  ;;  %v1358_v33 = vand.u32 65535, %v7103_v7  ;;  %v1435_v40 = vcvt.s32.f32 %v1433_v53  ;;  %v9475_v7 = vld [vmem:[#allocation16_spill] sm:$0xff]  ;;  %v9478_v32 = vld [vmem:[#allocation19_spill] sm:$0xff] }
 0x245   : > { %vm1184_vm8 = vcmp.eq.f32.partialorder %v7017_v35, %v7225_v34  ;;  %vm1214_vm9 = vcmp.eq.f32.partialorder %v7019_v19, %v7227_v15  ;;  %v1084_v2 = vcvt.f32.s32 %v7166_v47 }
 0x246   : > { %v1185_v25 = vsel %vm1184_vm8, %v1180_v4, inf  ;;  %v1215_v18 = vsel %vm1214_vm9, %v1210_v29, inf  ;;  %v1375_v29 = vcvt.s32.f32 %v1373_v3 }
 0x247   : > { %1186 = vmin.xlane.f32.xlu1 %v1185_v25  ;;  %1216 = vmin.xlane.f32.xlu0 %v1215_v18  ;;  %v9474_v25 = vld [vmem:[#allocation15_spill] sm:$0xff] }
 0x248   : > { %v7235_v26 = vpop.xlane.xlu1 %1287  ;;  %v7237_v38 = vpop.xlane.xlu0 %1257 }
 0x249   : > { %vm1289_vm10 = vcmp.eq.f32.partialorder %v7035_v28, %v7235_v26  ;;  %vm1259_vm11 = vcmp.eq.f32.partialorder %v7037_v62, %v7237_v38  ;;  %v9470_v28 = vld [vmem:[#allocation11_spill] sm:$0xff] }
 0x24a   : > { %v1290_v35 = vsel %vm1289_vm10, %v1285_v54, inf  ;;  %v1260_v19 = vsel %vm1259_vm11, %v1255_v30, inf }
 0x24b   : > { %1291 = vmin.xlane.f32.xlu1 %v1290_v35  ;;  %1261 = vmin.xlane.f32.xlu0 %v1260_v19  ;;  %v1330_v35 = vcvt.s32.f32 %v1328_v56  ;;  %v9479_v56 = vlaneseq }
 0x24c   : > { %v7245_v46 = vpop.xlane.xlu1 %1317  ;;  %v7247_v57 = vpop.xlane.xlu0 %1242 }
 0x24d   : > { %vm1319_vm12 = vcmp.eq.f32.partialorder %v9469_v23, %v7245_v46  ;;  %vm1244_vm13 = vcmp.eq.f32.partialorder %v9470_v28, %v7247_v57  ;;  %v1360_v23 = vcvt.s32.f32 %v1358_v33 }
 0x24e   : > { %v1320_v62 = vsel %vm1319_vm12, %v1315_v43, inf  ;;  %v1245_v52 = vsel %vm1244_vm13, %v1240_v60, inf }
 0x24f   : > { %1321 = vmin.xlane.f32.xlu1 %v1320_v62  ;;  %1246 = vmin.xlane.f32.xlu0 %v1245_v52  ;;  %v1390_v62 = vcvt.s32.f32 %v1388_v51  ;;  %v9476_v52 = vld [vmem:[#allocation17_spill] sm:$0xff] }
 0x250   : > { %v7255_v16 = vpop.xlane.xlu1 %1347  ;;  %v7257_v1 = vpop.xlane.xlu0 %1272 }
 0x251   : > { %vm1349_vm14 = vcmp.eq.f32.partialorder %v9471_v6, %v7255_v16  ;;  %vm1274_vm15 = vcmp.eq.f32.partialorder %v9472_v11, %v7257_v1  ;;  %v994_v11 = vcvt.f32.s32 %v7143_v21 }
 0x252   : > { %v1350_v17 = vsel %vm1349_vm14, %v1345_v63, inf  ;;  %v1275_v27 = vsel %vm1274_vm15, %v1270_v55, inf  ;;  %v1418_v63 = vand.u32 65535, %v9476_v52  ;;  %v9477_v55 = vld [vmem:[#allocation18_spill] sm:$0xff]  ;;  %v1144_v52 = vcvt.f32.s32 %v7186_v58 }
 0x253   : > { %1351 = vmin.xlane.f32.xlu1 %v1350_v17  ;;  %1276 = vmin.xlane.f32.xlu0 %v1275_v27  ;;  %v979_v17 = vcvt.f32.s32 %v7148_v8  ;;  %v1024_v27 = vcvt.f32.s32 %v7154_v5  ;;  %v7323_v5 = vshll.u32 %v1084_v2, 16  ;;  %v1174_v58 = vcvt.f32.s32 %v7196_v24 }
 0x254   : > { %v7265_v49 = vpop.xlane.xlu1 %1377  ;;  %v7267_v4 = vpop.xlane.xlu0 %1302  ;;  %v7375_v2 = vshll.u32 %v1144_v52, 16  ;;  %v1189_v52 = vcvt.f32.s32 %v7225_v34  ;;  %v1264_v34 = vcvt.f32.s32 %v7237_v38  ;;  %v1354_v38 = vcvt.f32.s32 %v7255_v16 }
 0x255   : > { %vm1379_vm2 = vcmp.eq.f32.partialorder %v9473_v59, %v7265_v49  ;;  %vm1304_vm3 = vcmp.eq.f32.partialorder %v9474_v25, %v7267_v4  ;;  %v7310_v59 = vshrl.u32 %v9479_v56, 7  ;;  %v7312_v25 = vshll.u32 %v994_v11, 16 }
 0x256   : > { %v1380_v18 = vsel %vm1379_vm2, %v1375_v29, inf  ;;  %v1305_v54 = vsel %vm1304_vm3, %v1300_v39, inf  ;;  %v1054_v29 = vcvt.f32.s32 %v7156_v22  ;;  %v1009_v39 = vcvt.f32.s32 %v7164_v37 }
 0x257   : > { %1381 = vmin.xlane.f32.xlu1 %v1380_v18  ;;  %1306 = vmin.xlane.f32.xlu0 %v1305_v54  ;;  %9480 = vst [vmem:[#allocation10_spill] sm:$0xff] %v7310_v59  ;;  %v7315_v18 = vshll.u32 %v979_v17, 16  ;;  %v7317_v54 = vshll.u32 %v1024_v27, 16  ;;  %v1039_v22 = vcvt.f32.s32 %v7174_v31  ;;  %v1114_v37 = vcvt.f32.s32 %v7176_v61 }
 0x258   : > { %v7275_v30 = vpop.xlane.xlu1 %1407  ;;  %v7277_v20 = vpop.xlane.xlu0 %1332  ;;  %v7319_v21 = vshll.u32 %v1054_v29, 16  ;;  %v7321_v8 = vshll.u32 %v1009_v39, 16  ;;  %v4798_v47 = vadd.s32 24, %v7310_v59  ;;  %v4796_v53 = vadd.s32 8, %v7310_v59 }
 0x259   : > { %vm1409_vm4 = vcmp.eq.f32.partialorder %v7107_v36, %v7275_v30  ;;  %vm1334_vm5 = vcmp.eq.f32.partialorder %v7109_v50, %v7277_v20  ;;  %v7341_v31 = vsub.s32 2, %v7310_v59  ;;  %v1069_v61 = vcvt.f32.s32 %v7184_v10 }
 0x25a   : > { %v1410_v19 = vsel %vm1409_vm4, %v1405_v12, inf  ;;  %v1335_v43 = vsel %vm1334_vm5, %v1330_v35, inf  ;;  %v7328_v12 = vstv %s5797_s10  ;;  %v4797_v35 = vadd.s32 16, %v7310_v59 }
 0x25b   : > { %1411 = vmin.xlane.f32.xlu1 %v1410_v19  ;;  %1336 = vmin.xlane.f32.xlu0 %v1335_v43  ;;  %9481 = vst [vmem:[#allocation11_spill] sm:$0xff] %v7328_v12  ;;  %v4828_v33 = vadd.s32 %v7328_v12, %v7310_v59  ;;  %v7335_v19 = vsub.s32 0, %v7310_v59  ;;  %v7338_v43 = vsub.s32 1, %v7310_v59  ;;  %v7350_v51 = vshll.u32 %v1039_v22, 16 }
 0x25c   : > { %v7285_v60 = vpop.xlane.xlu1 %1437  ;;  %v7287_v0 = vpop.xlane.xlu0 %1362  ;;  %v7358_v10 = vsub.s32 5, %v7310_v59  ;;  %v1099_v11 = vcvt.f32.s32 %v7194_v42  ;;  %v7371_v17 = vsub.s32 7, %v7310_v59  ;;  %v1129_v27 = vcvt.f32.s32 %v7205_v48 }
 0x25d   : > { %vm1439_vm6 = vcmp.eq.f32.partialorder %v7123_v44, %v7285_v60  ;;  %vm1364_vm7 = vcmp.eq.f32.partialorder %v9475_v7, %v7287_v0  ;;  %v1420_v44 = vcvt.s32.f32 %v1418_v63  ;;  %v7352_v7 = vshll.u32 %v1114_v37, 16 }
 0x25e   : > { %v1440_v36 = vsel %vm1439_vm6, %v1435_v40, inf  ;;  %v1365_v50 = vsel %vm1364_vm7, %v1360_v23, inf  ;;  %v7345_v40 = vsub.s32 3, %v7310_v59  ;;  %v7348_v23 = vsub.s32 4, %v7310_v59 }
 0x25f   : > { %1441 = vmin.xlane.f32.xlu1 %v1440_v36  ;;  %1366 = vmin.xlane.f32.xlu0 %v1365_v50  ;;  %v4831_v36 = vadd.s32 %v7328_v12, %v4798_v47  ;;  %v6459_v50 = vmov 1966171168   ;;  %v4830_v63 = vadd.s32 %v7328_v12, %v4797_v35  ;;  %vm4860_vm10 = vcmp.lt.s32.totalorder %v4828_v33, 16 }
 0x260   : > { %v7294_v28 = vpop.xlane.xlu0 %1392  ;;  %v1204_v29 = vcvt.f32.s32 %v7207_v41  ;;  %v9402_v22 = vmov 0.0   ;;  %v1159_v42 = vcvt.f32.s32 %v7214_v9  ;;  %v4802_v48 = vadd.s32 56, %v7310_v59 }
 0x261   : > { %vm1394_vm8 = vcmp.eq.f32.partialorder %v9477_v55, %v7294_v28  ;;  %v4829_v55 = vadd.s32 %v7328_v12, %v4796_v53  ;;  %vm4863_vm11 = vcmp.lt.s32.totalorder %v4831_v36, 16  ;;  %v7378_v37 = vsel %vm4860_vm10, 1.0, %v9402_v22 }
 0x262   : > { %v1395_v14 = vsel %vm1394_vm8, %v1390_v62, inf  ;;  %v2476_v62 = vunpack.c.l.s4 %v6459_v50  ;;  %9482 = vst [vmem:[#allocation12_spill] sm:$0xff] %v7378_v37  ;;  %vm4862_vm12 = vcmp.lt.s32.totalorder %v4830_v63, 16  ;;  %v7384_v35 = vshll.u32 %v1099_v11, 16 }
 0x263   : > { %1396 = vmin.xlane.f32.xlu0 %v1395_v14  ;;  %v7362_v14 = vsub.s32 6, %v7310_v59  ;;  %vm4861_vm13 = vcmp.lt.s32.totalorder %v4829_v55, 16  ;;  %v7386_v41 = vshll.u32 %v1174_v58, 16  ;;  %v7389_v53 = vsel %vm4863_vm11, 1.0, %v9402_v22 }
 0x264   : > { %v7299_v3 = vpop.xlane.xlu0 %1422  ;;  %v2477_v39 = vunpack.c.0.s8 %v2476_v62  ;;  %9483 = vst [vmem:[#allocation13_spill] sm:$0xff] %v7389_v53  ;;  %v4801_v33 = vadd.s32 48, %v7310_v59  ;;  %v7394_v36 = vshll.u32 %v1204_v29, 16  ;;  %v4804_v50 = vadd.s32 72, %v7310_v59 }
 0x265   : > { %vm1424_vm9 = vcmp.eq.f32.partialorder %v9478_v32, %v7299_v3  ;;  %v4800_v32 = vadd.s32 40, %v7310_v59  ;;  %v1234_v62 = vcvt.f32.s32 %v7216_v13  ;;  %v7410_v11 = vshll.u32 %v1159_v42, 16 }
 0x266   : > { %v1425_v6 = vsel %vm1424_vm9, %v1420_v44, inf  ;;  %v4799_v44 = vadd.s32 32, %v7310_v59  ;;  %v7397_v9 = vsub.s32 %v2477_v39, %v7310_v59  ;;  %v4835_v58 = vadd.s32 %v7328_v12, %v4802_v48 }
 0x267   : > { %1426 = vmin.xlane.f32.xlu0 %v1425_v6  ;;  %v7366_v6 = vshll.u32 %v1069_v61, 16  ;;  %v4833_v47 = vadd.s32 %v7328_v12, %v4800_v32  ;;  %v7392_v61 = vshll.u32 %v1129_v27, 16  ;;  %v7408_v32 = vsel %vm4861_vm13, 1.0, %v9402_v22 }
 0x268   : > { %v4832_v24 = vadd.s32 %v7328_v12, %v4799_v44  ;;  %v7404_v44 = vsel %vm4862_vm12, 1.0, %v9402_v22  ;;  %9485 = vst [vmem:[#allocation15_spill] sm:$0xff] %v7408_v32  ;;  %v1219_v27 = vcvt.f32.s32 %v7227_v15  ;;  %v1294_v13 = vcvt.f32.s32 %v7235_v26 }
 0x269   : > { %9484 = vst [vmem:[#allocation14_spill] sm:$0xff] %v7404_v44  ;;  %vm4865_vm15 = vcmp.lt.s32.totalorder %v4833_v47, 16  ;;  %v4834_v63 = vadd.s32 %v7328_v12, %v4801_v33  ;;  %v1324_v29 = vcvt.f32.s32 %v7245_v46  ;;  %v1249_v55 = vcvt.f32.s32 %v7247_v57 }
 0x26a   : > { %vm4864_vm14 = vcmp.lt.s32.totalorder %v4832_v24, 16  ;;  %v4803_v39 = vadd.s32 64, %v7310_v59  ;;  %v4837_v42 = vadd.s32 %v7328_v12, %v4804_v50  ;;  %v7421_v24 = vshll.u32 %v1234_v62, 16 }
 0x26b   : > { %v7423_v47 = vshll.u32 %v1189_v52, 16  ;;  %v7426_v15 = vsel %vm4864_vm14, 1.0, %v9402_v22  ;;  %v7429_v26 = vsel %vm4865_vm15, 1.0, %v9402_v22  ;;  %v1279_v46 = vcvt.f32.s32 %v7257_v1 }
 0x26c   : > { %9486 = vst [vmem:[#allocation16_spill] sm:$0xff] %v7426_v15  ;;  %9487 = vst [vmem:[#allocation17_spill] sm:$0xff] %v7429_v26  ;;  %vm4867_vm2 = vcmp.lt.s32.totalorder %v4835_v58, 16  ;;  %v4806_v57 = vadd.s32 88, %v7310_v59  ;;  %v7434_v48 = vshll.u32 %v1219_v27, 16  ;;  %v7436_v33 = vshll.u32 %v1294_v13, 16 }
 0x26d   : > { %v7438_v50 = vshll.u32 %v1264_v34, 16  ;;  %vm4866_vm3 = vcmp.lt.s32.totalorder %v4834_v63, 16  ;;  %v7440_v62 = vshll.u32 %v1324_v29, 16  ;;  %v7442_v52 = vshll.u32 %v1249_v55, 16 }
 0x26e   : > { %9488 = vst [vmem:[#allocation18_spill] sm:$0xff] %v7434_v48  ;;  %9489 = vst [vmem:[#allocation19_spill] sm:$0xff] %v7436_v33  ;;  %v4836_v45 = vadd.s32 %v7328_v12, %v4803_v39  ;;  %vm4869_vm4 = vcmp.lt.s32.totalorder %v4837_v42, 16  ;;  %v1384_v16 = vcvt.f32.s32 %v7265_v49  ;;  %v7447_v1 = vsel %vm4867_vm2, 1.0, %v9402_v22 }
 0x26f   : > { %9490 = vst [vmem:[#allocation20_spill] sm:$0xff] %v7438_v50  ;;  %9491 = vst [vmem:[#allocation21_spill] sm:$0xff] %v7440_v62  ;;  %v4805_v58 = vadd.s32 80, %v7310_v59  ;;  %v4808_v27 = vadd.s32 104, %v7310_v59  ;;  %v7451_v13 = vshll.u32 %v1354_v38, 16  ;;  %v7453_v34 = vshll.u32 %v1279_v46, 16 }
 0x270   : > { %9492 = vst [vmem:[#allocation22_spill] sm:$0xff] %v7442_v52  ;;  %9493 = vst [vmem:[#allocation23_spill] sm:$0xff] %v7447_v1  ;;  %v7456_v63 = vsel %vm4866_vm3, 1.0, %v9402_v22  ;;  %v4839_v29 = vadd.s32 %v7328_v12, %v4806_v57  ;;  %v1309_v55 = vcvt.f32.s32 %v7267_v4  ;;  %v1414_v49 = vcvt.f32.s32 %v7275_v30 }
 0x271   : > { %9494 = vst [vmem:[#allocation24_spill] sm:$0xff] %v7451_v13  ;;  %9495 = vst [vmem:[#allocation25_spill] sm:$0xff] %v7453_v34  ;;  %v1339_v39 = vcvt.f32.s32 %v7277_v20  ;;  %v7463_v42 = vsel %vm4869_vm4, 1.0, %v9402_v22  ;;  %v1444_v56 = vcvt.f32.s32 %v7285_v60  ;;  %v1369_v38 = vcvt.f32.s32 %v7287_v0 }
 0x272   : > { %9496 = vst [vmem:[#allocation26_spill] sm:$0xff] %v7456_v63  ;;  %9497 = vst [vmem:[#allocation27_spill] sm:$0xff] %v7463_v42  ;;  %v1399_v46 = vcvt.f32.s32 %v7294_v28  ;;  %vm4868_vm5 = vcmp.lt.s32.totalorder %v4836_v45, 16  ;;  %v7468_v34 = vshll.u32 %v1384_v16, 16  ;;  %v4838_v57 = vadd.s32 %v7328_v12, %v4805_v58 }
 0x273   : > { %v4807_v4 = vadd.s32 96, %v7310_v59  ;;  %v4841_v30 = vadd.s32 %v7328_v12, %v4808_v27  ;;  %vm4871_vm6 = vcmp.lt.s32.totalorder %v4839_v29, 16  ;;  %v4809_v20 = vadd.s32 112, %v7310_v59 }
 0x274   : > { %9498 = vst [vmem:[#allocation28_spill] sm:$0xff] %v7468_v34  ;;  %v4810_v22 = vadd.s32 120, %v7310_v59  ;;  %v4812_v60 = vadd.s32 136, %v7310_v59  ;;  %v7476_v13 = vshll.u32 %v1309_v55, 16  ;;  %v7478_v0 = vshll.u32 %v1414_v49, 16 }
 0x275   : > { %v7480_v45 = vshll.u32 %v1339_v39, 16  ;;  %v9502_v28 = vmov 0.0   ;;  %v7485_v58 = vshll.u32 %v1444_v56, 16  ;;  %v7487_v34 = vshll.u32 %v1369_v38, 16 }
 0x276   : > { %9499 = vst [vmem:[#allocation29_spill] sm:$0xff] %v7476_v13  ;;  %9500 = vst [vmem:[#allocation30_spill] sm:$0xff] %v7478_v0  ;;  %v7483_v16 = vsel %vm4868_vm5, 1.0, %v9502_v28  ;;  %v7489_v27 = vshll.u32 %v1399_v46, 16  ;;  %v1429_v29 = vcvt.f32.s32 %v7299_v3  ;;  %vm4870_vm7 = vcmp.lt.s32.totalorder %v4838_v57, 16 }
 0x277   : > { %9501 = vst [vmem:[#allocation31_spill] sm:$0xff] %v7480_v45  ;;  %9503 = vst [vmem:[#allocation32_spill] sm:$0xff] %v7483_v16  ;;  %v7493_v52 = vsel %vm4871_vm6, 1.0, %v9502_v28  ;;  %v4840_v55 = vadd.s32 %v7328_v12, %v4807_v4  ;;  %vm4873_vm8 = vcmp.lt.s32.totalorder %v4841_v30, 16  ;;  %v4842_v49 = vadd.s32 %v7328_v12, %v4809_v20 }
 0x278   : > { %9504 = vst [vmem:[#allocation33_spill] sm:$0xff] %v7485_v58  ;;  %9505 = vst [vmem:[#allocation34_spill] sm:$0xff] %v7487_v34  ;;  %v4843_v39 = vadd.s32 %v7328_v12, %v4810_v22  ;;  %v4811_v56 = vadd.s32 128, %v7310_v59  ;;  %v4845_v38 = vadd.s32 %v7328_v12, %v4812_v60  ;;  %v4813_v46 = vadd.s32 144, %v7310_v59 }
 0x279   : > { %9506 = vst [vmem:[#allocation35_spill] sm:$0xff] %v7489_v27  ;;  %9507 = vst [vmem:[#allocation36_spill] sm:$0xff] %v7493_v52  ;;  %v4814_v27 = vadd.s32 152, %v7310_v59  ;;  %v4815_v3 = vadd.s32 160, %v7310_v59  ;;  %v4816_v34 = vadd.s32 168, %v7310_v59  ;;  %v7504_v58 = vshll.u32 %v1429_v29, 16 }
 0x27a   : > { %v4817_v4 = vadd.s32 176, %v7310_v59  ;;  %v4818_v20 = vadd.s32 184, %v7310_v59  ;;  %v4819_v22 = vadd.s32 192, %v7310_v59  ;;  %v7511_v45 = vsel %vm4870_vm7, 1.0, %v9502_v28  ;;  %4962 = vst.msk [vmem:[%s9099_s12] sm:$0xff] %vm388_vm0, %v9502_v28  ;;  %4963 = vst.msk [vmem:[%s9099_s12 + $0x8] sm:$0xff] %vm388_vm0, %v9502_v28 }
 0x27b   : > { %9508 = vst [vmem:[#allocation37_spill] sm:$0xff] %v7504_v58  ;;  %9509 = vst [vmem:[#allocation38_spill] sm:$0xff] %v7511_v45  ;;  %vm4872_vm9 = vcmp.lt.s32.totalorder %v4840_v55, 16  ;;  %v4820_v60 = vadd.s32 200, %v7310_v59  ;;  %v4822_v0 = vadd.s32 216, %v7310_v59  ;;  %vm4874_vm10 = vcmp.lt.s32.totalorder %v4842_v49, 16 }
 0x27c   : > { %vm4875_vm11 = vcmp.lt.s32.totalorder %v4843_v39, 16  ;;  %v4844_v29 = vadd.s32 %v7328_v12, %v4811_v56  ;;  %vm4877_vm12 = vcmp.lt.s32.totalorder %v4845_v38, 16  ;;  %v4846_v58 = vadd.s32 %v7328_v12, %v4813_v46  ;;  %4964 = vst.msk [vmem:[%s9099_s12 + $0x10] sm:$0xff] %vm388_vm0, %v9502_v28  ;;  %4965 = vst.msk [vmem:[%s9099_s12 + $0x18] sm:$0xff] %vm388_vm0, %v9502_v28 }
 0x27d   : > { %v4847_v13 = vadd.s32 %v7328_v12, %v4814_v27  ;;  %v4848_v62 = vadd.s32 %v7328_v12, %v4815_v3  ;;  %v4849_v57 = vadd.s32 %v7328_v12, %v4816_v34  ;;  %v4850_v50 = vadd.s32 %v7328_v12, %v4817_v4  ;;  %4966 = vst.msk [vmem:[%s9099_s12 + $0x20] sm:$0xff] %vm388_vm0, %v9502_v28 }
 0x27e   : > { %v4851_v55 = vadd.s32 %v7328_v12, %v4818_v20  ;;  %v4852_v33 = vadd.s32 %v7328_v12, %v4819_v22  ;;  %v4821_v52 = vadd.s32 208, %v7310_v59  ;;  %v7525_v48 = vsel %vm4872_vm9, 1.0, %v9502_v28  ;;  %4967 = vst.msk [vmem:[%s9099_s12 + $0x28] sm:$0xff] %vm388_vm0, %v9502_v28  ;;  %4968 = vst.msk [vmem:[%s9099_s12 + $0x30] sm:$0xff] %vm388_vm0, %v9502_v28 }
 0x27f   : > { %9510 = vst [vmem:[#allocation39_spill] sm:$0xff] %v7525_v48  ;;  %v7529_v56 = vsel %vm4873_vm8, 1.0, %v9502_v28  ;;  %v4853_v27 = vadd.s32 %v7328_v12, %v4820_v60  ;;  %v4855_v46 = vadd.s32 %v7328_v12, %v4822_v0  ;;  %v7535_v34 = vsel %vm4874_vm10, 1.0, %v9502_v28  ;;  %4969 = vst.msk [vmem:[%s9099_s12 + $0x38] sm:$0xff] %vm388_vm0, %v9502_v28 }
 0x280   : > { %9511 = vst [vmem:[#allocation40_spill] sm:$0xff] %v7529_v56  ;;  %9512 = vst [vmem:[#allocation41_spill] sm:$0xff] %v7535_v34  ;;  %v7539_v3 = vsel %vm4875_vm11, 1.0, %v9502_v28  ;;  %vm4876_vm13 = vcmp.lt.s32.totalorder %v4844_v29, 16  ;;  %v4854_v4 = vadd.s32 %v7328_v12, %v4821_v52  ;;  %v7544_v30 = vsel %vm4877_vm12, 1.0, %v9502_v28 }
 0x281   : > { %9513 = vst [vmem:[#allocation42_spill] sm:$0xff] %v7539_v3  ;;  %9514 = vst [vmem:[#allocation43_spill] sm:$0xff] %v7544_v30  ;;  %vm4878_vm14 = vcmp.lt.s32.totalorder %v4846_v58, 16  ;;  %vm4879_vm15 = vcmp.lt.s32.totalorder %v4847_v13, 16  ;;  %vm4880_vm2 = vcmp.lt.s32.totalorder %v4848_v62, 16  ;;  %vm4881_vm3 = vcmp.lt.s32.totalorder %v4849_v57, 16 }
 0x282   : > { %vm4882_vm4 = vcmp.lt.s32.totalorder %v4850_v50, 16  ;;  %vm4883_vm5 = vcmp.lt.s32.totalorder %v4851_v55, 16  ;;  %vm4884_vm6 = vcmp.lt.s32.totalorder %v4852_v33, 16  ;;  %vm4885_vm7 = vcmp.lt.s32.totalorder %v4853_v27, 16  ;;  %v9526_v55 = vld [vmem:[#allocation9_spill] sm:$0xff] }
 0x283   : > { %vm4886_vm8 = vcmp.lt.s32.totalorder %v4854_v4, 16  ;;  %vm4887_vm9 = vcmp.lt.s32.totalorder %v4855_v46, 16  ;;  %v7547_v49 = vsel %vm4876_vm13, 1.0, %v9502_v28  ;;  %v7550_v52 = vsel %vm4878_vm14, 1.0, %v9502_v28 }
 0x284   : > { %9515 = vst [vmem:[#allocation44_spill] sm:$0xff] %v7547_v49  ;;  %9516 = vst [vmem:[#allocation45_spill] sm:$0xff] %v7550_v52  ;;  %v7553_v39 = vsel %vm4879_vm15, 1.0, %v9502_v28  ;;  %v7556_v62 = vsel %vm4880_vm2, 1.0, %v9502_v28  ;;  %v7562_v33 = vsel %vm4881_vm3, 1.0, %v9502_v28  ;;  %v7565_v13 = vsel %vm4882_vm4, 1.0, %v9502_v28 }
 0x285   : > { %9517 = vst [vmem:[#allocation46_spill] sm:$0xff] %v7553_v39  ;;  %9518 = vst [vmem:[#allocation47_spill] sm:$0xff] %v7556_v62  ;;  %v7568_v58 = vsel %vm4883_vm5, 1.0, %v9502_v28  ;;  %v7571_v22 = vsel %vm4884_vm6, 1.0, %v9502_v28  ;;  %v7574_v60 = vsel %vm4885_vm7, 1.0, %v9502_v28  ;;  %v7577_v29 = vsel %vm4886_vm8, 1.0, %v9502_v28 }
 0x286   : > { %9519 = vst [vmem:[#allocation48_spill] sm:$0xff] %v7562_v33  ;;  %9520 = vst [vmem:[#allocation49_spill] sm:$0xff] %v7565_v13 }
 0x287   : > { %9521 = vst [vmem:[#allocation50_spill] sm:$0xff] %v7568_v58  ;;  %9522 = vst [vmem:[#allocation51_spill] sm:$0xff] %v7571_v22 }
 0x288   : > { %9523 = vst [vmem:[#allocation52_spill] sm:$0xff] %v7574_v60  ;;  %9524 = vst [vmem:[#allocation53_spill] sm:$0xff] %v7577_v29 }
 0x2ac   : > { %v992_v20 = vpop.xlane.xlu1 %991 }
 0x2ad   : > { %v993_v0 = vcvt.f32.s32 %v992_v20 }
 0x2af   : > { %v7559_v50 = vadd.s32 %v7312_v25, %v993_v0  ;;  %v7580_v25 = vsel %vm4887_vm9, 1.0, %v9502_v28 }
 0x2b0   : > { %v977_v38 = vpop.xlane.xlu1 %976  ;;  %9525 = vst [vmem:[#allocation54_spill] sm:$0xff] %v7580_v25 }
 0x2b1   : > { %v978_v57 = vcvt.f32.s32 %v977_v38  ;;  %vm4344_vm10 = vcmp.eq.s32.totalorder %v9526_v55, %v7559_v50  ;;  %v1482_v27 = vrot.slane %v7559_v50, %v7335_v19  ;;  %v1486_v46 = vrot.slane %v7559_v50, %v7338_v43 }
 0x2b2   : > { %v5734_v4 = vsel %vm4344_vm10, 1.0, %v9502_v28  ;;  %v1490_v20 = vrot.slane %v7559_v50, %v7341_v31  ;;  %v1494_v0 = vrot.slane %v7559_v50, %v7345_v40 }
 0x2b3   : > { %v981_v12 = vadd.s32 %v7315_v18, %v978_v57  ;;  %v7597_v25 = vmul.f32 %v7408_v32, %v5734_v4  ;;  %v7605_v33 = vcombine.low %v1482_v27, %v1486_v46  ;;  %v7610_v18 = vadd.s32 224, %v7310_v59 }
 0x2b4   : > { %v1022_v22 = vpop.xlane.xlu1 %1021  ;;  %v1052_v58 = vpop.xlane.xlu0 %1051  ;;  %v7607_v62 = vcombine.low %v1490_v20, %v1494_v0 }
 0x2b5   : > { %9527 = vst [vmem:[#allocation9_spill] sm:$0xff] %v7610_v18  ;;  %v1023_v57 = vcvt.f32.s32 %v1022_v22  ;;  %v1053_v38 = vcvt.f32.s32 %v1052_v58  ;;  %vm4343_vm11 = vcmp.eq.s32.totalorder %v9526_v55, %v981_v12  ;;  %v1450_v29 = vrot.slane %v981_v12, %v7335_v19 }
 0x2b6   : > { %v5733_v60 = vsel %vm4343_vm11, 1.0, %v9502_v28  ;;  %v1454_v32 = vrot.slane %v981_v12, %v7338_v43  ;;  %v1458_v39 = vrot.slane %v981_v12, %v7341_v31  ;;  %v1462_v27 = vrot.slane %v981_v12, %v7345_v40 }
 0x2b7   : > { %v7619_v46 = vadd.s32 %v7317_v54, %v1023_v57  ;;  %v7622_v20 = vadd.s32 %v7319_v21, %v1053_v38  ;;  %6055 = vmatprep.mubr.msk.f32.mxu0 %vm806_vm1, %v5733_v60  ;;  %v7626_v58 = vmul.f32 %v7378_v37, %v5733_v60  ;;  %v1466_v22 = vrot.slane %v981_v12, %v7348_v23 }
 0x2b8   : > { %6056 = vmatmul.mubr.msk.f32.vlgmr.msra.gmra.mxu0 %vm806_vm1, %v5734_v4  ;;  %v1007_v0 = vpop.xlane.xlu1 %1006  ;;  %v1082_v13 = vpop.xlane.xlu0 %1081  ;;  %v1470_v59 = vrot.slane %v981_v12, %v7358_v10  ;;  %v1474_v18 = vrot.slane %v981_v12, %v7362_v14  ;;  %v1478_v54 = vrot.slane %v981_v12, %v7371_v17  ;;  %v2471_v57 = vcombine.low %v1450_v29, %v1454_v32 }
 0x2b9   : > { %9528 = vst [vmem:[#allocation55_spill] sm:$0xff] %v7626_v58  ;;  %v5005_v21 = vsel %vm806_vm1, %v7626_v58, 0.0  ;;  %v1008_v38 = vcvt.f32.s32 %v1007_v0  ;;  %v1083_v52 = vcvt.f32.s32 %v1082_v13  ;;  %vm4346_vm12 = vcmp.eq.s32.totalorder %v9526_v55, %v7619_v46 }
 0x2ba   : > { %v5736_v60 = vsel %vm4346_vm12, 1.0, %v9502_v28  ;;  %v2472_v4 = vcombine.low %v1458_v39, %v1462_v27  ;;  %v2473_v37 = vcombine.low %v1466_v22, %v1470_v59  ;;  %v2474_v30 = vcombine.low %v1474_v18, %v1478_v54 }
 0x2bb   : > { %v7639_v49 = vadd.s32 %v7321_v8, %v1008_v38  ;;  %v7642_v3 = vadd.s32 %v7323_v5, %v1083_v52  ;;  %v7645_v12 = vmul.f32 %v7389_v53, %v5736_v60  ;;  %v2481_v32 = vrot.slane %v2471_v57, %v7397_v9 }
 0x2bc   : > { %v1037_v13 = vpop.xlane.xlu1 %1036  ;;  %v1112_v29 = vpop.xlane.xlu0 %1111  ;;  %v2488_v0 = vrot.slane %v2472_v4, %v7397_v9  ;;  %v2495_v58 = vrot.slane %v2473_v37, %v7397_v9  ;;  %v2502_v59 = vrot.slane %v2474_v30, %v7397_v9  ;;  %v5006_v8 = vsel %vm806_vm1, %v7597_v25, 0.0 }
 0x2bd   : > { %v1038_v39 = vcvt.f32.s32 %v1037_v13  ;;  %v1113_v18 = vcvt.f32.s32 %v1112_v29  ;;  %vm4345_vm13 = vcmp.eq.s32.totalorder %v9526_v55, %v7639_v49  ;;  %v5010_v5 = vsel %vm806_vm1, %v7645_v12, 0.0 }
 0x2be   : > { %v5735_v52 = vsel %vm4345_vm13, 1.0, %v9502_v28  ;;  %v2503_v27 = vcombine.low %v2481_v32, %v2488_v0  ;;  %v2504_v22 = vcombine.low %v2495_v58, %v2502_v59  ;;  %v5007_v54 = vadd.f32 %v5006_v8, %v5005_v21 }
 0x2bf   : > { %v7659_v37 = vadd.s32 %v7350_v51, %v1038_v39  ;;  %v7662_v30 = vadd.s32 %v7352_v7, %v1113_v18  ;;  %6058 = vmatprep.mubr.msk.f32.mxu0 %vm806_vm1, %v5735_v52  ;;  %v7666_v57 = vmul.f32 %v7404_v44, %v5735_v52  ;;  %vm4348_vm14 = vcmp.eq.s32.totalorder %v9526_v55, %v7622_v20  ;;  %v6282_v44 = vld [vmem:[%s6592_s17 + $0xa0] sm:$0xff] }
 0x2c0   : > { %6059 = vmatmul.mubr.msk.f32.gmra.mxu0 %vm806_vm1, %v5736_v60  ;;  %v1067_v38 = vpop.xlane.xlu1 %1066  ;;  %v1142_v4 = vpop.xlane.xlu0 %1141  ;;  %v2511_v58 = vrot.slane %v2503_v27, %v7397_v9  ;;  %v2518_v51 = vrot.slane %v2504_v22, %v7397_v9  ;;  %v5738_v21 = vsel %vm4348_vm14, 1.0, %v9502_v28  ;;  %v9529_v7 = vrot.slane %v7559_v50, %v7358_v10 }
 0x2c1   : > { %v9530_v32 = vrot.slane %v7559_v50, %v7348_v23  ;;  %v5008_v29 = vsel %vm806_vm1, %v7666_v57, 0.0  ;;  %v1068_v0 = vcvt.f32.s32 %v1067_v38  ;;  %v1143_v60 = vcvt.f32.s32 %v1142_v4 }
 0x2c2   : > { %vm4347_vm15 = vcmp.eq.s32.totalorder %v9526_v55, %v7659_v37  ;;  %v2519_v59 = vcombine.low %v2511_v58, %v2518_v51  ;;  %v5009_v39 = vadd.f32 %v5008_v29, %v5007_v54  ;;  %v7686_v18 = vmul.f32 %v7429_v26, %v5738_v21 }
 0x2c3   : > { %v2522_v13 = vcombine.low %v9530_v32, %v9529_v7  ;;  %v5737_v8 = vsel %vm4347_vm15, 1.0, %v9502_v28  ;;  %v7689_v52 = vadd.s32 %v7366_v6, %v1068_v0  ;;  %v7692_v27 = vadd.s32 %v7375_v2, %v1143_v60  ;;  %v6261_v60 = vld [vmem:[%s6592_s17 + $0x78] sm:$0xff] }
 0x2c4   : > { %6061 = vmatprep.mubr.msk.f32.mxu1 %vm806_vm1, %v5737_v8  ;;  %v7696_v22 = vmul.f32 %v7426_v15, %v5737_v8  ;;  %v9532_v38 = vrot.slane %v7559_v50, %v7371_v17  ;;  %v9533_v54 = vrot.slane %v7559_v50, %v7362_v14  ;;  %4040 = vperm.xlu1 %6259, %v2519_v59   ;;  %v1097_v6 = vpop.xlane.xlu1 %1096  ;;  %v5014_v2 = vsel %vm806_vm1, %v7686_v18, 0.0  ;;  %v1172_v51 = vpop.xlane.xlu0 %1171 }
 0x2c5   : > { %9531 = vst [vmem:[#allocation56_spill] sm:$0xff] %v7692_v27  ;;  %v5011_v58 = vadd.f32 %v5010_v5, %v5009_v39  ;;  %6062 = vmatmul.mubr.msk.f32.vlgmr.msra.gmra.mxu1 %vm806_vm1, %v5738_v21  ;;  %v2530_v7 = vrot.slane %v7605_v33, %v7397_v9  ;;  %v2537_v32 = vrot.slane %v7607_v62, %v7397_v9  ;;  %v1098_v29 = vcvt.f32.s32 %v1097_v6  ;;  %v6262_v33 = vld [vmem:[%s6592_s17 + $0xf0] sm:$0xff] }
 0x2c6   : > { %v2523_v4 = vcombine.low %v9533_v54, %v9532_v38  ;;  %v5012_v50 = vsel %vm806_vm1, %v7696_v22, 0.0  ;;  %v1173_v5 = vcvt.f32.s32 %v1172_v51  ;;  %v2544_v0 = vrot.slane %v2522_v13, %v7397_v9  ;;  %5920 = vmatpush3.msra.mxu1 %v6261_v60  ;;  %v6263_v38 = vld [vmem:[%s6592_s17 + $0x70] sm:$0xff] }
 0x2c7   : > { %v5013_v21 = vadd.f32 %v5012_v50, %v5011_v58  ;;  %v2552_v8 = vcombine.low %v2530_v7, %v2537_v32  ;;  %vm4349_vm2 = vcmp.eq.s32.totalorder %v9526_v55, %v7689_v52  ;;  %5921 = vmatprep.subr.mxu1 %v6262_v33  ;;  %v7720_v62 = vadd.s32 %v7384_v35, %v1098_v29  ;;  %v6264_v29 = vld [vmem:[%s6592_s17 + $0xe8] sm:$0xff] }
 0x2c8   : > { %v2551_v59 = vrot.slane %v2523_v4, %v7397_v9  ;;  %v7723_v39 = vadd.s32 %v7386_v41, %v1173_v5  ;;  %v5739_v13 = vsel %vm4349_vm2, 1.0, %v9502_v28  ;;  %vm4350_vm3 = vcmp.eq.s32.totalorder %v9526_v55, %v7642_v3  ;;  %5922 = vmatpush3.msra.mxu1 %v6263_v38  ;;  %v1127_v6 = vpop.xlane.xlu1 %1126  ;;  %v1202_v41 = vpop.xlane.xlu0 %1201 }
 0x2c9   : > { %v5015_v54 = vadd.f32 %v5014_v2, %v5013_v21  ;;  %v2560_v58 = vrot.slane %v2552_v8, %v7397_v9  ;;  %6064 = vmatprep.mubr.msk.f32.mxu1 %vm806_vm1, %v5739_v13  ;;  %v7732_v35 = vmul.f32 %v7456_v63, %v5739_v13  ;;  %v1128_v51 = vcvt.f32.s32 %v1127_v6  ;;  %5923 = vmatprep.subr.mxu1 %v6264_v29  ;;  %v6265_v13 = vld [vmem:[%s6592_s17 + $0x68] sm:$0xff] }
 0x2ca   : > { %9534 = vst [vmem:[#allocation57_spill] sm:$0xff] %v7723_v39  ;;  %v2553_v4 = vcombine.low %v2544_v0, %v2551_v59  ;;  %v5740_v7 = vsel %vm4350_vm3, 1.0, %v9502_v28  ;;  %v1203_v32 = vcvt.f32.s32 %v1202_v41  ;;  %v1514_v50 = vrot.slane %v7639_v49, %v7335_v19  ;;  %5924 = vmatpush3.msra.mxu1 %v6265_v13  ;;  %v6266_v41 = vld [vmem:[%s6592_s17 + $0xe0] sm:$0xff]  ;;  %v6268_v13 = vld [vmem:[%s6592_s17 + $0xd8] sm:$0xff] }
 0x2cb   : > { %v5016_v5 = vsel %vm806_vm1, %v7732_v35, 0.0  ;;  %6065 = vmatmul.mubr.msk.f32.gmra.mxu1 %vm806_vm1, %v5740_v7  ;;  %v7743_v0 = vmul.f32 %v7447_v1, %v5740_v7  ;;  %v1518_v60 = vrot.slane %v7639_v49, %v7338_v43  ;;  %v7748_v59 = vadd.s32 %v7392_v61, %v1128_v51  ;;  %5925 = vmatprep.subr.mxu1 %v6266_v41 }
 0x2cc   : > { %v2567_v2 = vrot.slane %v2553_v4, %v7397_v9  ;;  %v5017_v21 = vadd.f32 %v5016_v5, %v5015_v54  ;;  %v7751_v8 = vadd.s32 %v7394_v36, %v1203_v32  ;;  %v1522_v33 = vrot.slane %v7639_v49, %v7341_v31  ;;  %v1157_v54 = vpop.xlane.xlu1 %1156  ;;  %v6267_v32 = vld [vmem:[%s6592_s17 + $0x60] sm:$0xff] }
 0x2cd   : > { %v5018_v4 = vsel %vm806_vm1, %v7743_v0, 0.0  ;;  %v1526_v6 = vrot.slane %v7639_v49, %v7345_v40  ;;  %v1530_v61 = vrot.slane %v7639_v49, %v7348_v23  ;;  %v1534_v51 = vrot.slane %v7639_v49, %v7358_v10  ;;  %5926 = vmatpush3.msra.mxu1 %v6267_v32 }
 0x2ce   : > { %9535 = vst [vmem:[#allocation58_spill] sm:$0xff] %v7751_v8  ;;  %v2568_v38 = vcombine.low %v2560_v58, %v2567_v2  ;;  %v5019_v36 = vadd.f32 %v5018_v4, %v5017_v21  ;;  %v1538_v58 = vrot.slane %v7639_v49, %v7362_v14  ;;  %v1542_v7 = vrot.slane %v7639_v49, %v7371_v17  ;;  %v1232_v21 = vpop.xlane.xlu0 %1231  ;;  %v6269_v49 = vld [vmem:[%s6592_s17 + $0x58] sm:$0xff] }
 0x2cf   : > { %v2569_v29 = vcombine.low %v1514_v50, %v1518_v60  ;;  %v2570_v2 = vcombine.low %v1522_v33, %v1526_v6  ;;  %vm4351_vm4 = vcmp.eq.s32.totalorder %v9526_v55, %v7720_v62  ;;  %v1158_v5 = vcvt.f32.s32 %v1157_v54  ;;  %5927 = vmatprep.subr.mxu1 %v6268_v13  ;;  %v6271_v13 = vld [vmem:[%s6592_s17 + $0x50] sm:$0xff] }
 0x2d0   : > { %4043 = vperm.xlu1 %6259, %v2568_v38   ;;  %v2571_v4 = vcombine.low %v1530_v61, %v1534_v51  ;;  %v2572_v41 = vcombine.low %v1538_v58, %v1542_v7  ;;  %v5741_v63 = vsel %vm4351_vm4, 1.0, %v9502_v28  ;;  %vm4352_vm5 = vcmp.eq.s32.totalorder %v9526_v55, %v7662_v30  ;;  %5928 = vmatpush3.msra.mxu1 %v6269_v49  ;;  %v6270_v58 = vld [vmem:[%s6592_s17 + $0xd0] sm:$0xff] }
 0x2d1   : > { %v2579_v50 = vrot.slane %v2569_v29, %v7397_v9  ;;  %v2586_v60 = vrot.slane %v2570_v2, %v7397_v9  ;;  %6067 = vmatprep.mubr.msk.f32.mxu1 %vm806_vm1, %v5741_v63  ;;  %v7781_v33 = vmul.f32 %v7483_v16, %v5741_v63  ;;  %v7784_v38 = vadd.s32 %v7410_v11, %v1158_v5 }
 0x2d2   : > { %v2593_v6 = vrot.slane %v2571_v4, %v7397_v9  ;;  %v2600_v61 = vrot.slane %v2572_v41, %v7397_v9  ;;  %v5742_v54 = vsel %vm4352_vm5, 1.0, %v9502_v28  ;;  %v1233_v51 = vcvt.f32.s32 %v1232_v21  ;;  %5929 = vmatprep.subr.mxu1 %v6270_v58 }
 0x2d3   : > { %9536 = vst [vmem:[#allocation59_spill] sm:$0xff] %v7784_v38  ;;  %v2601_v7 = vcombine.low %v2579_v50, %v2586_v60  ;;  %v5020_v32 = vsel %vm806_vm1, %v7781_v33, 0.0  ;;  %6068 = vmatmul.mubr.msk.f32.gmra.mxu1 %vm806_vm1, %v5742_v54  ;;  %v7794_v11 = vmul.f32 %v7463_v42, %v5742_v54  ;;  %v1546_v63 = vrot.slane %v7619_v46, %v7335_v19  ;;  %v1187_v50 = vpop.xlane.xlu1 %1186  ;;  %v6275_v42 = vld [vmem:[%s6592_s17 + $0x40] sm:$0xff] }
 0x2d4   : > { %v2602_v29 = vcombine.low %v2593_v6, %v2600_v61  ;;  %v5021_v2 = vadd.f32 %v5020_v32, %v5019_v36  ;;  %v7799_v5 = vadd.s32 %v7421_v24, %v1233_v51  ;;  %v1550_v21 = vrot.slane %v7619_v46, %v7338_v43  ;;  %5930 = vmatpush3.msra.mxu1 %v6271_v13  ;;  %v6272_v24 = vld [vmem:[%s6592_s17 + $0xc8] sm:$0xff] }
 0x2d5   : > { %v2609_v4 = vrot.slane %v2601_v7, %v7397_v9  ;;  %v5022_v41 = vsel %vm806_vm1, %v7794_v11, 0.0  ;;  %v1554_v49 = vrot.slane %v7619_v46, %v7341_v31  ;;  %v1558_v36 = vrot.slane %v7619_v46, %v7345_v40  ;;  %5931 = vmatprep.subr.mxu1 %v6272_v24  ;;  %v6273_v51 = vld [vmem:[%s6592_s17 + $0x48] sm:$0xff] }
 0x2d6   : > { %v2616_v60 = vrot.slane %v2602_v29, %v7397_v9  ;;  %v5023_v6 = vadd.f32 %v5022_v41, %v5021_v2  ;;  %v1562_v61 = vrot.slane %v7619_v46, %v7348_v23  ;;  %v1566_v54 = vrot.slane %v7619_v46, %v7358_v10  ;;  %5932 = vmatpush3.msra.mxu1 %v6273_v51  ;;  %v1217_v29 = vpop.xlane.xlu0 %1216  ;;  %v6274_v2 = vld [vmem:[%s6592_s17 + $0xc0] sm:$0xff] }
 0x2d7   : > { %v1570_v58 = vrot.slane %v7619_v46, %v7362_v14  ;;  %v1574_v7 = vrot.slane %v7619_v46, %v7371_v17  ;;  %v2618_v32 = vcombine.low %v1546_v63, %v1550_v21  ;;  %v2619_v13 = vcombine.low %v1554_v49, %v1558_v36  ;;  %5933 = vmatprep.subr.mxu1 %v6274_v2  ;;  %v6276_v21 = vld [vmem:[%s6592_s17 + $0xb8] sm:$0xff] }
 0x2d8   : > { %v2617_v41 = vcombine.low %v2609_v4, %v2616_v60  ;;  %v2620_v24 = vcombine.low %v1562_v61, %v1566_v54  ;;  %vm4353_vm6 = vcmp.eq.s32.totalorder %v9526_v55, %v7748_v59  ;;  %v1188_v16 = vcvt.f32.s32 %v1187_v50  ;;  %5934 = vmatpush3.msra.mxu1 %v6275_v42  ;;  %v6277_v54 = vld [vmem:[%s6592_s17 + $0x38] sm:$0xff] }
 0x2d9   : > { %v2621_v51 = vcombine.low %v1570_v58, %v1574_v7  ;;  %v2628_v1 = vrot.slane %v2618_v32, %v7397_v9  ;;  %v2635_v46 = vrot.slane %v2619_v13, %v7397_v9  ;;  %v5743_v63 = vsel %vm4353_vm6, 1.0, %v9502_v28  ;;  %5935 = vmatprep.subr.mxu1 %v6276_v21  ;;  %v6278_v32 = vld [vmem:[%s6592_s17 + $0xb0] sm:$0xff] }
 0x2da   : > { %4046 = vperm.xlu1 %6259, %v2617_v41   ;;  %v2642_v4 = vrot.slane %v2620_v24, %v7397_v9  ;;  %6070 = vmatprep.mubr.msk.f32.mxu1 %vm806_vm1, %v5743_v63  ;;  %v7833_v49 = vmul.f32 %v7511_v45, %v5743_v63  ;;  %v7836_v42 = vadd.s32 %v7423_v47, %v1188_v16  ;;  %v1218_v36 = vcvt.f32.s32 %v1217_v29  ;;  %v9538_v47 = vld [vmem:[#allocation18_spill] sm:$0xff]  ;;  %v9539_v41 = vld [vmem:[#allocation36_spill] sm:$0xff] }
 0x2db   : > { %v2649_v50 = vrot.slane %v2621_v51, %v7397_v9  ;;  %v2650_v60 = vcombine.low %v2628_v1, %v2635_v46  ;;  %vm4354_vm7 = vcmp.eq.s32.totalorder %v9526_v55, %v7692_v27  ;;  %v1578_v61 = vrot.slane %v7659_v37, %v7335_v19  ;;  %5936 = vmatpush3.msra.mxu1 %v6277_v54 }
 0x2dc   : > { %9537 = vst [vmem:[#allocation60_spill] sm:$0xff] %v7836_v42  ;;  %v5024_v58 = vsel %vm806_vm1, %v7833_v49, 0.0  ;;  %v5744_v7 = vsel %vm4354_vm7, 1.0, %v9502_v28  ;;  %v7848_v16 = vadd.s32 %v9538_v47, %v1218_v36  ;;  %v1582_v1 = vrot.slane %v7659_v37, %v7338_v43  ;;  %5937 = vmatprep.subr.mxu1 %v6278_v32 }
 0x2dd   : > { %v2651_v13 = vcombine.low %v2642_v4, %v2649_v50  ;;  %v2658_v29 = vrot.slane %v2650_v60, %v7397_v9  ;;  %v5025_v2 = vadd.f32 %v5024_v58, %v5023_v6  ;;  %6071 = vmatmul.mubr.msk.f32.gmra.mxu1 %vm806_vm1, %v5744_v7  ;;  %v7856_v24 = vmul.f32 %v9539_v41, %v5744_v7  ;;  %v1292_v4 = vpop.xlane.xlu1 %1291  ;;  %v6279_v6 = vld [vmem:[%s6592_s17 + $0x30] sm:$0xff]  ;;  %v6280_v58 = vld [vmem:[%s6592_s17 + $0xa8] sm:$0xff] }
 0x2de   : > { %v1586_v51 = vrot.slane %v7659_v37, %v7341_v31  ;;  %v1590_v46 = vrot.slane %v7659_v37, %v7345_v40  ;;  %v1594_v63 = vrot.slane %v7659_v37, %v7348_v23  ;;  %v1598_v21 = vrot.slane %v7659_v37, %v7358_v10  ;;  %5938 = vmatpush3.msra.mxu1 %v6279_v6  ;;  %v1262_v6 = vpop.xlane.xlu0 %1261  ;;  %v6281_v41 = vld [vmem:[%s6592_s17 + $0x28] sm:$0xff] }
 0x2df   : > { %v2665_v36 = vrot.slane %v2651_v13, %v7397_v9  ;;  %v5026_v50 = vsel %vm806_vm1, %v7856_v24, 0.0  ;;  %v1602_v60 = vrot.slane %v7659_v37, %v7362_v14  ;;  %v1606_v54 = vrot.slane %v7659_v37, %v7371_v17  ;;  %5939 = vmatprep.subr.mxu1 %v6280_v58  ;;  %v6285_v58 = vld [vmem:[%s6592_s17 + $0x18] sm:$0xff] }
 0x2e0   : > { %v5027_v7 = vadd.f32 %v5026_v50, %v5025_v2  ;;  %v2667_v47 = vcombine.low %v1578_v61, %v1582_v1  ;;  %v2668_v32 = vcombine.low %v1586_v51, %v1590_v46  ;;  %v2669_v45 = vcombine.low %v1594_v63, %v1598_v21  ;;  %5940 = vmatpush3.msra.mxu1 %v6281_v41  ;;  %v6283_v51 = vld [vmem:[%s6592_s17 + $0x20] sm:$0xff] }
 0x2e1   : > { %v2666_v13 = vcombine.low %v2658_v29, %v2665_v36  ;;  %v2670_v15 = vcombine.low %v1602_v60, %v1606_v54  ;;  %vm4355_vm8 = vcmp.eq.s32.totalorder %v9526_v55, %v7784_v38  ;;  %v1293_v26 = vcvt.f32.s32 %v1292_v4  ;;  %5941 = vmatprep.subr.mxu1 %v6282_v44  ;;  %v9540_v44 = vld [vmem:[#allocation19_spill] sm:$0xff]  ;;  %v9541_v60 = vld [vmem:[#allocation20_spill] sm:$0xff] }
 0x2e2   : > { %v2677_v37 = vrot.slane %v2667_v47, %v7397_v9  ;;  %v2684_v2 = vrot.slane %v2668_v32, %v7397_v9  ;;  %v2691_v61 = vrot.slane %v2669_v45, %v7397_v9  ;;  %v5745_v1 = vsel %vm4355_vm8, 1.0, %v9502_v28  ;;  %5942 = vmatpush3.msra.mxu1 %v6283_v51  ;;  %v6286_v51 = vld [vmem:[%s6592_s17 + $0x90] sm:$0xff]  ;;  %v1247_v53 = vpop.xlane.xlu0 %1246 }
 0x2e3   : > { %4049 = vperm.xlu1 %6259, %v2666_v13   ;;  %v2698_v29 = vrot.slane %v2670_v15, %v7397_v9  ;;  %6073 = vmatprep.mubr.msk.f32.mxu1 %vm806_vm1, %v5745_v1  ;;  %v7887_v41 = vmul.f32 %v7525_v48, %v5745_v1  ;;  %v7890_v46 = vadd.s32 %v9540_v44, %v1293_v26  ;;  %v1263_v63 = vcvt.f32.s32 %v1262_v6  ;;  %v6284_v15 = vld [vmem:[%s6592_s17 + $0x98] sm:$0xff]  ;;  %v1322_v1 = vpop.xlane.xlu1 %1321 }
 0x2e4   : > { %v2699_v21 = vcombine.low %v2677_v37, %v2684_v2  ;;  %vm4356_vm9 = vcmp.eq.s32.totalorder %v9526_v55, %v7723_v39  ;;  %v1610_v45 = vrot.slane %v7622_v20, %v7335_v19  ;;  %v1614_v4 = vrot.slane %v7622_v20, %v7338_v43  ;;  %5943 = vmatprep.subr.mxu1 %v6284_v15  ;;  %v6287_v15 = vld [vmem:[%s6592_s17 + $0x10] sm:$0xff] }
 0x2e5   : > { %v2700_v36 = vcombine.low %v2691_v61, %v2698_v29  ;;  %v5028_v50 = vsel %vm806_vm1, %v7887_v41, 0.0  ;;  %v5746_v26 = vsel %vm4356_vm9, 1.0, %v9502_v28  ;;  %v7903_v54 = vadd.s32 %v9541_v60, %v1263_v63  ;;  %5944 = vmatpush3.msra.mxu1 %v6285_v58  ;;  %v6288_v58 = vld [vmem:[%s6592_s17 + $0x88] sm:$0xff] }
 0x2e6   : > { %v2707_v47 = vrot.slane %v2699_v21, %v7397_v9  ;;  %v5029_v32 = vadd.f32 %v5028_v50, %v5027_v7  ;;  %6074 = vmatmul.mubr.msk.f32.gmra.mxu1 %vm806_vm1, %v5746_v26  ;;  %v7909_v6 = vmul.f32 %v7529_v56, %v5746_v26  ;;  %v1618_v13 = vrot.slane %v7622_v20, %v7341_v31 }
 0x2e7   : > { %v2714_v37 = vrot.slane %v2700_v36, %v7397_v9  ;;  %v1622_v2 = vrot.slane %v7622_v20, %v7345_v40  ;;  %v1626_v61 = vrot.slane %v7622_v20, %v7348_v23  ;;  %v1630_v7 = vrot.slane %v7622_v20, %v7358_v10  ;;  %5945 = vmatprep.subr.mxu1 %v6286_v51 }
 0x2e8   : > { %v5030_v29 = vsel %vm806_vm1, %v7909_v6, 0.0  ;;  %v1634_v44 = vrot.slane %v7622_v20, %v7362_v14  ;;  %v1638_v63 = vrot.slane %v7622_v20, %v7371_v17  ;;  %v2716_v21 = vcombine.low %v1610_v45, %v1614_v4  ;;  %5946 = vmatpush3.msra.mxu1 %v6287_v15  ;;  %v6289_v20 = vld [vmem:[%s6592_s17 + $0x8] sm:$0xff] }
 0x2e9   : > { %v2715_v36 = vcombine.low %v2707_v47, %v2714_v37  ;;  %v5031_v50 = vadd.f32 %v5030_v29, %v5029_v32  ;;  %v2717_v26 = vcombine.low %v1618_v13, %v1622_v2  ;;  %v2718_v60 = vcombine.low %v1626_v61, %v1630_v7  ;;  %5947 = vmatprep.subr.mxu1 %v6288_v58  ;;  %v6290_v32 = vld [vmem:[%s6592_s17 + $0x80] sm:$0xff]  ;;  %v9542_v2 = vld [vmem:[#allocation21_spill] sm:$0xff] }
 0x2ea   : > { %v2719_v51 = vcombine.low %v1634_v44, %v1638_v63  ;;  %v2726_v48 = vrot.slane %v2716_v21, %v7397_v9  ;;  %vm4357_vm10 = vcmp.eq.s32.totalorder %v9526_v55, %v7836_v42  ;;  %v1323_v56 = vcvt.f32.s32 %v1322_v1  ;;  %5948 = vmatpush3.msra.mxu1 %v6289_v20  ;;  %v6291_v1 = vld [vmem:[%s6592_s17] sm:$0xff]  ;;  %v9543_v44 = vld [vmem:[#allocation42_spill] sm:$0xff] }
 0x2eb   : > { %4052 = vperm.xlu1 %6259, %v2715_v36   ;;  %v2733_v45 = vrot.slane %v2717_v26, %v7397_v9  ;;  %v2740_v4 = vrot.slane %v2718_v60, %v7397_v9  ;;  %v5747_v47 = vsel %vm4357_vm10, 1.0, %v9502_v28  ;;  %vm4358_vm11 = vcmp.eq.s32.totalorder %v9526_v55, %v7751_v8  ;;  %5949 = vmatprep.subr.mxu1 %v6290_v32 }
 0x2ec   : > { %v2747_v13 = vrot.slane %v2719_v51, %v7397_v9  ;;  %6076 = vmatprep.mubr.msk.f32.mxu1 %vm806_vm1, %v5747_v47  ;;  %v7942_v37 = vmul.f32 %v7535_v34, %v5747_v47  ;;  %v7945_v61 = vadd.s32 %v9542_v2, %v1323_v56  ;;  %v5748_v7 = vsel %vm4358_vm11, 1.0, %v9502_v28  ;;  %5950 = vmatpush3.msra.mxu1 %v6291_v1 }
 0x2ed   : > { %v2748_v29 = vcombine.low %v2726_v48, %v2733_v45  ;;  %6077 = vmatmul.mubr.msk.f32.gmra.mxu1 %vm806_vm1, %v5748_v7  ;;  %v7951_v63 = vmul.f32 %v9543_v44, %v5748_v7  ;;  %v1248_v21 = vcvt.f32.s32 %v1247_v53  ;;  %v1642_v15 = vrot.slane %v7689_v52, %v7335_v19  ;;  %v9544_v53 = vld [vmem:[#allocation22_spill] sm:$0xff] }
 0x2ee   : > { %v2749_v36 = vcombine.low %v2740_v4, %v2747_v13  ;;  %v5032_v26 = vsel %vm806_vm1, %v7942_v37, 0.0  ;;  %v1646_v56 = vrot.slane %v7689_v52, %v7338_v43  ;;  %v1650_v60 = vrot.slane %v7689_v52, %v7341_v31  ;;  %v1352_v13 = vpop.xlane.xlu1 %1351 }
 0x2ef   : > { %v2756_v48 = vrot.slane %v2748_v29, %v7397_v9  ;;  %v5033_v58 = vadd.f32 %v5032_v26, %v5031_v50  ;;  %v5034_v51 = vsel %vm806_vm1, %v7951_v63, 0.0  ;;  %v7965_v20 = vadd.s32 %v9544_v53, %v1248_v21  ;;  %v1277_v29 = vpop.xlane.xlu0 %1276 }
 0x2f0   : > { %v2763_v45 = vrot.slane %v2749_v36, %v7397_v9  ;;  %v1654_v4 = vrot.slane %v7689_v52, %v7345_v40  ;;  %v1658_v47 = vrot.slane %v7689_v52, %v7348_v23  ;;  %v1662_v32 = vrot.slane %v7689_v52, %v7358_v10 }
 0x2f1   : > { %v5035_v2 = vadd.f32 %v5034_v51, %v5033_v58  ;;  %v1666_v50 = vrot.slane %v7689_v52, %v7362_v14  ;;  %v1670_v7 = vrot.slane %v7689_v52, %v7371_v17  ;;  %v2765_v1 = vcombine.low %v1642_v15, %v1646_v56  ;;  %v9545_v52 = vld [vmem:[#allocation44_spill] sm:$0xff] }
 0x2f2   : > { %v2764_v21 = vcombine.low %v2756_v48, %v2763_v45  ;;  %v2766_v36 = vcombine.low %v1650_v60, %v1654_v4  ;;  %v2767_v26 = vcombine.low %v1658_v47, %v1662_v32  ;;  %vm4359_vm12 = vcmp.eq.s32.totalorder %v9526_v55, %v7848_v16  ;;  %v9546_v48 = vld [vmem:[#allocation24_spill] sm:$0xff] }
 0x2f3   : > { %v2768_v53 = vcombine.low %v1666_v50, %v1670_v7  ;;  %v2775_v34 = vrot.slane %v2765_v1, %v7397_v9  ;;  %v5749_v44 = vsel %vm4359_vm12, 1.0, %v9502_v28  ;;  %v1353_v58 = vcvt.f32.s32 %v1352_v13  ;;  %v9547_v13 = vld [vmem:[#allocation55_spill] sm:$0xff] }
 0x2f4   : > { %4055 = vperm.xlu1 %6259, %v2764_v21   ;;  %v2782_v51 = vrot.slane %v2766_v36, %v7397_v9  ;;  %v2789_v8 = vrot.slane %v2767_v26, %v7397_v9  ;;  %6079 = vmatprep.mubr.msk.f32.mxu1 %vm806_vm1, %v5749_v44  ;;  %v4988_v15 = vmul.f32 %v9545_v52, %v5749_v44  ;;  %v1278_v56 = vcvt.f32.s32 %v1277_v29  ;;  %v9548_v29 = vld [vmem:[#allocation43_spill] sm:$0xff]  ;;  %v9549_v36 = vld [vmem:[#allocation25_spill] sm:$0xff] }
 0x2f5   : > { %v2796_v60 = vrot.slane %v2768_v53, %v7397_v9  ;;  %v7988_v45 = vadd.s32 %v9546_v48, %v1353_v58  ;;  %vm4360_vm13 = vcmp.eq.s32.totalorder %v9526_v55, %v7799_v5  ;;  %v1674_v4 = vrot.slane %v7642_v3, %v7335_v19 }
 0x2f6   : > { %v2797_v47 = vcombine.low %v2775_v34, %v2782_v51  ;;  %v5036_v32 = vsel %vm806_vm1, %v4988_v15, 0.0  ;;  %v6187_v50 = vpack.i.bf16 %v9547_v13, %v4988_v15  ;;  %v5750_v7 = vsel %vm4360_vm13, 1.0, %v9502_v28 }
 0x2f7   : > { %v2798_v44 = vcombine.low %v2789_v8, %v2796_v60  ;;  %v5037_v1 = vadd.f32 %v5036_v32, %v5035_v2  ;;  %6080 = vmatmul.mubr.msk.f32.gmra.mxu1 %vm806_vm1, %v5750_v7  ;;  %v4989_v21 = vmul.f32 %v9548_v29, %v5750_v7  ;;  %v8000_v26 = vadd.s32 %v9549_v36, %v1278_v56  ;;  %v1382_v60 = vpop.xlane.xlu1 %1381 }
 0x2f8   : > { %v2805_v53 = vrot.slane %v2797_v47, %v7397_v9  ;;  %6188 = vxpose.xlu0.b32.start [1/16] (narrow) %v6187_v50, 64  ;;  %v1678_v34 = vrot.slane %v7642_v3, %v7338_v43  ;;  %v1682_v58 = vrot.slane %v7642_v3, %v7341_v31  ;;  %v1686_v8 = vrot.slane %v7642_v3, %v7345_v40 }
 0x2f9   : > { %v2812_v2 = vrot.slane %v2798_v44, %v7397_v9  ;;  %v5038_v51 = vsel %vm806_vm1, %v4989_v21, 0.0  ;;  %v1690_v15 = vrot.slane %v7642_v3, %v7348_v23  ;;  %v1694_v56 = vrot.slane %v7642_v3, %v7358_v10 }
 0x2fa   : > { %v5039_v48 = vadd.f32 %v5038_v51, %v5037_v1  ;;  %v1698_v47 = vrot.slane %v7642_v3, %v7362_v14  ;;  %v1702_v32 = vrot.slane %v7642_v3, %v7371_v17  ;;  %v2814_v13 = vcombine.low %v1674_v4, %v1678_v34  ;;  %v1307_v1 = vpop.xlane.xlu0 %1306  ;;  %v9550_v4 = vld [vmem:[#allocation45_spill] sm:$0xff] }
 0x2fb   : > { %v2813_v50 = vcombine.low %v2805_v53, %v2812_v2  ;;  %v2815_v7 = vcombine.low %v1682_v58, %v1686_v8  ;;  %v2816_v44 = vcombine.low %v1690_v15, %v1694_v56  ;;  %v6189_v36 = vpack.i.bf16 %v7597_v25, %v4989_v21  ;;  %v9551_v53 = vld [vmem:[#allocation28_spill] sm:$0xff]  ;;  %v9553_v2 = vld [vmem:[#allocation46_spill] sm:$0xff] }
 0x2fc   : > { %v2817_v29 = vcombine.low %v1698_v47, %v1702_v32  ;;  %v2824_v52 = vrot.slane %v2814_v13, %v7397_v9  ;;  %vm4361_vm14 = vcmp.eq.s32.totalorder %v9526_v55, %v7965_v20  ;;  %v1383_v42 = vcvt.f32.s32 %v1382_v60 }
 0x2fd   : > { %4058 = vperm.xlu1 %6259, %v2813_v50   ;;  %v2831_v51 = vrot.slane %v2815_v7, %v7397_v9  ;;  %v2838_v39 = vrot.slane %v2816_v44, %v7397_v9  ;;  %6190 = vxpose.xlu0.b32.cont [2/16] (narrow) %v6189_v36, 64  ;;  %v5751_v3 = vsel %vm4361_vm14, 1.0, %v9502_v28  ;;  %vm4362_vm15 = vcmp.eq.s32.totalorder %v9526_v55, %v7903_v54  ;;  %v9554_v7 = vld [vmem:[#allocation29_spill] sm:$0xff] }
 0x2fe   : > { %v2845_v25 = vrot.slane %v2817_v29, %v7397_v9  ;;  %6082 = vmatprep.mubr.msk.f32.mxu1 %vm806_vm1, %v5751_v3  ;;  %v4990_v21 = vmul.f32 %v9550_v4, %v5751_v3  ;;  %v8032_v34 = vadd.s32 %v9551_v53, %v1383_v42  ;;  %v5752_v58 = vsel %vm4362_vm15, 1.0, %v9502_v28  ;;  %v1412_v3 = vpop.xlane.xlu1 %1411 }
 0x2ff   : > { %v2846_v8 = vcombine.low %v2824_v52, %v2831_v51  ;;  %6083 = vmatmul.mubr.msk.f32.gmra.mxu1 %vm806_vm1, %v5752_v58  ;;  %v8037_v15 = vmul.f32 %v9553_v2, %v5752_v58  ;;  %v1308_v56 = vcvt.f32.s32 %v1307_v1  ;;  %v1706_v60 = vrot.slane %v7720_v62, %v7335_v19 }
 0x300   : > { %9552 = vst [vmem:[#allocation18_spill] sm:$0xff] %v8032_v34  ;;  %v2847_v29 = vcombine.low %v2838_v39, %v2845_v25  ;;  %v5040_v47 = vsel %vm806_vm1, %v4990_v21, 0.0  ;;  %v1710_v32 = vrot.slane %v7720_v62, %v7338_v43  ;;  %v1714_v42 = vrot.slane %v7720_v62, %v7341_v31 }
 0x301   : > { %v2854_v52 = vrot.slane %v2846_v8, %v7397_v9  ;;  %v5041_v13 = vadd.f32 %v5040_v47, %v5039_v48  ;;  %v5042_v50 = vsel %vm806_vm1, %v8037_v15, 0.0  ;;  %v8050_v44 = vadd.s32 %v9554_v7, %v1308_v56 }
 0x302   : > { %v2861_v36 = vrot.slane %v2847_v29, %v7397_v9  ;;  %v1718_v39 = vrot.slane %v7720_v62, %v7345_v40  ;;  %v1722_v1 = vrot.slane %v7720_v62, %v7348_v23  ;;  %v1726_v51 = vrot.slane %v7720_v62, %v7358_v10 }
 0x303   : > { %v5043_v25 = vadd.f32 %v5042_v50, %v5041_v13  ;;  %v1730_v48 = vrot.slane %v7720_v62, %v7362_v14  ;;  %v1734_v53 = vrot.slane %v7720_v62, %v7371_v17  ;;  %v2863_v58 = vcombine.low %v1706_v60, %v1710_v32  ;;  %v1337_v13 = vpop.xlane.xlu0 %1336  ;;  %v9556_v32 = vld [vmem:[#allocation30_spill] sm:$0xff] }
 0x304   : > { %v2862_v8 = vcombine.low %v2854_v52, %v2861_v36  ;;  %v2864_v56 = vcombine.low %v1714_v42, %v1718_v39  ;;  %v2865_v29 = vcombine.low %v1722_v1, %v1726_v51  ;;  %v6191_v47 = vpack.i.bf16 %v7666_v57, %v4990_v21  ;;  %v9555_v21 = vld [vmem:[#allocation47_spill] sm:$0xff]  ;;  %v9557_v39 = vld [vmem:[#allocation48_spill] sm:$0xff] }
 0x305   : > { %v2866_v7 = vcombine.low %v1730_v48, %v1734_v53  ;;  %v2873_v4 = vrot.slane %v2863_v58, %v7397_v9  ;;  %vm4363_vm2 = vcmp.eq.s32.totalorder %v9526_v55, %v8000_v26  ;;  %v1413_v2 = vcvt.f32.s32 %v1412_v3 }
 0x306   : > { %4061 = vperm.xlu1 %6259, %v2862_v8   ;;  %v2880_v50 = vrot.slane %v2864_v56, %v7397_v9  ;;  %v2887_v38 = vrot.slane %v2865_v29, %v7397_v9  ;;  %6192 = vxpose.xlu0.b32.cont [3/16] (narrow) %v6191_v47, 64  ;;  %v5753_v62 = vsel %vm4363_vm2, 1.0, %v9502_v28  ;;  %vm4364_vm3 = vcmp.eq.s32.totalorder %v9526_v55, %v7890_v46  ;;  %v9558_v29 = vld [vmem:[#allocation31_spill] sm:$0xff] }
 0x307   : > { %v2894_v57 = vrot.slane %v2866_v7, %v7397_v9  ;;  %6085 = vmatprep.mubr.msk.f32.mxu1 %vm806_vm1, %v5753_v62  ;;  %v8075_v60 = vmul.f32 %v9555_v21, %v5753_v62  ;;  %v8078_v42 = vadd.s32 %v9556_v32, %v1413_v2  ;;  %v5754_v52 = vsel %vm4364_vm3, 1.0, %v9502_v28  ;;  %v1442_v62 = vpop.xlane.xlu1 %1441 }
 0x308   : > { %v2895_v36 = vcombine.low %v2873_v4, %v2880_v50  ;;  %6086 = vmatmul.mubr.msk.f32.gmra.mxu1 %vm806_vm1, %v5754_v52  ;;  %v8083_v1 = vmul.f32 %v9557_v39, %v5754_v52  ;;  %v1338_v51 = vcvt.f32.s32 %v1337_v13  ;;  %v1962_v3 = vrot.slane %v7848_v16, %v7335_v19 }
 0x309   : > { %v2896_v48 = vcombine.low %v2887_v38, %v2894_v57  ;;  %v5044_v53 = vsel %vm806_vm1, %v8075_v60, 0.0  ;;  %v1966_v2 = vrot.slane %v7848_v16, %v7338_v43  ;;  %v1970_v58 = vrot.slane %v7848_v16, %v7341_v31 }
 0x30a   : > { %v2903_v4 = vrot.slane %v2895_v36, %v7397_v9  ;;  %v5045_v8 = vadd.f32 %v5044_v53, %v5043_v25  ;;  %v5046_v56 = vsel %vm806_vm1, %v8083_v1, 0.0  ;;  %v8097_v47 = vadd.s32 %v9558_v29, %v1338_v51 }
 0x30b   : > { %v2910_v38 = vrot.slane %v2896_v48, %v7397_v9  ;;  %v1974_v7 = vrot.slane %v7848_v16, %v7345_v40  ;;  %v1978_v13 = vrot.slane %v7848_v16, %v7348_v23  ;;  %v1982_v50 = vrot.slane %v7848_v16, %v7358_v10 }
 0x30c   : > { %v5047_v57 = vadd.f32 %v5046_v56, %v5045_v8  ;;  %v1986_v25 = vrot.slane %v7848_v16, %v7362_v14  ;;  %v1990_v32 = vrot.slane %v7848_v16, %v7371_v17  ;;  %v3255_v52 = vcombine.low %v1962_v3, %v1966_v2  ;;  %v1367_v56 = vpop.xlane.xlu0 %1366 }
 0x30d   : > { %v2911_v36 = vcombine.low %v2903_v4, %v2910_v38  ;;  %v3256_v51 = vcombine.low %v1970_v58, %v1974_v7  ;;  %v3257_v48 = vcombine.low %v1978_v13, %v1982_v50  ;;  %v6193_v53 = vpack.i.bf16 %v7645_v12, %v8037_v15  ;;  %v9559_v15 = vld [vmem:[#allocation49_spill] sm:$0xff]  ;;  %v9561_v13 = vld [vmem:[#allocation50_spill] sm:$0xff] }
 0x30e   : > { %v3258_v29 = vcombine.low %v1986_v25, %v1990_v32  ;;  %v3265_v39 = vrot.slane %v3255_v52, %v7397_v9  ;;  %vm4365_vm4 = vcmp.eq.s32.totalorder %v9526_v55, %v8050_v44  ;;  %v1443_v8 = vcvt.f32.s32 %v1442_v62  ;;  %v9560_v58 = vld [vmem:[#allocation33_spill] sm:$0xff] }
 0x30f   : > { %4064 = vperm.xlu1 %6259, %v2911_v36   ;;  %v3272_v21 = vrot.slane %v3256_v51, %v7397_v9  ;;  %v3279_v16 = vrot.slane %v3257_v48, %v7397_v9  ;;  %6194 = vxpose.xlu0.b32.cont [4/16] (narrow) %v6193_v53, 64  ;;  %v5755_v3 = vsel %vm4365_vm4, 1.0, %v9502_v28  ;;  %vm4366_vm5 = vcmp.eq.s32.totalorder %v9526_v55, %v7945_v61  ;;  %v9562_v53 = vld [vmem:[#allocation34_spill] sm:$0xff] }
 0x310   : > { %v3286_v12 = vrot.slane %v3258_v29, %v7397_v9  ;;  %6088 = vmatprep.mubr.msk.f32.mxu1 %vm806_vm1, %v5755_v3  ;;  %v8123_v2 = vmul.f32 %v9559_v15, %v5755_v3  ;;  %v8126_v4 = vadd.s32 %v9560_v58, %v1443_v8  ;;  %v5756_v38 = vsel %vm4366_vm5, 1.0, %v9502_v28 }
 0x311   : > { %v3287_v7 = vcombine.low %v3265_v39, %v3272_v21  ;;  %6089 = vmatmul.mubr.msk.f32.gmra.mxu1 %vm806_vm1, %v5756_v38  ;;  %v8131_v50 = vmul.f32 %v9561_v13, %v5756_v38  ;;  %v1368_v62 = vcvt.f32.s32 %v1367_v56  ;;  %v1994_v25 = vrot.slane %v7799_v5, %v7335_v19 }
 0x312   : > { %v3288_v32 = vcombine.low %v3279_v16, %v3286_v12  ;;  %v5048_v52 = vsel %vm806_vm1, %v8123_v2, 0.0  ;;  %v1998_v36 = vrot.slane %v7799_v5, %v7338_v43  ;;  %v2002_v51 = vrot.slane %v7799_v5, %v7341_v31 }
 0x313   : > { %v3295_v21 = vrot.slane %v3287_v7, %v7397_v9  ;;  %v5049_v39 = vadd.f32 %v5048_v52, %v5047_v57  ;;  %v5050_v48 = vsel %vm806_vm1, %v8131_v50, 0.0  ;;  %v8145_v29 = vadd.s32 %v9562_v53, %v1368_v62  ;;  %v1397_v53 = vpop.xlane.xlu0 %1396 }
 0x314   : > { %v3302_v8 = vrot.slane %v3288_v32, %v7397_v9  ;;  %v2006_v56 = vrot.slane %v7799_v5, %v7345_v40  ;;  %v2010_v16 = vrot.slane %v7799_v5, %v7348_v23  ;;  %v2014_v3 = vrot.slane %v7799_v5, %v7358_v10 }
 0x315   : > { %v5051_v12 = vadd.f32 %v5050_v48, %v5049_v39  ;;  %v2018_v57 = vrot.slane %v7799_v5, %v7362_v14  ;;  %v2022_v58 = vrot.slane %v7799_v5, %v7371_v17  ;;  %v3304_v38 = vcombine.low %v1994_v25, %v1998_v36  ;;  %v9564_v39 = vld [vmem:[#allocation52_spill] sm:$0xff] }
 0x316   : > { %v3303_v7 = vcombine.low %v3295_v21, %v3302_v8  ;;  %v3305_v62 = vcombine.low %v2002_v51, %v2006_v56  ;;  %v3306_v32 = vcombine.low %v2010_v16, %v2014_v3  ;;  %v6195_v52 = vpack.i.bf16 %v7696_v22, %v8075_v60  ;;  %v9563_v51 = vld [vmem:[#allocation51_spill] sm:$0xff] }
 0x317   : > { %v3307_v13 = vcombine.low %v2018_v57, %v2022_v58  ;;  %v3314_v15 = vrot.slane %v3304_v38, %v7397_v9  ;;  %vm4367_vm6 = vcmp.eq.s32.totalorder %v9526_v55, %v8097_v47  ;;  %vm4368_vm7 = vcmp.eq.s32.totalorder %v9526_v55, %v7988_v45 }
 0x318   : > { %4088 = vperm.xlu1 %6259, %v3303_v7   ;;  %v3321_v5 = vrot.slane %v3305_v62, %v7397_v9  ;;  %v3328_v25 = vrot.slane %v3306_v32, %v7397_v9  ;;  %6196 = vxpose.xlu0.b32.cont [5/16] (narrow) %v6195_v52, 64  ;;  %v5757_v36 = vsel %vm4367_vm6, 1.0, %v9502_v28  ;;  %v5758_v22 = vsel %vm4368_vm7, 1.0, %v9502_v28  ;;  %v9565_v7 = vld [vmem:[#allocation35_spill] sm:$0xff] }
 0x319   : > { %v3335_v60 = vrot.slane %v3307_v13, %v7397_v9  ;;  %6091 = vmatprep.mubr.msk.f32.mxu1 %vm806_vm1, %v5757_v36  ;;  %v8172_v21 = vmul.f32 %v9563_v51, %v5757_v36  ;;  %v8175_v48 = vmul.f32 %v9564_v39, %v5758_v22  ;;  %v1398_v8 = vcvt.f32.s32 %v1397_v53 }
 0x31a   : > { %v3336_v56 = vcombine.low %v3314_v15, %v3321_v5  ;;  %6092 = vmatmul.mubr.msk.f32.gmra.mxu1 %vm806_vm1, %v5758_v22  ;;  %v2026_v16 = vrot.slane %v7965_v20, %v7335_v19  ;;  %v2030_v3 = vrot.slane %v7965_v20, %v7338_v43  ;;  %v2034_v13 = vrot.slane %v7965_v20, %v7341_v31 }
 0x31b   : > { %v3337_v57 = vcombine.low %v3328_v25, %v3335_v60  ;;  %v5052_v58 = vsel %vm806_vm1, %v8172_v21, 0.0  ;;  %v5054_v38 = vsel %vm806_vm1, %v8175_v48, 0.0  ;;  %v8189_v15 = vadd.s32 %v9565_v7, %v1398_v8 }
 0x31c   : > { %v3344_v62 = vrot.slane %v3336_v56, %v7397_v9  ;;  %v5053_v32 = vadd.f32 %v5052_v58, %v5051_v12  ;;  %v2038_v52 = vrot.slane %v7965_v20, %v7345_v40  ;;  %v2042_v53 = vrot.slane %v7965_v20, %v7348_v23 }
 0x31d   : > { %v3351_v5 = vrot.slane %v3337_v57, %v7397_v9  ;;  %v2046_v25 = vrot.slane %v7965_v20, %v7358_v10  ;;  %v2050_v36 = vrot.slane %v7965_v20, %v7362_v14  ;;  %v2054_v22 = vrot.slane %v7965_v20, %v7371_v17  ;;  %v1427_v57 = vpop.xlane.xlu0 %1426 }
 0x31e   : > { %v5055_v60 = vadd.f32 %v5054_v38, %v5053_v32  ;;  %v3353_v8 = vcombine.low %v2026_v16, %v2030_v3  ;;  %v3354_v12 = vcombine.low %v2034_v13, %v2038_v52  ;;  %v6197_v56 = vpack.i.bf16 %v7686_v18, %v8083_v1  ;;  %v9566_v16 = vld [vmem:[#allocation53_spill] sm:$0xff] }
 0x31f   : > { %v3352_v58 = vcombine.low %v3344_v62, %v3351_v5  ;;  %v3355_v7 = vcombine.low %v2042_v53, %v2046_v25  ;;  %v3356_v39 = vcombine.low %v2050_v36, %v2054_v22  ;;  %vm4369_vm8 = vcmp.eq.s32.totalorder %v9526_v55, %v8145_v29  ;;  %v9567_v62 = vld [vmem:[#allocation54_spill] sm:$0xff] }
 0x320   : > { %v3363_v51 = vrot.slane %v3353_v8, %v7397_v9  ;;  %v3370_v27 = vrot.slane %v3354_v12, %v7397_v9  ;;  %6198 = vxpose.xlu0.b32.cont [6/16] (narrow) %v6197_v56, 64  ;;  %v5759_v20 = vsel %vm4369_vm8, 1.0, %v9502_v28  ;;  %vm4370_vm9 = vcmp.eq.s32.totalorder %v9526_v55, %v8032_v34  ;;  %v9568_v8 = vld [vmem:[#allocation37_spill] sm:$0xff] }
 0x321   : > { %4091 = vperm.xlu1 %6259, %v3352_v58   ;;  %v3377_v18 = vrot.slane %v3355_v7, %v7397_v9  ;;  %v3384_v1 = vrot.slane %v3356_v39, %v7397_v9  ;;  %6094 = vmatprep.mubr.msk.f32.mxu1 %vm806_vm1, %v5759_v20  ;;  %v8216_v3 = vmul.f32 %v9566_v16, %v5759_v20  ;;  %v5760_v13 = vsel %vm4370_vm9, 1.0, %v9502_v28 }
 0x322   : > { %v3385_v38 = vcombine.low %v3363_v51, %v3370_v27  ;;  %6095 = vmatmul.mubr.msk.f32.gmra.mxu1 %vm806_vm1, %v5760_v13  ;;  %v8221_v32 = vmul.f32 %v9567_v62, %v5760_v13  ;;  %v1428_v52 = vcvt.f32.s32 %v1427_v57  ;;  %v2058_v53 = vrot.slane %v7903_v54, %v7335_v19 }
 0x323   : > { %v3386_v5 = vcombine.low %v3377_v18, %v3384_v1  ;;  %v5056_v39 = vsel %vm806_vm1, %v8216_v3, 0.0  ;;  %v2062_v25 = vrot.slane %v7903_v54, %v7338_v43  ;;  %v2066_v36 = vrot.slane %v7903_v54, %v7341_v31 }
 0x324   : > { %v3393_v27 = vrot.slane %v3385_v38, %v7397_v9  ;;  %v5057_v51 = vadd.f32 %v5056_v39, %v5055_v60  ;;  %v5058_v22 = vsel %vm806_vm1, %v8221_v32, 0.0  ;;  %v8235_v12 = vadd.s32 %v9568_v8, %v1428_v52 }
 0x325   : > { %v3400_v56 = vrot.slane %v3386_v5, %v7397_v9  ;;  %v2070_v58 = vrot.slane %v7903_v54, %v7345_v40  ;;  %v2074_v7 = vrot.slane %v7903_v54, %v7348_v23  ;;  %v2078_v57 = vrot.slane %v7903_v54, %v7358_v10 }
 0x326   : > { %v5059_v20 = vadd.f32 %v5058_v22, %v5057_v51  ;;  %v2082_v60 = vrot.slane %v7903_v54, %v7362_v14  ;;  %v2086_v18 = vrot.slane %v7903_v54, %v7371_v17  ;;  %v3402_v1 = vcombine.low %v2058_v53, %v2062_v25  ;;  %v9569_v51 = vld [vmem:[#allocation9_spill] sm:$0xff]  ;;  %v9570_v22 = vld [vmem:[#allocation11_spill] sm:$0xff]  ;;  %v9571_v25 = vld [vmem:[#allocation10_spill] sm:$0xff] }
 0x327   : > { %v3401_v13 = vcombine.low %v3393_v27, %v3400_v56  ;;  %v3403_v38 = vcombine.low %v2066_v36, %v2070_v58  ;;  %v3404_v52 = vcombine.low %v2074_v7, %v2078_v57  ;;  %v6199_v5 = vpack.i.bf16 %v7732_v35, %v8123_v2 }
 0x328   : > { %v3405_v39 = vcombine.low %v2082_v60, %v2086_v18  ;;  %v3412_v8 = vrot.slane %v3402_v1, %v7397_v9  ;;  %vm4371_vm10 = vcmp.eq.s32.totalorder %v9526_v55, %v8189_v15  ;;  %v4856_v62 = vadd.s32 %v9570_v22, %v9569_v51 }
 0x329   : > { %4094 = vperm.xlu1 %6259, %v3401_v13   ;;  %v3419_v16 = vrot.slane %v3403_v38, %v7397_v9  ;;  %v3426_v54 = vrot.slane %v3404_v52, %v7397_v9  ;;  %6200 = vxpose.xlu0.b32.cont [7/16] (narrow) %v6199_v5, 64  ;;  %v5761_v53 = vsel %vm4371_vm10, 1.0, %v9502_v28  ;;  %vm4372_vm11 = vcmp.eq.s32.totalorder %v9526_v55, %v8078_v42 }
 0x32a   : > { %v3433_v35 = vrot.slane %v3405_v39, %v7397_v9  ;;  %6097 = vmatprep.mubr.msk.f32.mxu1 %vm806_vm1, %v5761_v53  ;;  %vm4888_vm12 = vcmp.lt.s32.totalorder %v4856_v62, 16  ;;  %v5762_v2 = vsel %vm4372_vm11, 1.0, %v9502_v28  ;;  %v4824_v36 = vadd.s32 232, %v9571_v25 }
 0x32b   : > { %v3434_v27 = vcombine.low %v3412_v8, %v3419_v16  ;;  %v8265_v56 = vsel %vm4888_vm12, 1.0, %v9502_v28  ;;  %6098 = vmatmul.mubr.msk.f32.gmra.mxu1 %vm806_vm1, %v5762_v2  ;;  %v2090_v58 = vrot.slane %v8000_v26, %v7335_v19  ;;  %v2094_v7 = vrot.slane %v8000_v26, %v7338_v43 }
 0x32c   : > { %9572 = vst [vmem:[#allocation19_spill] sm:$0xff] %v8265_v56  ;;  %v3435_v57 = vcombine.low %v3426_v54, %v3433_v35  ;;  %v8273_v60 = vmul.f32 %v8265_v56, %v5761_v53  ;;  %v4857_v62 = vadd.s32 %v9570_v22, %v4824_v36  ;;  %v2098_v16 = vrot.slane %v8000_v26, %v7341_v31 }
 0x32d   : > { %v3442_v18 = vrot.slane %v3434_v27, %v7397_v9  ;;  %v2102_v1 = vrot.slane %v8000_v26, %v7345_v40  ;;  %v2106_v13 = vrot.slane %v8000_v26, %v7348_v23  ;;  %v2110_v38 = vrot.slane %v8000_v26, %v7358_v10 }
 0x32e   : > { %v3449_v52 = vrot.slane %v3435_v57, %v7397_v9  ;;  %v5060_v5 = vsel %vm806_vm1, %v8273_v60, 0.0  ;;  %vm4889_vm13 = vcmp.lt.s32.totalorder %v4857_v62, 16  ;;  %v2114_v39 = vrot.slane %v8000_v26, %v7362_v14 }
 0x32f   : > { %v5061_v8 = vadd.f32 %v5060_v5, %v5059_v20  ;;  %v8291_v51 = vsel %vm4889_vm13, 1.0, %v9502_v28  ;;  %v2118_v54 = vrot.slane %v8000_v26, %v7371_v17  ;;  %v3451_v53 = vcombine.low %v2090_v58, %v2094_v7 }
 0x330   : > { %v3450_v35 = vcombine.low %v3442_v18, %v3449_v52  ;;  %v8296_v36 = vmul.f32 %v8291_v51, %v5762_v2  ;;  %v3452_v27 = vcombine.low %v2098_v16, %v2102_v1  ;;  %v3453_v57 = vcombine.low %v2106_v13, %v2110_v38 }
 0x331   : > { %v3454_v56 = vcombine.low %v2114_v39, %v2118_v54  ;;  %v3461_v62 = vrot.slane %v3451_v53, %v7397_v9  ;;  %v6201_v34 = vpack.i.bf16 %v7743_v0, %v8131_v50  ;;  %vm4373_vm14 = vcmp.eq.s32.totalorder %v9526_v55, %v8235_v12 }
 0x332   : > { %4097 = vperm.xlu1 %6259, %v3450_v35   ;;  %v5062_v26 = vsel %vm806_vm1, %v8296_v36, 0.0  ;;  %v3468_v20 = vrot.slane %v3452_v27, %v7397_v9  ;;  %v3475_v2 = vrot.slane %v3453_v57, %v7397_v9  ;;  %v5763_v58 = vsel %vm4373_vm14, 1.0, %v9502_v28 }
 0x333   : > { %v5063_v7 = vadd.f32 %v5062_v26, %v5061_v8  ;;  %v3482_v16 = vrot.slane %v3454_v56, %v7397_v9  ;;  %6202 = vxpose.xlu0.b32.cont [8/16] (narrow) %v6201_v34, 64  ;;  %6100 = vmatprep.mubr.msk.f32.mxu1 %vm806_vm1, %v5763_v58  ;;  %v4825_v0 = vadd.s32 240, %v9571_v25  ;;  %vm4374_vm15 = vcmp.eq.s32.totalorder %v9526_v55, %v8126_v4 }
 0x334   : > { %v3483_v50 = vcombine.low %v3461_v62, %v3468_v20  ;;  %v5764_v18 = vsel %vm4374_vm15, 1.0, %v9502_v28  ;;  %v4826_v1 = vadd.s32 248, %v9571_v25  ;;  %v2122_v13 = vrot.slane %v7890_v46, %v7335_v19 }
 0x335   : > { %v3484_v38 = vcombine.low %v3475_v2, %v3482_v16  ;;  %v4858_v52 = vadd.s32 %v9570_v22, %v4825_v0  ;;  %6101 = vmatmul.mubr.msk.f32.gmra.mxu1 %vm806_vm1, %v5764_v18  ;;  %v2126_v34 = vrot.slane %v7890_v46, %v7338_v43  ;;  %v2130_v56 = vrot.slane %v7890_v46, %v7341_v31 }
 0x336   : > { %v3491_v5 = vrot.slane %v3483_v50, %v7397_v9  ;;  %v4859_v39 = vadd.s32 %v9570_v22, %v4826_v1  ;;  %v2134_v8 = vrot.slane %v7890_v46, %v7345_v40  ;;  %v2138_v54 = vrot.slane %v7890_v46, %v7348_v23 }
 0x337   : > { %v3498_v53 = vrot.slane %v3484_v38, %v7397_v9  ;;  %vm4890_vm2 = vcmp.lt.s32.totalorder %v4858_v52, 16  ;;  %v2142_v35 = vrot.slane %v7890_v46, %v7358_v10  ;;  %v2146_v27 = vrot.slane %v7890_v46, %v7362_v14 }
 0x338   : > { %v8335_v57 = vsel %vm4890_vm2, 1.0, %v9502_v28  ;;  %vm4891_vm3 = vcmp.lt.s32.totalorder %v4859_v39, 16  ;;  %v2150_v22 = vrot.slane %v7890_v46, %v7371_v17  ;;  %v3500_v62 = vcombine.low %v2122_v13, %v2126_v34 }
 0x339   : > { %v3499_v26 = vcombine.low %v3491_v5, %v3498_v53  ;;  %v8340_v20 = vmul.f32 %v8335_v57, %v5763_v58  ;;  %v8343_v2 = vsel %vm4891_vm3, 1.0, %v9502_v28  ;;  %v3501_v16 = vcombine.low %v2130_v56, %v2134_v8 }
 0x33a   : > { %v8346_v0 = vmul.f32 %v8343_v2, %v5764_v18  ;;  %v3502_v50 = vcombine.low %v2138_v54, %v2142_v35  ;;  %v3503_v1 = vcombine.low %v2146_v27, %v2150_v22  ;;  %v3510_v38 = vrot.slane %v3500_v62, %v7397_v9 }
 0x33b   : > { %4100 = vperm.xlu1 %6259, %v3499_v26   ;;  %v5064_v46 = vsel %vm806_vm1, %v8340_v20, 0.0  ;;  %v3517_v13 = vrot.slane %v3501_v16, %v7397_v9  ;;  %v6203_v58 = vpack.i.bf16 %v7781_v33, %v8172_v21  ;;  %v2154_v52 = vrot.slane %v8050_v44, %v7335_v19 }
 0x33c   : > { %v5065_v34 = vadd.f32 %v5064_v46, %v5063_v7  ;;  %v5066_v18 = vsel %vm806_vm1, %v8346_v0, 0.0  ;;  %v3524_v56 = vrot.slane %v3502_v50, %v7397_v9  ;;  %v3531_v5 = vrot.slane %v3503_v1, %v7397_v9 }
 0x33d   : > { %v3532_v39 = vcombine.low %v3510_v38, %v3517_v13  ;;  %6204 = vxpose.xlu0.b32.cont [9/16] (narrow) %v6203_v58, 64  ;;  %v2158_v8 = vrot.slane %v8050_v44, %v7338_v43  ;;  %v2162_v54 = vrot.slane %v8050_v44, %v7341_v31  ;;  %v2166_v33 = vrot.slane %v8050_v44, %v7345_v40 }
 0x33e   : > { %v8366_v21 = vadd.f32 %v5066_v18, %v5065_v34  ;;  %v3533_v7 = vcombine.low %v3524_v56, %v3531_v5  ;;  %v2170_v53 = vrot.slane %v8050_v44, %v7348_v23  ;;  %v2174_v35 = vrot.slane %v8050_v44, %v7358_v10 }
 0x33f   : > { %v3540_v27 = vrot.slane %v3532_v39, %v7397_v9  ;;  %v2178_v22 = vrot.slane %v8050_v44, %v7362_v14  ;;  %v2182_v62 = vrot.slane %v8050_v44, %v7371_v17  ;;  %v3549_v26 = vcombine.low %v2154_v52, %v2158_v8 }
 0x340   : > { %v3547_v16 = vrot.slane %v3533_v7, %v7397_v9  ;;  %v3550_v50 = vcombine.low %v2162_v54, %v2166_v33  ;;  %v3551_v1 = vcombine.low %v2170_v53, %v2174_v35  ;;  %v6205_v13 = vpack.i.bf16 %v7794_v11, %v8175_v48 }
 0x341   : > { %v3552_v38 = vcombine.low %v2178_v22, %v2182_v62  ;;  %v3559_v46 = vrot.slane %v3549_v26, %v7397_v9  ;;  %v2186_v58 = vrot.slane %v7945_v61, %v7335_v19  ;;  %v2190_v52 = vrot.slane %v7945_v61, %v7338_v43 }
 0x342   : > { %v3548_v34 = vcombine.low %v3540_v27, %v3547_v16  ;;  %v3566_v18 = vrot.slane %v3550_v50, %v7397_v9  ;;  %v3573_v56 = vrot.slane %v3551_v1, %v7397_v9  ;;  %6206 = vxpose.xlu0.b32.cont [10/16] (narrow) %v6205_v13, 64  ;;  %v2194_v5 = vrot.slane %v7945_v61, %v7341_v31 }
 0x343   : > { %v3580_v44 = vrot.slane %v3552_v38, %v7397_v9  ;;  %v2198_v11 = vrot.slane %v7945_v61, %v7345_v40  ;;  %v2202_v39 = vrot.slane %v7945_v61, %v7348_v23  ;;  %v2206_v8 = vrot.slane %v7945_v61, %v7358_v10 }
 0x344   : > { %4103 = vperm.xlu1 %6259, %v3548_v34   ;;  %v3581_v48 = vcombine.low %v3559_v46, %v3566_v18  ;;  %v2210_v33 = vrot.slane %v7945_v61, %v7362_v14  ;;  %v2214_v7 = vrot.slane %v7945_v61, %v7371_v17  ;;  %v3598_v53 = vcombine.low %v2186_v58, %v2190_v52 }
 0x345   : > { %v3582_v54 = vcombine.low %v3573_v56, %v3580_v44  ;;  %v3599_v27 = vcombine.low %v2194_v5, %v2198_v11  ;;  %v3600_v22 = vcombine.low %v2202_v39, %v2206_v8  ;;  %v6207_v50 = vpack.i.bf16 %v7833_v49, %v8216_v3 }
 0x346   : > { %v3589_v35 = vrot.slane %v3581_v48, %v7397_v9  ;;  %v3601_v26 = vcombine.low %v2210_v33, %v2214_v7  ;;  %v3608_v16 = vrot.slane %v3598_v53, %v7397_v9  ;;  %v2218_v61 = vrot.slane %v8097_v47, %v7335_v19 }
 0x347   : > { %v3596_v62 = vrot.slane %v3582_v54, %v7397_v9  ;;  %v3615_v1 = vrot.slane %v3599_v27, %v7397_v9  ;;  %v3622_v38 = vrot.slane %v3600_v22, %v7397_v9  ;;  %6208 = vxpose.xlu0.b32.cont [11/16] (narrow) %v6207_v50, 64  ;;  %v2222_v58 = vrot.slane %v8097_v47, %v7338_v43 }
 0x348   : > { %v3629_v13 = vrot.slane %v3601_v26, %v7397_v9  ;;  %v2226_v34 = vrot.slane %v8097_v47, %v7341_v31  ;;  %v2230_v49 = vrot.slane %v8097_v47, %v7345_v40  ;;  %v2234_v3 = vrot.slane %v8097_v47, %v7348_v23 }
 0x349   : > { %v3597_v46 = vcombine.low %v3589_v35, %v3596_v62  ;;  %v3630_v18 = vcombine.low %v3608_v16, %v3615_v1  ;;  %v2238_v56 = vrot.slane %v8097_v47, %v7358_v10  ;;  %v2242_v52 = vrot.slane %v8097_v47, %v7362_v14 }
 0x34a   : > { %v3631_v44 = vcombine.low %v3622_v38, %v3629_v13  ;;  %v2246_v5 = vrot.slane %v8097_v47, %v7371_v17  ;;  %v3647_v11 = vcombine.low %v2218_v61, %v2222_v58  ;;  %v3648_v39 = vcombine.low %v2226_v34, %v2230_v49 }
 0x34b   : > { %4106 = vperm.xlu1 %6259, %v3597_v46   ;;  %v3638_v48 = vrot.slane %v3630_v18, %v7397_v9  ;;  %v3649_v8 = vcombine.low %v2234_v3, %v2238_v56  ;;  %v6209_v54 = vpack.i.bf16 %v7856_v24, %v8221_v32  ;;  %v1738_v35 = vrot.slane %v7662_v30, %v7335_v19 }
 0x34c   : > { %v3645_v33 = vrot.slane %v3631_v44, %v7397_v9  ;;  %v3650_v7 = vcombine.low %v2242_v52, %v2246_v5  ;;  %v3657_v53 = vrot.slane %v3647_v11, %v7397_v9  ;;  %v3664_v27 = vrot.slane %v3648_v39, %v7397_v9 }
 0x34d   : > { %v3671_v47 = vrot.slane %v3649_v8, %v7397_v9  ;;  %6210 = vxpose.xlu0.b32.cont [12/16] (narrow) %v6209_v54, 64  ;;  %v1742_v22 = vrot.slane %v7662_v30, %v7338_v43  ;;  %v1746_v62 = vrot.slane %v7662_v30, %v7341_v31  ;;  %v1750_v26 = vrot.slane %v7662_v30, %v7345_v40 }
 0x34e   : > { %v3646_v24 = vcombine.low %v3638_v48, %v3645_v33  ;;  %v3678_v32 = vrot.slane %v3650_v7, %v7397_v9  ;;  %v1754_v16 = vrot.slane %v7662_v30, %v7348_v23  ;;  %v3679_v50 = vcombine.low %v3657_v53, %v3664_v27 }
 0x34f   : > { %v1758_v1 = vrot.slane %v7662_v30, %v7358_v10  ;;  %v1762_v38 = vrot.slane %v7662_v30, %v7362_v14  ;;  %v1766_v61 = vrot.slane %v7662_v30, %v7371_v17  ;;  %v2912_v13 = vcombine.low %v1738_v35, %v1742_v22 }
 0x350   : > { %4109 = vperm.xlu1 %6259, %v3646_v24   ;;  %v3680_v46 = vcombine.low %v3671_v47, %v3678_v32  ;;  %v2913_v58 = vcombine.low %v1746_v62, %v1750_v26  ;;  %v6211_v34 = vpack.i.bf16 %v7887_v41, %v8273_v60  ;;  %v3687_v18 = vrot.slane %v3679_v50, %v7397_v9 }
 0x351   : > { %v2914_v49 = vcombine.low %v1754_v16, %v1758_v1  ;;  %v2915_v3 = vcombine.low %v1762_v38, %v1766_v61  ;;  %v2250_v56 = vrot.slane %v7988_v45, %v7335_v19  ;;  %v2922_v52 = vrot.slane %v2912_v13, %v7397_v9 }
 0x352   : > { %v3694_v44 = vrot.slane %v3680_v46, %v7397_v9  ;;  %v2929_v30 = vrot.slane %v2913_v58, %v7397_v9  ;;  %6212 = vxpose.xlu0.b32.cont [13/16] (narrow) %v6211_v34, 64  ;;  %v2254_v5 = vrot.slane %v7988_v45, %v7338_v43  ;;  %v2258_v60 = vrot.slane %v7988_v45, %v7341_v31 }
 0x353   : > { %v2936_v11 = vrot.slane %v2914_v49, %v7397_v9  ;;  %v2943_v41 = vrot.slane %v2915_v3, %v7397_v9  ;;  %v2262_v48 = vrot.slane %v7988_v45, %v7345_v40  ;;  %v2266_v54 = vrot.slane %v7988_v45, %v7348_v23 }
 0x354   : > { %v3695_v39 = vcombine.low %v3687_v18, %v3694_v44  ;;  %v2944_v8 = vcombine.low %v2922_v52, %v2929_v30  ;;  %v2270_v33 = vrot.slane %v7988_v45, %v7358_v10  ;;  %v2274_v53 = vrot.slane %v7988_v45, %v7362_v14 }
 0x355   : > { %v2945_v7 = vcombine.low %v2936_v11, %v2943_v41  ;;  %v2278_v35 = vrot.slane %v7988_v45, %v7371_v17  ;;  %v3696_v27 = vcombine.low %v2250_v56, %v2254_v5  ;;  %v3697_v22 = vcombine.low %v2258_v60, %v2262_v48 }
 0x356   : > { %4112 = vperm.xlu1 %6259, %v3695_v39   ;;  %v2952_v47 = vrot.slane %v2944_v8, %v7397_v9  ;;  %v3698_v62 = vcombine.low %v2266_v54, %v2270_v33  ;;  %v6213_v24 = vpack.i.bf16 %v7909_v6, %v8296_v36  ;;  %v1770_v50 = vrot.slane %v7748_v59, %v7335_v19 }
 0x357   : > { %v2959_v32 = vrot.slane %v2945_v7, %v7397_v9  ;;  %v3699_v26 = vcombine.low %v2274_v53, %v2278_v35  ;;  %v3706_v16 = vrot.slane %v3696_v27, %v7397_v9  ;;  %v3713_v1 = vrot.slane %v3697_v22, %v7397_v9 }
 0x358   : > { %v3720_v45 = vrot.slane %v3698_v62, %v7397_v9  ;;  %6214 = vxpose.xlu0.b32.cont [14/16] (narrow) %v6213_v24, 64  ;;  %v1774_v38 = vrot.slane %v7748_v59, %v7338_v43  ;;  %v1778_v61 = vrot.slane %v7748_v59, %v7341_v31  ;;  %v1782_v46 = vrot.slane %v7748_v59, %v7345_v40 }
 0x359   : > { %v2960_v6 = vcombine.low %v2952_v47, %v2959_v32  ;;  %v3727_v36 = vrot.slane %v3699_v26, %v7397_v9  ;;  %v1786_v13 = vrot.slane %v7748_v59, %v7348_v23  ;;  %v3728_v58 = vcombine.low %v3706_v16, %v3713_v1 }
 0x35a   : > { %v1790_v34 = vrot.slane %v7748_v59, %v7358_v10  ;;  %v1794_v18 = vrot.slane %v7748_v59, %v7362_v14  ;;  %v1798_v49 = vrot.slane %v7748_v59, %v7371_v17  ;;  %v2961_v56 = vcombine.low %v1770_v50, %v1774_v38  ;;  %v9573_v38 = vld [vmem:[#allocation56_spill] sm:$0xff] }
 0x35b   : > { %4067 = vperm.xlu1 %6259, %v2960_v6   ;;  %v3729_v3 = vcombine.low %v3720_v45, %v3727_v36  ;;  %v2962_v44 = vcombine.low %v1778_v61, %v1782_v46  ;;  %v6215_v52 = vpack.i.bf16 %v7942_v37, %v8340_v20  ;;  %v3736_v30 = vrot.slane %v3728_v58, %v7397_v9 }
 0x35c   : > { %v2963_v5 = vcombine.low %v1786_v13, %v1790_v34  ;;  %v2964_v11 = vcombine.low %v1794_v18, %v1798_v49  ;;  %v2282_v41 = vrot.slane %v8145_v29, %v7335_v19  ;;  %v2971_v48 = vrot.slane %v2961_v56, %v7397_v9  ;;  %v8538_v34 = vpop.permute.xlu1 %4040 }
 0x35d   : > { %v3743_v60 = vrot.slane %v3729_v3, %v7397_v9  ;;  %v2978_v59 = vrot.slane %v2962_v44, %v7397_v9  ;;  %6216 = vxpose.xlu0.b32.cont [15/16] (narrow) %v6215_v52, 64  ;;  %v2286_v39 = vrot.slane %v8145_v29, %v7338_v43  ;;  %v2290_v20 = vrot.slane %v8145_v29, %v7341_v31 }
 0x35e   : > { %v2985_v8 = vrot.slane %v2963_v5, %v7397_v9  ;;  %v2992_v37 = vrot.slane %v2964_v11, %v7397_v9  ;;  %v2294_v54 = vrot.slane %v8145_v29, %v7345_v40  ;;  %v2298_v53 = vrot.slane %v8145_v29, %v7348_v23  ;;  %v9574_v5 = vld [vmem:[#allocation59_spill] sm:$0xff] }
 0x35f   : > { %v3744_v33 = vcombine.low %v3736_v30, %v3743_v60  ;;  %v2993_v7 = vcombine.low %v2971_v48, %v2978_v59  ;;  %v2302_v35 = vrot.slane %v8145_v29, %v7358_v10  ;;  %v2306_v47 = vrot.slane %v8145_v29, %v7362_v14 }
 0x360   : > { %v2994_v27 = vcombine.low %v2985_v8, %v2992_v37  ;;  %v2310_v22 = vrot.slane %v8145_v29, %v7371_v17  ;;  %v3745_v62 = vcombine.low %v2282_v41, %v2286_v39  ;;  %v3746_v32 = vcombine.low %v2290_v20, %v2294_v54 }
 0x361   : > { %4115 = vperm.xlu1 %6259, %v3744_v33   ;;  %v3001_v24 = vrot.slane %v2993_v7, %v7397_v9  ;;  %v3747_v26 = vcombine.low %v2298_v53, %v2302_v35  ;;  %v6217_v16 = vpack.i.bf16 %v7951_v63, %v8346_v0  ;;  %v1802_v61 = vrot.slane %v9573_v38, %v7335_v19 }
 0x362   : > { %v3008_v50 = vrot.slane %v2994_v27, %v7397_v9  ;;  %v3748_v1 = vcombine.low %v2306_v47, %v2310_v22  ;;  %v3755_v45 = vrot.slane %v3745_v62, %v7397_v9  ;;  %v3762_v6 = vrot.slane %v3746_v32, %v7397_v9  ;;  %v8566_v62 = vpop.permute.xlu1 %4043 }
 0x363   : > { %v3769_v29 = vrot.slane %v3747_v26, %v7397_v9  ;;  %6218 = vxpose.xlu0.b32.end [16/16] (narrow) %v6217_v16, 64  ;;  %v1806_v36 = vrot.slane %v9573_v38, %v7338_v43  ;;  %v1810_v46 = vrot.slane %v9573_v38, %v7341_v31  ;;  %v1814_v13 = vrot.slane %v9573_v38, %v7345_v40 }
 0x364   : > { %v3009_v63 = vcombine.low %v3001_v24, %v3008_v50  ;;  %v3776_v0 = vrot.slane %v3748_v1, %v7397_v9  ;;  %v1818_v58 = vrot.slane %v9573_v38, %v7348_v23  ;;  %v3777_v18 = vcombine.low %v3755_v45, %v3762_v6 }
 0x365   : > { %v1822_v49 = vrot.slane %v9573_v38, %v7358_v10  ;;  %v1826_v3 = vrot.slane %v9573_v38, %v7362_v14  ;;  %v1830_v56 = vrot.slane %v9573_v38, %v7371_v17  ;;  %v3010_v52 = vcombine.low %v1802_v61, %v1806_v36 }
 0x366   : > { %4070 = vperm.xlu1 %6259, %v3009_v63   ;;  %v3778_v44 = vcombine.low %v3769_v29, %v3776_v0  ;;  %v3011_v30 = vcombine.low %v1810_v46, %v1814_v13  ;;  %v1834_v11 = vrot.slane %v9574_v5, %v7335_v19  ;;  %v3785_v41 = vrot.slane %v3777_v18, %v7397_v9 }
 0x367   : > { %v3012_v60 = vcombine.low %v1818_v58, %v1822_v49  ;;  %v3013_v48 = vcombine.low %v1826_v3, %v1830_v56  ;;  %v1838_v59 = vrot.slane %v9574_v5, %v7338_v43  ;;  %v3020_v8 = vrot.slane %v3010_v52, %v7397_v9 }
 0x368   : > { %v3792_v39 = vrot.slane %v3778_v44, %v7397_v9  ;;  %v3027_v37 = vrot.slane %v3011_v30, %v7397_v9  ;;  %v1842_v20 = vrot.slane %v9574_v5, %v7341_v31  ;;  %v1846_v7 = vrot.slane %v9574_v5, %v7345_v40 }
 0x369   : > { %v3034_v54 = vrot.slane %v3012_v60, %v7397_v9  ;;  %v3041_v33 = vrot.slane %v3013_v48, %v7397_v9  ;;  %v1850_v53 = vrot.slane %v9574_v5, %v7348_v23  ;;  %v1854_v47 = vrot.slane %v9574_v5, %v7358_v10  ;;  %v9575_v48 = vld [vmem:[#allocation57_spill] sm:$0xff] }
 0x36a   : > { %v3793_v35 = vcombine.low %v3785_v41, %v3792_v39  ;;  %v3042_v27 = vcombine.low %v3020_v8, %v3027_v37  ;;  %v1858_v22 = vrot.slane %v9574_v5, %v7362_v14  ;;  %v1862_v32 = vrot.slane %v9574_v5, %v7371_v17  ;;  %v8592_v5 = vpop.permute.xlu1 %4046 }
 0x36b   : > { %v3043_v24 = vcombine.low %v3034_v54, %v3041_v33  ;;  %v3059_v26 = vcombine.low %v1834_v11, %v1838_v59  ;;  %v3060_v16 = vcombine.low %v1842_v20, %v1846_v7  ;;  %v3061_v1 = vcombine.low %v1850_v53, %v1854_v47 }
 0x36c   : > { %4118 = vperm.xlu1 %6259, %v3793_v35   ;;  %v3050_v50 = vrot.slane %v3042_v27, %v7397_v9  ;;  %v2346_v45 = vrot.slane %v8189_v15, %v7335_v19  ;;  %v2350_v38 = vrot.slane %v8189_v15, %v7338_v43  ;;  %v3062_v6 = vcombine.low %v1858_v22, %v1862_v32 }
 0x36d   : > { %v3057_v61 = vrot.slane %v3043_v24, %v7397_v9  ;;  %v3069_v29 = vrot.slane %v3059_v26, %v7397_v9  ;;  %v3076_v36 = vrot.slane %v3060_v16, %v7397_v9  ;;  %v3083_v46 = vrot.slane %v3061_v1, %v7397_v9 }
 0x36e   : > { %v2354_v63 = vrot.slane %v8189_v15, %v7341_v31  ;;  %v2358_v0 = vrot.slane %v8189_v15, %v7345_v40  ;;  %v2362_v13 = vrot.slane %v8189_v15, %v7348_v23  ;;  %v3090_v18 = vrot.slane %v3062_v6, %v7397_v9 }
 0x36f   : > { %v3058_v58 = vcombine.low %v3050_v50, %v3057_v61  ;;  %v3091_v49 = vcombine.low %v3069_v29, %v3076_v36  ;;  %v2366_v3 = vrot.slane %v8189_v15, %v7358_v10  ;;  %v2370_v56 = vrot.slane %v8189_v15, %v7362_v14 }
 0x370   : > { %v2374_v44 = vrot.slane %v8189_v15, %v7371_v17  ;;  %v3843_v52 = vcombine.low %v2346_v45, %v2350_v38  ;;  %v3844_v30 = vcombine.low %v2354_v63, %v2358_v0  ;;  %v3092_v11 = vcombine.low %v3083_v46, %v3090_v18  ;;  %v8617_v38 = vpop.permute.xlu1 %4049 }
 0x371   : > { %4073 = vperm.xlu1 %6259, %v3058_v58   ;;  %v3099_v41 = vrot.slane %v3091_v49, %v7397_v9  ;;  %v3845_v60 = vcombine.low %v2362_v13, %v2366_v3  ;;  %v1866_v59 = vrot.slane %v9575_v48, %v7335_v19  ;;  %v1870_v15 = vrot.slane %v9575_v48, %v7338_v43 }
 0x372   : > { %v3846_v39 = vcombine.low %v2370_v56, %v2374_v44  ;;  %v3853_v8 = vrot.slane %v3843_v52, %v7397_v9  ;;  %v3860_v37 = vrot.slane %v3844_v30, %v7397_v9  ;;  %v3106_v20 = vrot.slane %v3092_v11, %v7397_v9 }
 0x373   : > { %v3867_v54 = vrot.slane %v3845_v60, %v7397_v9  ;;  %v1874_v33 = vrot.slane %v9575_v48, %v7341_v31  ;;  %v1878_v7 = vrot.slane %v9575_v48, %v7345_v40  ;;  %v1882_v27 = vrot.slane %v9575_v48, %v7348_v23 }
 0x374   : > { %v3874_v53 = vrot.slane %v3846_v39, %v7397_v9  ;;  %v3875_v35 = vcombine.low %v3853_v8, %v3860_v37  ;;  %v1886_v47 = vrot.slane %v9575_v48, %v7358_v10  ;;  %v3107_v22 = vcombine.low %v3099_v41, %v3106_v20 }
 0x375   : > { %v1890_v24 = vrot.slane %v9575_v48, %v7362_v14  ;;  %v1894_v32 = vrot.slane %v9575_v48, %v7371_v17  ;;  %v3108_v26 = vcombine.low %v1866_v59, %v1870_v15  ;;  %v3109_v1 = vcombine.low %v1874_v33, %v1878_v7  ;;  %v9576_v15 = vld [vmem:[#allocation60_spill] sm:$0xff] }
 0x376   : > { %v3876_v16 = vcombine.low %v3867_v54, %v3874_v53  ;;  %v3883_v50 = vrot.slane %v3875_v35, %v7397_v9  ;;  %v3110_v45 = vcombine.low %v1882_v27, %v1886_v47  ;;  %4076 = vperm.xlu1 %6259, %v3107_v22   ;;  %v2378_v29 = vrot.slane %v8078_v42, %v7335_v19 }
 0x377   : > { %v3111_v61 = vcombine.low %v1890_v24, %v1894_v32  ;;  %v3118_v6 = vrot.slane %v3108_v26, %v7397_v9  ;;  %v2382_v36 = vrot.slane %v8078_v42, %v7338_v43  ;;  %v3125_v63 = vrot.slane %v3109_v1, %v7397_v9 }
 0x378   : > { %v3890_v46 = vrot.slane %v3876_v16, %v7397_v9  ;;  %v3132_v0 = vrot.slane %v3110_v45, %v7397_v9  ;;  %v2386_v13 = vrot.slane %v8078_v42, %v7341_v31  ;;  %v8636_v58 = vpop.f32.mrf.mxu0  ;;  %v2390_v49 = vrot.slane %v8078_v42, %v7345_v40 }
 0x379   : > { %v3139_v18 = vrot.slane %v3111_v61, %v7397_v9  ;;  %v2394_v3 = vrot.slane %v8078_v42, %v7348_v23  ;;  %v2398_v56 = vrot.slane %v8078_v42, %v7358_v10  ;;  %4761 = vst.msk [vmem:[%s8624_s16 + $0x8] sm:$0xff] %vm388_vm0, %v8636_v58  ;;  %v3140_v52 = vcombine.low %v3118_v6, %v3125_v63 }
 0x37a   : > { %v3891_v44 = vcombine.low %v3883_v50, %v3890_v46  ;;  %v2402_v30 = vrot.slane %v8078_v42, %v7362_v14  ;;  %v2406_v11 = vrot.slane %v8078_v42, %v7371_v17  ;;  %v8652_v41 = vpop.f32.mrf.mxu0  ;;  %v3892_v48 = vcombine.low %v2378_v29, %v2382_v36  ;;  %v8662_v42 = vpop.permute.xlu1 %4052 }
 0x37b   : > { %v3141_v60 = vcombine.low %v3132_v0, %v3139_v18  ;;  %v3893_v59 = vcombine.low %v2386_v13, %v2390_v49  ;;  %v3894_v39 = vcombine.low %v2394_v3, %v2398_v56  ;;  %4760 = vst.msk [vmem:[%s8624_s16] sm:$0xff] %vm388_vm0, %v8652_v41  ;;  %v3148_v8 = vrot.slane %v3140_v52, %v7397_v9 }
 0x37c   : > { %4124 = vperm.xlu1 %6259, %v3891_v44   ;;  %v3895_v37 = vcombine.low %v2402_v30, %v2406_v11  ;;  %v1898_v20 = vrot.slane %v9576_v15, %v7335_v19  ;;  %v1902_v54 = vrot.slane %v9576_v15, %v7338_v43  ;;  %v3902_v7 = vrot.slane %v3892_v48, %v7397_v9 }
 0x37d   : > { %v3155_v33 = vrot.slane %v3141_v60, %v7397_v9  ;;  %v3909_v53 = vrot.slane %v3893_v59, %v7397_v9  ;;  %v3916_v35 = vrot.slane %v3894_v39, %v7397_v9  ;;  %v1906_v47 = vrot.slane %v9576_v15, %v7341_v31 }
 0x37e   : > { %v3923_v27 = vrot.slane %v3895_v37, %v7397_v9  ;;  %v1910_v22 = vrot.slane %v9576_v15, %v7345_v40  ;;  %v1914_v24 = vrot.slane %v9576_v15, %v7348_v23  ;;  %v1918_v16 = vrot.slane %v9576_v15, %v7358_v10  ;;  %v8694_v56 = vpop.permute.xlu1 %4055 }
 0x37f   : > { %v3156_v32 = vcombine.low %v3148_v8, %v3155_v33  ;;  %v3924_v26 = vcombine.low %v3902_v7, %v3909_v53  ;;  %v1922_v50 = vrot.slane %v9576_v15, %v7362_v14  ;;  %v1926_v45 = vrot.slane %v9576_v15, %v7371_v17 }
 0x380   : > { %v3925_v1 = vcombine.low %v3916_v35, %v3923_v27  ;;  %v3157_v61 = vcombine.low %v1898_v20, %v1902_v54  ;;  %v3158_v6 = vcombine.low %v1906_v47, %v1910_v22  ;;  %v8681_v29 = vpop.f32.mrf.mxu0  ;;  %v3159_v46 = vcombine.low %v1914_v24, %v1918_v16  ;;  %v9577_v27 = vld [vmem:[#allocation58_spill] sm:$0xff] }
 0x381   : > { %4079 = vperm.xlu1 %6259, %v3156_v32   ;;  %v3932_v36 = vrot.slane %v3924_v26, %v7397_v9  ;;  %v2410_v63 = vrot.slane %v8235_v12, %v7335_v19  ;;  %v2414_v0 = vrot.slane %v8235_v12, %v7338_v43  ;;  %4763 = vst.msk [vmem:[%s8624_s16 + $0x18] sm:$0xff] %vm388_vm0, %v8681_v29  ;;  %vm4144_vm1 = vcmask 130112  }
 0x382   : > { %v3939_v13 = vrot.slane %v3925_v1, %v7397_v9  ;;  %v3160_v18 = vcombine.low %v1922_v50, %v1926_v45  ;;  %v3167_v49 = vrot.slane %v3157_v61, %v7397_v9  ;;  %v3174_v3 = vrot.slane %v3158_v6, %v7397_v9  ;;  %v8696_v44 = vpop.f32.mrf.mxu0  ;;  %v8738_v61 = vpop.permute.xlu1 %4058 }
 0x383   : > { %v3181_v52 = vrot.slane %v3159_v46, %v7397_v9  ;;  %v2418_v30 = vrot.slane %v8235_v12, %v7341_v31  ;;  %v2422_v11 = vrot.slane %v8235_v12, %v7345_v40  ;;  %v2426_v60 = vrot.slane %v8235_v12, %v7348_v23  ;;  %4762 = vst.msk [vmem:[%s8624_s16 + $0x10] sm:$0xff] %vm388_vm0, %v8696_v44 }
 0x384   : > { %v3940_v48 = vcombine.low %v3932_v36, %v3939_v13  ;;  %v3188_v59 = vrot.slane %v3160_v18, %v7397_v9  ;;  %v3189_v39 = vcombine.low %v3167_v49, %v3174_v3  ;;  %v2430_v8 = vrot.slane %v8235_v12, %v7358_v10 }
 0x385   : > { %v8711_v37 = vpop.f32.mrf.mxu1  ;;  %v2434_v15 = vrot.slane %v8235_v12, %v7362_v14  ;;  %v2438_v20 = vrot.slane %v8235_v12, %v7371_v17  ;;  %v3941_v54 = vcombine.low %v2410_v63, %v2414_v0  ;;  %v3942_v33 = vcombine.low %v2418_v30, %v2422_v11 }
 0x386   : > { %4765 = vst.msk [vmem:[%s8624_s16 + $0x28] sm:$0xff] %vm388_vm0, %v8711_v37  ;;  %4127 = vperm.xlu1 %6259, %v3940_v48   ;;  %v3190_v7 = vcombine.low %v3181_v52, %v3188_v59  ;;  %v3197_v53 = vrot.slane %v3189_v39, %v7397_v9  ;;  %v3943_v35 = vcombine.low %v2426_v60, %v2430_v8  ;;  %vm4151_vm4 = vcmask 195712  }
 0x387   : > { %v1930_v47 = vrot.slane %v9577_v27, %v7335_v19  ;;  %v8723_v22 = vpop.f32.mrf.mxu1  ;;  %v3944_v24 = vcombine.low %v2434_v15, %v2438_v20  ;;  %v3951_v32 = vrot.slane %v3941_v54, %v7397_v9  ;;  %v3958_v12 = vrot.slane %v3942_v33, %v7397_v9 }
 0x388   : > { %v1934_v26 = vrot.slane %v9577_v27, %v7338_v43  ;;  %4764 = vst.msk [vmem:[%s8624_s16 + $0x20] sm:$0xff] %vm388_vm0, %v8723_v22  ;;  %v3204_v16 = vrot.slane %v3190_v7, %v7397_v9  ;;  %v3965_v50 = vrot.slane %v3943_v35, %v7397_v9  ;;  %v1938_v1 = vrot.slane %v9577_v27, %v7341_v31 }
 0x389   : > { %v1942_v45 = vrot.slane %v9577_v27, %v7345_v40  ;;  %v3972_v6 = vrot.slane %v3944_v24, %v7397_v9  ;;  %v3973_v36 = vcombine.low %v3951_v32, %v3958_v12  ;;  %v1946_v46 = vrot.slane %v9577_v27, %v7348_v23  ;;  %v8778_v32 = vpop.permute.xlu1 %4061 }
 0x38a   : > { %v1950_v63 = vrot.slane %v9577_v27, %v7358_v10  ;;  %v3205_v0 = vcombine.low %v3197_v53, %v3204_v16  ;;  %v1954_v13 = vrot.slane %v9577_v27, %v7362_v14  ;;  %v1958_v18 = vrot.slane %v9577_v27, %v7371_v17 }
 0x38b   : > { %v3206_v49 = vcombine.low %v1930_v47, %v1934_v26  ;;  %v8749_v3 = vpop.f32.mrf.mxu1  ;;  %v3974_v52 = vcombine.low %v3965_v50, %v3972_v6  ;;  %v3981_v30 = vrot.slane %v3973_v36, %v7397_v9  ;;  %v3207_v11 = vcombine.low %v1938_v1, %v1942_v45 }
 0x38c   : > { %v3208_v60 = vcombine.low %v1946_v46, %v1950_v63  ;;  %4767 = vst.msk [vmem:[%s8624_s16 + $0x38] sm:$0xff] %vm388_vm0, %v8749_v3  ;;  %4082 = vperm.xlu1 %6259, %v3205_v0   ;;  %v3209_v48 = vcombine.low %v1954_v13, %v1958_v18  ;;  %v2442_v39 = vrot.slane %v8126_v4, %v7335_v19  ;;  %v9578_v53 = vmov 0  }
 0x38d   : > { %v3216_v59 = vrot.slane %v3206_v49, %v7397_v9  ;;  %v2446_v8 = vrot.slane %v8126_v4, %v7338_v43  ;;  %v8760_v15 = vpop.f32.mrf.mxu1  ;;  %v3988_v20 = vrot.slane %v3974_v52, %v7397_v9  ;;  %v3223_v54 = vrot.slane %v3207_v11, %v7397_v9  ;;  %6260 = vset.pattern.permute.xlu0 %v9578_v53 }
 0x38e   : > { %v3230_v33 = vrot.slane %v3208_v60, %v7397_v9  ;;  %v2450_v7 = vrot.slane %v8126_v4, %v7341_v31  ;;  %4766 = vst.msk [vmem:[%s8624_s16 + $0x30] sm:$0xff] %vm388_vm0, %v8760_v15  ;;  %v3237_v35 = vrot.slane %v3209_v48, %v7397_v9  ;;  %v2454_v27 = vrot.slane %v8126_v4, %v7345_v40 }
 0x38f   : > { %v2458_v47 = vrot.slane %v8126_v4, %v7348_v23  ;;  %v2462_v24 = vrot.slane %v8126_v4, %v7358_v10  ;;  %v3989_v12 = vcombine.low %v3981_v30, %v3988_v20  ;;  %v3238_v26 = vcombine.low %v3216_v59, %v3223_v54 }
 0x390   : > { %v2466_v16 = vrot.slane %v8126_v4, %v7362_v14  ;;  %v2470_v50 = vrot.slane %v8126_v4, %v7371_v17  ;;  %v3239_v1 = vcombine.low %v3230_v33, %v3237_v35  ;;  %v3990_v45 = vcombine.low %v2442_v39, %v2446_v8  ;;  %v9579_v8 = vld [vmem:[#allocation18_spill] sm:$0xff]  ;;  %v8809_v33 = vpop.permute.xlu1 %4064 }
 0x391   : > { %v3991_v6 = vcombine.low %v2450_v7, %v2454_v27  ;;  %v3992_v36 = vcombine.low %v2458_v47, %v2462_v24  ;;  %4130 = vperm.xlu1 %6259, %v3989_v12   ;;  %v3246_v46 = vrot.slane %v3238_v26, %v7397_v9  ;;  %v8787_v0 = vsub.s32 %v9526_v55, %v9571_v25 }
 0x392   : > { %v3993_v63 = vcombine.low %v2466_v16, %v2470_v50  ;;  %v4139_v13 = vadd.s32 4294967288, %v9526_v55  ;;  %v3253_v18 = vrot.slane %v3239_v1, %v7397_v9  ;;  %v4000_v49 = vrot.slane %v3990_v45, %v7397_v9 }
 0x393   : > { %v4007_v4 = vrot.slane %v3991_v6, %v7397_v9  ;;  %v4014_v52 = vrot.slane %v3992_v36, %v7397_v9  ;;  %v8794_v30 = vpop.f32.mrf.mxu1  ;;  %v4138_v60 = vrot.slane %v8538_v34, %v8787_v0  ;;  %v2314_v20 = vrot.slane %v9579_v8, %v7335_v19 }
 0x394   : > { %v4021_v11 = vrot.slane %v3993_v63, %v7397_v9  ;;  %v8800_v48 = vsub.s32 %v4139_v13, %v9571_v25  ;;  %4769 = vst.msk [vmem:[%s8624_s16 + $0x48] sm:$0xff] %vm388_vm0, %v8794_v30  ;;  %v3254_v59 = vcombine.low %v3246_v46, %v3253_v18  ;;  %v2318_v54 = vrot.slane %v9579_v8, %v7338_v43 }
 0x395   : > { %v4022_v39 = vcombine.low %v4000_v49, %v4007_v4  ;;  %v8811_v7 = vpop.f32.mrf.mxu1  ;;  %v2322_v35 = vrot.slane %v9579_v8, %v7341_v31  ;;  %v2326_v27 = vrot.slane %v9579_v8, %v7345_v40  ;;  %v2330_v43 = vrot.slane %v9579_v8, %v7348_v23 }
 0x396   : > { %v4023_v34 = vcombine.low %v4014_v52, %v4021_v11  ;;  %v4143_v53 = vrot.slane %v8566_v62, %v8800_v48  ;;  %4768 = vst.msk [vmem:[%s8624_s16 + $0x40] sm:$0xff] %vm388_vm0, %v8811_v7  ;;  %4085 = vperm.xlu1 %6259, %v3254_v59   ;;  %v2334_v47 = vrot.slane %v9579_v8, %v7358_v10  ;;  %v4146_v50 = vadd.s32 4294967280, %v9526_v55 }
 0x397   : > { %v4030_v19 = vrot.slane %v4022_v39, %v7397_v9  ;;  %v2338_v62 = vrot.slane %v9579_v8, %v7362_v14  ;;  %v2342_v40 = vrot.slane %v9579_v8, %v7371_v17  ;;  %v3794_v12 = vcombine.low %v2314_v20, %v2318_v54  ;;  %v4089_v17 = vpop.permute.xlu1 %4088 }
 0x398   : > { %v4037_v31 = vrot.slane %v4023_v34, %v7397_v9  ;;  %v4145_v24 = vsel %vm4144_vm1, %v4143_v53, %v4138_v60  ;;  %v3795_v26 = vcombine.low %v2322_v35, %v2326_v27  ;;  %v3796_v16 = vcombine.low %v2330_v43, %v2334_v47 }
 0x399   : > { %v3797_v1 = vcombine.low %v2338_v62, %v2342_v40  ;;  %v3804_v10 = vrot.slane %v3794_v12, %v7397_v9  ;;  %v4153_v45 = vadd.s32 4294967272, %v9526_v55  ;;  %v8839_v36 = vsub.s32 %v4146_v50, %v9571_v25 }
 0x39a   : > { %v4038_v23 = vcombine.low %v4030_v19, %v4037_v31  ;;  %v3811_v14 = vrot.slane %v3795_v26, %v7397_v9  ;;  %v3818_v6 = vrot.slane %v3796_v16, %v7397_v9  ;;  %vm4158_vm5 = vcmask 261312  }
 0x39b   : > { %v3825_v46 = vrot.slane %v3797_v1, %v7397_v9  ;;  %v8843_v63 = vsub.s32 %v4153_v45, %v9571_v25  ;;  %v4160_v13 = vadd.s32 4294967264, %v9526_v55  ;;  %vm4165_vm6 = vcmask 326912   ;;  %v6293_v1 = vld [vmem:[%s6592_s17] sm:$0xff] }
 0x39c   : > { %4133 = vperm.xlu1 %6259, %v4038_v23   ;;  %v3826_v18 = vcombine.low %v3804_v10, %v3811_v14  ;;  %v4150_v49 = vrot.slane %v8592_v5, %v8839_v36  ;;  %v4167_v4 = vadd.s32 4294967256, %v9526_v55  ;;  %vm4172_vm7 = vcmask 392512   ;;  %v4092_v47 = vpop.permute.xlu1 %4091 }
 0x39d   : > { %v8849_v52 = vpop.f32.mrf.mxu1  ;;  %v3827_v11 = vcombine.low %v3818_v6, %v3825_v46  ;;  %v4157_v60 = vrot.slane %v8617_v38, %v8843_v63  ;;  %v8854_v59 = vsub.s32 %v4160_v13, %v9571_v25  ;;  %v4174_v39 = vadd.s32 4294967248, %v9526_v55  ;;  %v9580_v46 = vld [vmem:[#allocation15_spill] sm:$0xff] }
 0x39e   : > { %4771 = vst.msk [vmem:[%s8624_s16 + $0x58] sm:$0xff] %vm388_vm0, %v8849_v52  ;;  %v3834_v5 = vrot.slane %v3826_v18, %v7397_v9  ;;  %v4152_v8 = vsel %vm4151_vm4, %v4150_v49, %v4145_v24  ;;  %v8863_v20 = vsub.s32 %v4167_v4, %v9571_v25  ;;  %vm4179_vm8 = vcmask 458112   ;;  %v6294_v49 = vld [vmem:[%s6592_s17 + $0x18] sm:$0xff] }
 0x39f   : > { %v8865_v54 = vpop.f32.mrf.mxu1  ;;  %v3841_v38 = vrot.slane %v3827_v11, %v7397_v9  ;;  %v4159_v34 = vsel %vm4158_vm5, %v4157_v60, %v4152_v8  ;;  %v4164_v53 = vrot.slane %v8662_v42, %v8854_v59  ;;  %v8872_v35 = vsub.s32 %v4174_v39, %v9571_v25  ;;  %v6295_v11 = vld [vmem:[%s6592_s17 + $0x10] sm:$0xff] }
 0x3a0   : > { %4770 = vst.msk [vmem:[%s8624_s16 + $0x50] sm:$0xff] %vm388_vm0, %v8865_v54  ;;  %v4171_v27 = vrot.slane %v8694_v56, %v8863_v20  ;;  %v4181_v19 = vadd.s32 4294967240, %v9526_v55  ;;  %vm4186_vm9 = vcmask 523712   ;;  %v4188_v43 = vadd.s32 4294967232, %v9526_v55 }
 0x3a1   : > { %v3842_v62 = vcombine.low %v3834_v5, %v3841_v38  ;;  %v4166_v42 = vsel %vm4165_vm6, %v4164_v53, %v4159_v34  ;;  %v4178_v31 = vrot.slane %v8738_v61, %v8872_v35  ;;  %vm4193_vm10 = vcmask 589312   ;;  %v6292_v61 = vld [vmem:[%s6592_s17 + $0x8] sm:$0xff] }
 0x3a2   : > { %v4173_v24 = vsel %vm4172_vm7, %v4171_v27, %v4166_v42  ;;  %v8886_v40 = vsub.s32 %v4181_v19, %v9571_v25  ;;  %v8889_v56 = vsub.s32 %v4188_v43, %v9571_v25  ;;  %v4247_v12 = vrot.slane %v4089_v17, %v8787_v0  ;;  %v9582_v34 = vld [vmem:[#allocation13_spill] sm:$0xff]  ;;  %v9583_v27 = vld [vmem:[#allocation14_spill] sm:$0xff] }
 0x3a3   : > { %4121 = vperm.xlu0 %6260, %v3842_v62   ;;  %v4180_v26 = vsel %vm4179_vm8, %v4178_v31, %v4173_v24  ;;  %v6219_v16 = vpop.trf.xlu0  ;;  %v4251_v50 = vrot.slane %v4092_v47, %v8800_v48  ;;  %v5271_v23 = vsub.f32 %v8636_v58, %v6292_v61  ;;  %v5270_v10 = vsub.f32 %v8652_v41, %v6293_v1  ;;  %v9581_v41 = vld [vmem:[#allocation12_spill] sm:$0xff]  ;;  %v6296_v43 = vld [vmem:[%s6592_s17 + $0x28] sm:$0xff] }
 0x3a4   : > { %v6223_v45 = vunpack.i.h.bf16 %v6219_v16  ;;  %v4185_v14 = vrot.slane %v8778_v32, %v8886_v40  ;;  %v6220_v0 = vunpack.i.l.bf16 %v6219_v16  ;;  %v4192_v6 = vrot.slane %v8809_v33, %v8889_v56  ;;  %v9584_v1 = vld [vmem:[#allocation17_spill] sm:$0xff] }
 0x3a5   : > { %v8903_v17 = vsel %vm4144_vm1, %v4251_v50, %v4247_v12  ;;  %v5303_v13 = vmul.f32 %v9580_v46, %v5271_v23  ;;  %v5302_v18 = vmul.f32 %v9581_v41, %v5270_v10  ;;  %v5273_v4 = vsub.f32 %v8681_v29, %v6294_v49 }
 0x3a6   : > { %v8905_v48 = vpop.f32.mrf.mxu1  ;;  %v4187_v58 = vsel %vm4186_vm9, %v4185_v14, %v4180_v26  ;;  %5213 = vmatprep.mubr.f32.mxu1 %v6220_v0  ;;  %v5272_v60 = vsub.f32 %v8696_v44, %v6295_v11  ;;  %v5275_v47 = vsub.f32 %v8711_v37, %v6296_v43  ;;  %v6297_v44 = vld [vmem:[%s6592_s17 + $0x20] sm:$0xff]  ;;  %v6298_v0 = vld [vmem:[%s6592_s17 + $0x38] sm:$0xff]  ;;  %vm4960_vm11 = vcmask 516096  }
 0x3a7   : > { %4773 = vst.msk [vmem:[%s8624_s16 + $0x68] sm:$0xff] %vm388_vm0, %v8905_v48  ;;  %v6224_v32 = vpop.trf.xlu0  ;;  %v8916_v33 = vsel %vm4193_vm10, %v4192_v6, %v4187_v58  ;;  %5214 = vmatmul.mubr.f32.vlgmr.msra.gmra.mxu1 %v6223_v45  ;;  %v5336_v29 = vmul.f32 %v5303_v13, %v5303_v13  ;;  %v5335_v38 = vmul.f32 %v5302_v18, %v5302_v18  ;;  %v9585_v45 = vld [vmem:[#allocation16_spill] sm:$0xff]  ;;  %v6299_v18 = vld [vmem:[%s6592_s17 + $0x30] sm:$0xff] }
 0x3a8   : > { %v8920_v39 = vpop.f32.mrf.mxu1  ;;  %v6225_v5 = vunpack.i.l.bf16 %v6224_v32  ;;  %v6228_v8 = vunpack.i.h.bf16 %v6224_v32  ;;  %v5305_v53 = vmul.f32 %v9582_v34, %v5273_v4  ;;  %v5304_v19 = vmul.f32 %v9583_v27, %v5272_v60  ;;  %v6300_v34 = vld [vmem:[%s6592_s17 + $0x48] sm:$0xff]  ;;  %4961 = vst.msk [vmem:[%s9037_s23] sm:$0x1] %vm4960_vm11, %v9502_v28 }
 0x3a9   : > { %4772 = vst.msk [vmem:[%s8624_s16 + $0x60] sm:$0xff] %vm388_vm0, %v8920_v39  ;;  %v5274_v62 = vsub.f32 %v8723_v22, %v6297_v44  ;;  %v5368_v31 = vsel %vm388_vm0, %v5336_v29, 0.0  ;;  %v5367_v24 = vsel %vm388_vm0, %v5335_v38, 0.0  ;;  %v8939_v22 = vpop.permute.xlu1 %4094  ;;  %v5307_v10 = vmul.f32 %v9584_v1, %v5275_v47  ;;  %v9587_v29 = vld [vmem:[#allocation26_spill] sm:$0xff] }
 0x3aa   : > { %5218 = vmatprep.mubr.f32.mxu1 %v6225_v5  ;;  %v5338_v12 = vmul.f32 %v5305_v53, %v5305_v53  ;;  %v5337_v26 = vmul.f32 %v5304_v19, %v5304_v19  ;;  %v5369_v23 = vadd.f32 %v5368_v31, %v5367_v24  ;;  %v5277_v6 = vsub.f32 %v8749_v3, %v6298_v0  ;;  %v9586_v5 = vld [vmem:[#allocation23_spill] sm:$0xff]  ;;  %v6301_v19 = vld [vmem:[%s6592_s17 + $0x40] sm:$0xff] }
 0x3ab   : > { %v6229_v42 = vpop.trf.xlu0  ;;  %5219 = vmatmul.mubr.f32.gmra.mxu1 %v6228_v8  ;;  %v5306_v14 = vmul.f32 %v9585_v45, %v5274_v62  ;;  %v5276_v49 = vsub.f32 %v8760_v15, %v6299_v18  ;;  %v5340_v3 = vmul.f32 %v5307_v10, %v5307_v10  ;;  %v5279_v53 = vsub.f32 %v8794_v30, %v6300_v34  ;;  %v6302_v24 = vld [vmem:[%s6592_s17 + $0x58] sm:$0xff]  ;;  %v9590_v18 = vld [vmem:[#allocation36_spill] sm:$0xff] }
 0x3ac   : > { %v6230_v16 = vunpack.i.l.bf16 %v6229_v42  ;;  %v6233_v50 = vunpack.i.h.bf16 %v6229_v42  ;;  %v5370_v37 = vsel %vm388_vm0, %v5337_v26, 0.0  ;;  %v5372_v13 = vsel %vm388_vm0, %v5338_v12, 0.0 }
 0x3ad   : > { %v8933_v61 = vpop.f32.mrf.mxu1  ;;  %v5371_v41 = vadd.f32 %v5370_v37, %v5369_v23  ;;  %v5339_v60 = vmul.f32 %v5306_v14, %v5306_v14  ;;  %v5309_v8 = vmul.f32 %v9586_v5, %v5277_v6  ;;  %v5308_v38 = vmul.f32 %v9587_v29, %v5276_v49  ;;  %v8960_v62 = vpop.permute.xlu1 %4097  ;;  %v9589_v23 = vld [vmem:[#allocation32_spill] sm:$0xff]  ;;  %v6303_v14 = vld [vmem:[%s6592_s17 + $0x50] sm:$0xff] }
 0x3ae   : > { %4775 = vst.msk [vmem:[%s8624_s16 + $0x78] sm:$0xff] %vm388_vm0, %v8933_v61  ;;  %5223 = vmatprep.mubr.f32.mxu1 %v6230_v16  ;;  %v5278_v43 = vsub.f32 %v8811_v7, %v6301_v19  ;;  %v5281_v12 = vsub.f32 %v8849_v52, %v6302_v24  ;;  %v5376_v30 = vsel %vm388_vm0, %v5340_v3, 0.0  ;;  %v9588_v16 = vld [vmem:[#allocation27_spill] sm:$0xff]  ;;  %v5280_v0 = vsub.f32 %v8865_v54, %v6303_v14  ;;  %v6304_v3 = vld [vmem:[%s6592_s17 + $0x68] sm:$0xff] }
 0x3af   : > { %v8945_v58 = vpop.f32.mrf.mxu1  ;;  %v6234_v46 = vpop.trf.xlu0  ;;  %5224 = vmatmul.mubr.f32.gmra.mxu1 %v6233_v50  ;;  %v5373_v11 = vadd.f32 %v5372_v13, %v5371_v41  ;;  %v5374_v15 = vsel %vm388_vm0, %v5339_v60, 0.0  ;;  %v5341_v31 = vmul.f32 %v5308_v38, %v5308_v38  ;;  %v5342_v26 = vmul.f32 %v5309_v8, %v5309_v8  ;;  %v9593_v24 = vld [vmem:[#allocation39_spill] sm:$0xff] }
 0x3b0   : > { %4774 = vst.msk [vmem:[%s8624_s16 + $0x70] sm:$0xff] %vm388_vm0, %v8945_v58  ;;  %v6235_v4 = vunpack.i.l.bf16 %v6234_v46  ;;  %v6238_v32 = vunpack.i.h.bf16 %v6234_v46  ;;  %v5311_v50 = vmul.f32 %v9588_v16, %v5279_v53  ;;  %v5310_v7 = vmul.f32 %v9589_v23, %v5278_v43  ;;  %v6305_v53 = vld [vmem:[%s6592_s17 + $0x60] sm:$0xff] }
 0x3b1   : > { %v5375_v42 = vadd.f32 %v5374_v15, %v5373_v11  ;;  %v5378_v45 = vsel %vm388_vm0, %v5341_v31, 0.0  ;;  %v5313_v49 = vmul.f32 %v9590_v18, %v5281_v12  ;;  %v9591_v11 = vld [vmem:[#allocation38_spill] sm:$0xff]  ;;  %v5283_v5 = vsub.f32 %v8905_v48, %v6304_v3 }
 0x3b2   : > { %5228 = vmatprep.mubr.f32.mxu1 %v6235_v4  ;;  %v5343_v41 = vmul.f32 %v5310_v7, %v5310_v7  ;;  %v5344_v54 = vmul.f32 %v5311_v50, %v5311_v50  ;;  %v5312_v60 = vmul.f32 %v9591_v11, %v5280_v0  ;;  %v5068_v8 = vrot.slane %v8366_v21, 4 }
 0x3b3   : > { %v6239_v27 = vpop.trf.xlu0  ;;  %5229 = vmatmul.mubr.f32.gmra.mxu1 %v6238_v32  ;;  %v5377_v10 = vadd.f32 %v5376_v30, %v5375_v42  ;;  %v5380_v32 = vsel %vm388_vm0, %v5342_v26, 0.0  ;;  %v9592_v42 = vld [vmem:[#allocation40_spill] sm:$0xff]  ;;  %v6306_v30 = vld [vmem:[%s6592_s17 + $0x78] sm:$0xff] }
 0x3b4   : > { %v6240_v47 = vunpack.i.l.bf16 %v6239_v27  ;;  %v6243_v44 = vunpack.i.h.bf16 %v6239_v27  ;;  %v5382_v34 = vsel %vm388_vm0, %v5343_v41, 0.0  ;;  %v5282_v27 = vsub.f32 %v8920_v39, %v6305_v53  ;;  %v6307_v41 = vld [vmem:[%s6592_s17 + $0x70] sm:$0xff]  ;;  %v9596_v53 = vld [vmem:[#allocation44_spill] sm:$0xff] }
 0x3b5   : > { %v5379_v13 = vadd.f32 %v5378_v45, %v5377_v10  ;;  %v5384_v48 = vsel %vm388_vm0, %v5344_v54, 0.0  ;;  %v5315_v31 = vmul.f32 %v9592_v42, %v5283_v5  ;;  %v5285_v26 = vsub.f32 %v8933_v61, %v6306_v30 }
 0x3b6   : > { %5233 = vmatprep.mubr.f32.mxu1 %v6240_v47  ;;  %v8978_v4 = vpop.permute.xlu1 %4100  ;;  %v5346_v47 = vmul.f32 %v5313_v49, %v5313_v49  ;;  %v5314_v12 = vmul.f32 %v9593_v24, %v5282_v27  ;;  %v5069_v39 = vadd.f32 %v5068_v8, %v8366_v21  ;;  %v5284_v18 = vsub.f32 %v8945_v58, %v6307_v41  ;;  %v6308_v49 = vld [vmem:[%s6592_s17 + $0x88] sm:$0xff]  ;;  %v6310_v58 = vld [vmem:[%s6592_s17 + $0x98] sm:$0xff]  ;;  %v6311_v24 = vld [vmem:[%s6592_s17 + $0x90] sm:$0xff] }
 0x3b7   : > { %v8967_v37 = vpop.f32.mrf.mxu1  ;;  %v6244_v1 = vpop.trf.xlu0  ;;  %5234 = vmatmul.mubr.f32.gmra.mxu1 %v6243_v44  ;;  %v5381_v38 = vadd.f32 %v5380_v32, %v5379_v13  ;;  %v5345_v44 = vmul.f32 %v5312_v60, %v5312_v60  ;;  %v5348_v21 = vmul.f32 %v5315_v31, %v5315_v31  ;;  %v6309_v60 = vld [vmem:[%s6592_s17 + $0x80] sm:$0xff]  ;;  %v9595_v8 = vld [vmem:[#allocation41_spill] sm:$0xff] }
 0x3b8   : > { %4777 = vst.msk [vmem:[%s8624_s16 + $0x88] sm:$0xff] %vm388_vm0, %v8967_v37  ;;  %v6245_v52 = vunpack.i.l.bf16 %v6244_v1  ;;  %v6248_v6 = vunpack.i.h.bf16 %v6244_v1  ;;  %v5388_v61 = vsel %vm388_vm0, %v5346_v47, 0.0  ;;  %v5287_v32 = vsub.f32 %v8967_v37, %v6308_v49  ;;  %v9597_v47 = vld [vmem:[#allocation43_spill] sm:$0xff]  ;;  %v6313_v49 = vld [vmem:[%s6592_s17 + $0xa8] sm:$0xff] }
 0x3b9   : > { %v4681_v46 = vpop.f32.mrf.mxu1  ;;  %v5383_v43 = vadd.f32 %v5382_v34, %v5381_v38  ;;  %v5386_v7 = vsel %vm388_vm0, %v5345_v44, 0.0  ;;  %v5070_v5 = vrot.slane %v5069_v39, 2  ;;  %v5392_v37 = vsel %vm388_vm0, %v5348_v21, 0.0 }
 0x3ba   : > { %4776 = vst.msk [vmem:[%s8624_s16 + $0x80] sm:$0xff] %vm388_vm0, %v4681_v46  ;;  %5238 = vmatprep.mubr.f32.mxu1 %v6245_v52  ;;  %v5347_v52 = vmul.f32 %v5314_v12, %v5314_v12  ;;  %v5286_v3 = vsub.f32 %v4681_v46, %v6309_v60  ;;  %v5319_v46 = vmul.f32 %v9597_v47, %v5287_v32 }
 0x3bb   : > { %v6249_v29 = vpop.trf.xlu0  ;;  %5239 = vmatmul.mubr.f32.gmra.mxu1 %v6248_v6  ;;  %v5385_v23 = vadd.f32 %v5384_v48, %v5383_v43  ;;  %v9594_v6 = vld [vmem:[#allocation42_spill] sm:$0xff]  ;;  %v5071_v30 = vadd.f32 %v5070_v5, %v5069_v39 }
 0x3bc   : > { %v6250_v15 = vunpack.i.l.bf16 %v6249_v29  ;;  %v6253_v19 = vunpack.i.h.bf16 %v6249_v29  ;;  %v5317_v13 = vmul.f32 %v9594_v6, %v5285_v26  ;;  %v5390_v11 = vsel %vm388_vm0, %v5347_v52, 0.0 }
 0x3bd   : > { %v5387_v0 = vadd.f32 %v5386_v7, %v5385_v23  ;;  %v5316_v29 = vmul.f32 %v9595_v8, %v5284_v18  ;;  %v5318_v27 = vmul.f32 %v9596_v53, %v5286_v3 }
 0x3be   : > { %5243 = vmatprep.mubr.f32.mxu1 %v6250_v15  ;;  %v5350_v34 = vmul.f32 %v5317_v13, %v5317_v13  ;;  %v9600_v13 = vld [vmem:[#allocation47_spill] sm:$0xff] }
 0x3bf   : > { %v6084_v16 = vpop.f32.mrf.mxu1  ;;  %v6254_v50 = vpop.trf.xlu0  ;;  %5244 = vmatmul.mubr.f32.gmra.mxu1 %v6253_v19  ;;  %v5389_v54 = vadd.f32 %v5388_v61, %v5387_v0  ;;  %v5349_v43 = vmul.f32 %v5316_v29, %v5316_v29  ;;  %v5351_v48 = vmul.f32 %v5318_v27, %v5318_v27  ;;  %v9599_v61 = vld [vmem:[#allocation45_spill] sm:$0xff] }
 0x3c0   : > { %4779 = vst.msk [vmem:[%s8624_s16 + $0x98] sm:$0xff] %vm388_vm0, %v6084_v16  ;;  %v8997_v1 = vpop.permute.xlu1 %4103  ;;  %v6255_v10 = vunpack.i.l.bf16 %v6254_v50  ;;  %v6258_v45 = vunpack.i.h.bf16 %v6254_v50  ;;  %v5289_v15 = vsub.f32 %v6084_v16, %v6310_v58  ;;  %v5396_v26 = vsel %vm388_vm0, %v5350_v34, 0.0  ;;  %v9598_v50 = vld [vmem:[#allocation46_spill] sm:$0xff]  ;;  %v9601_v34 = vld [vmem:[#allocation48_spill] sm:$0xff] }
 0x3c1   : > { %v4691_v14 = vpop.f32.mrf.mxu1  ;;  %v5391_v38 = vadd.f32 %v5390_v11, %v5389_v54  ;;  %v5394_v31 = vsel %vm388_vm0, %v5349_v43, 0.0  ;;  %v5072_v54 = vrot.slane %v5071_v30, 1 }
 0x3c2   : > { %4778 = vst.msk [vmem:[%s8624_s16 + $0x90] sm:$0xff] %vm388_vm0, %v4691_v14  ;;  %5248 = vmatprep.mubr.f32.mxu1 %v6255_v10  ;;  %v5288_v12 = vsub.f32 %v4691_v14, %v6311_v24  ;;  %v5321_v23 = vmul.f32 %v9598_v50, %v5289_v15  ;;  %v5352_v10 = vmul.f32 %v5319_v46, %v5319_v46  ;;  %v6312_v14 = vld [vmem:[%s6592_s17 + $0xa0] sm:$0xff]  ;;  %v6314_v46 = vld [vmem:[%s6592_s17 + $0xb0] sm:$0xff]  ;;  %v9602_v24 = vld [vmem:[#allocation49_spill] sm:$0xff] }
 0x3c3   : > { %5249 = vmatmul.mubr.f32.gmra.mxu1 %v6258_v45  ;;  %v5393_v44 = vadd.f32 %v5392_v37, %v5391_v38  ;;  %v5398_v45 = vsel %vm388_vm0, %v5351_v48, 0.0  ;;  %v5073_v37 = vadd.f32 %v5072_v54, %v5071_v30  ;;  %v9604_v54 = vld [vmem:[#allocation51_spill] sm:$0xff] }
 0x3c4   : > { %v5320_v0 = vmul.f32 %v9599_v61, %v5288_v12  ;;  %v5400_v11 = vsel %vm388_vm0, %v5352_v10, 0.0  ;;  %v5354_v60 = vmul.f32 %v5321_v23, %v5321_v23  ;;  %v9603_v10 = vld [vmem:[#allocation50_spill] sm:$0xff] }
 0x3c5   : > { %v5395_v16 = vadd.f32 %v5394_v31, %v5393_v44 }
 0x3c6   : > { %v9012_v19 = vpop.permute.xlu1 %4106  ;;  %v5353_v39 = vmul.f32 %v5320_v0, %v5320_v0  ;;  %v5404_v58 = vsel %vm388_vm0, %v5354_v60, 0.0 }
 0x3c7   : > { %v5397_v21 = vadd.f32 %v5396_v26, %v5395_v16  ;;  %v5004_v26 = vld [vmem:[%s9037_s23] sm:$0x1] }
 0x3c8   : > { %v6087_v42 = vpop.f32.mrf.mxu1  ;;  %v5402_v3 = vsel %vm388_vm0, %v5353_v39, 0.0  ;;  %v5074_v50 = vadd.f32 %v5073_v37, %v5004_v26 }
 0x3c9   : > { %4781 = vst.msk [vmem:[%s8624_s16 + $0xa8] sm:$0xff] %vm388_vm0, %v6087_v42  ;;  %v5399_v18 = vadd.f32 %v5398_v45, %v5397_v21  ;;  %v5291_v32 = vsub.f32 %v6087_v42, %v6313_v49  ;;  %v6315_v42 = vld [vmem:[%s6592_s17 + $0xb8] sm:$0xff]  ;;  %v6316_v21 = vld [vmem:[%s6592_s17 + $0xc0] sm:$0xff] }
 0x3ca   : > { %v4701_v7 = vpop.f32.mrf.mxu1  ;;  %5076 = vst.msk [vmem:[%s9037_s23] sm:$0x1] %vm4960_vm11, %v5074_v50 }
 0x3cb   : > { %4780 = vst.msk [vmem:[%s8624_s16 + $0xa0] sm:$0xff] %vm388_vm0, %v4701_v7  ;;  %v5290_v52 = vsub.f32 %v4701_v7, %v6312_v14  ;;  %v9030_v6 = vpop.permute.xlu1 %4109  ;;  %v5401_v5 = vadd.f32 %v5400_v11, %v5399_v18  ;;  %v5323_v53 = vmul.f32 %v9601_v34, %v5291_v32 }
 0x3cd   : > { %v5322_v41 = vmul.f32 %v9600_v13, %v5290_v52  ;;  %v5403_v38 = vadd.f32 %v5402_v3, %v5401_v5  ;;  %v5356_v48 = vmul.f32 %v5323_v53, %v5323_v53  ;;  %v9605_v5 = vld [vmem:[#allocation52_spill] sm:$0xff] }
 0x3cf   : > { %v5355_v8 = vmul.f32 %v5322_v41, %v5322_v41  ;;  %v5405_v43 = vadd.f32 %v5404_v58, %v5403_v38  ;;  %v5408_v7 = vsel %vm388_vm0, %v5356_v48, 0.0  ;;  %v6317_v41 = vld [vmem:[%s6592_s17 + $0xc8] sm:$0xff] }
 0x3d0   : > { %v9606_v48 = vld [vmem:[#allocation53_spill] sm:$0xff] }
 0x3d1   : > { %v6090_v29 = vpop.f32.mrf.mxu1  ;;  %v9045_v27 = vpop.permute.xlu1 %4112  ;;  %v5406_v47 = vsel %vm388_vm0, %v5355_v8, 0.0 }
 0x3d2   : > { %4783 = vst.msk [vmem:[%s8624_s16 + $0xb8] sm:$0xff] %vm388_vm0, %v6090_v29  ;;  %v5293_v31 = vsub.f32 %v6090_v29, %v6315_v42  ;;  %v5407_v16 = vadd.f32 %v5406_v47, %v5405_v43  ;;  %v6319_v47 = vld [vmem:[%s6592_s17 + $0xd8] sm:$0xff] }
 0x3d3   : > { %v4711_v15 = vpop.f32.mrf.mxu1 }
 0x3d4   : > { %4782 = vst.msk [vmem:[%s8624_s16 + $0xb0] sm:$0xff] %vm388_vm0, %v4711_v15  ;;  %v5292_v44 = vsub.f32 %v4711_v15, %v6314_v46  ;;  %v5325_v45 = vmul.f32 %v9603_v10, %v5293_v31  ;;  %v5409_v0 = vadd.f32 %v5408_v7, %v5407_v16  ;;  %v6318_v15 = vld [vmem:[%s6592_s17 + $0xd0] sm:$0xff] }
 0x3d6   : > { %v5324_v12 = vmul.f32 %v9602_v24, %v5292_v44  ;;  %v9055_v23 = vpop.permute.xlu1 %4067  ;;  %v5358_v13 = vmul.f32 %v5325_v45, %v5325_v45 }
 0x3d8   : > { %v5357_v30 = vmul.f32 %v5324_v12, %v5324_v12  ;;  %v5412_v3 = vsel %vm388_vm0, %v5358_v13, 0.0  ;;  %v9607_v12 = vld [vmem:[#allocation54_spill] sm:$0xff] }
 0x3da   : > { %v6093_v61 = vpop.f32.mrf.mxu1  ;;  %v5410_v14 = vsel %vm388_vm0, %v5357_v30, 0.0 }
 0x3db   : > { %4785 = vst.msk [vmem:[%s8624_s16 + $0xc8] sm:$0xff] %vm388_vm0, %v6093_v61  ;;  %v5295_v18 = vsub.f32 %v6093_v61, %v6317_v41  ;;  %v5411_v32 = vadd.f32 %v5410_v14, %v5409_v0  ;;  %v6320_v61 = vld [vmem:[%s6592_s17 + $0xe8] sm:$0xff]  ;;  %v6321_v14 = vld [vmem:[%s6592_s17 + $0xe0] sm:$0xff] }
 0x3dc   : > { %v4721_v52 = vpop.f32.mrf.mxu1  ;;  %v9068_v49 = vpop.permute.xlu1 %4115 }
 0x3dd   : > { %4784 = vst.msk [vmem:[%s8624_s16 + $0xc0] sm:$0xff] %vm388_vm0, %v4721_v52  ;;  %v5294_v39 = vsub.f32 %v4721_v52, %v6316_v21  ;;  %v5327_v8 = vmul.f32 %v9605_v5, %v5295_v18  ;;  %v5413_v38 = vadd.f32 %v5412_v3, %v5411_v32 }
 0x3df   : > { %v5326_v11 = vmul.f32 %v9604_v54, %v5294_v39  ;;  %v5360_v43 = vmul.f32 %v5327_v8, %v5327_v8  ;;  %v9608_v39 = vld [vmem:[#allocation19_spill] sm:$0xff] }
 0x3e0   : > { %v6322_v8 = vld [vmem:[%s6592_s17 + $0xf8] sm:$0xff] }
 0x3e1   : > { %v5359_v60 = vmul.f32 %v5326_v11, %v5326_v11  ;;  %v9076_v58 = vpop.permute.xlu1 %4070  ;;  %v5416_v24 = vsel %vm388_vm0, %v5360_v43, 0.0 }
 0x3e2   : > { %v6096_v29 = vpop.f32.mrf.mxu1 }
 0x3e3   : > { %4787 = vst.msk [vmem:[%s8624_s16 + $0xd8] sm:$0xff] %vm388_vm0, %v6096_v29  ;;  %v5414_v34 = vsel %vm388_vm0, %v5359_v60, 0.0  ;;  %v5297_v46 = vsub.f32 %v6096_v29, %v6319_v47 }
 0x3e4   : > { %v4731_v53 = vpop.f32.mrf.mxu1  ;;  %v5415_v44 = vadd.f32 %v5414_v34, %v5413_v38 }
 0x3e5   : > { %4786 = vst.msk [vmem:[%s8624_s16 + $0xd0] sm:$0xff] %vm388_vm0, %v4731_v53  ;;  %v5296_v37 = vsub.f32 %v4731_v53, %v6318_v15  ;;  %v5329_v26 = vmul.f32 %v9607_v12, %v5297_v46 }
 0x3e6   : > { %v5417_v50 = vadd.f32 %v5416_v24, %v5415_v44 }
 0x3e7   : > { %v5328_v42 = vmul.f32 %v9606_v48, %v5296_v37  ;;  %v9086_v16 = vpop.permute.xlu1 %4118  ;;  %v5362_v45 = vmul.f32 %v5329_v26, %v5329_v26  ;;  %v6323_v37 = vld [vmem:[%s6592_s17 + $0xf0] sm:$0xff]  ;;  %s9152_s17 = sand.u32 1, %s5680_s30   ;;  %s6461_s30 = smov [#allocation4]  }
 0x3e8   : > { %s6328_s0 = sshll.u32 %s6461_s30, 4  ;;  %s6329_s0 = int_to_ptr.vmem [resolvable:$false] %s6328_s0 }
 0x3e9   : > { %v5361_v31 = vmul.f32 %v5328_v42, %v5328_v42  ;;  %v5420_v18 = vsel %vm388_vm0, %v5362_v45, 0.0  ;;  %s6330_s1 = scalar_lea.vmem %s6329_s0, 32  ;;  %p6331_p2 = scmp.lt.s32.totalorder %s5493_s22, %s6329_s0 }
 0x3ea   : > { %p6332_p3 = scmp.lt.s32.totalorder %s6330_s1, %s6324_s8 }
 0x3eb   : > { %v6099_v30 = vpop.f32.mrf.mxu1  ;;  %v5418_v7 = vsel %vm388_vm0, %v5361_v31, 0.0 }
 0x3ec   : > { %4789 = vst.msk [vmem:[%s8624_s16 + $0xe8] sm:$0xff] %vm388_vm0, %v6099_v30  ;;  %v5299_v0 = vsub.f32 %v6099_v30, %v6320_v61  ;;  %v5419_v21 = vadd.f32 %v5418_v7, %v5417_v50  ;;  %v9126_v41 = vpop.permute.xlu1 %4073  ;;  %p6333_p5 = por %p6332_p3, %p6331_p2 }
 0x3ed   : > { %v4741_v10 = vpop.f32.mrf.mxu1 }
 0x3ee   : > { %4788 = vst.msk [vmem:[%s8624_s16 + $0xe0] sm:$0xff] %vm388_vm0, %v4741_v10  ;;  %v5298_v52 = vsub.f32 %v4741_v10, %v6321_v14  ;;  %v5331_v32 = vmul.f32 %v8291_v51, %v5299_v0  ;;  %v5421_v11 = vadd.f32 %v5420_v18, %v5419_v21  ;;  %p6334_p6 = pnand %p6333_p5, %p6327_p1 }
 0x3f0   : > { %v5330_v13 = vmul.f32 %v9608_v39, %v5298_v52  ;;  %v5364_v5 = vmul.f32 %v5331_v32, %v5331_v32 }
 0x3f1   : > { %v9134_v38 = vpop.permute.xlu1 %4076 }
 0x3f2   : > { %v5363_v54 = vmul.f32 %v5330_v13, %v5330_v13  ;;  %v5424_v43 = vsel %vm388_vm0, %v5364_v5, 0.0 }
 0x3f4   : > { %v5422_v60 = vsel %vm388_vm0, %v5363_v54, 0.0 }
 0x3f5   : > { %v6102_v3 = vpop.f32.mrf.mxu1  ;;  %v5423_v34 = vadd.f32 %v5422_v60, %v5421_v11 }
 0x3f6   : > { %4791 = vst.msk [vmem:[%s8624_s16 + $0xf8] sm:$0xff] %vm388_vm0, %v6102_v3  ;;  %v5301_v29 = vsub.f32 %v6102_v3, %v6322_v8 }
 0x3f7   : > { %v4751_v53 = vpop.f32.mrf.mxu1  ;;  %v5425_v46 = vadd.f32 %v5424_v43, %v5423_v34  ;;  %v9142_v42 = vpop.permute.xlu1 %4124 }
 0x3f8   : > { %v5333_v15 = vmul.f32 %v8343_v2, %v5301_v29  ;;  %4790 = vst.msk [vmem:[%s8624_s16 + $0xf0] sm:$0xff] %vm388_vm0, %v4751_v53  ;;  %v5300_v51 = vsub.f32 %v4751_v53, %v6323_v37 }
 0x3fa   : > { %v5332_v47 = vmul.f32 %v8335_v57, %v5300_v51  ;;  %v5366_v44 = vmul.f32 %v5333_v15, %v5333_v15 }
 0x3fc   : > { %v5365_v48 = vmul.f32 %v5332_v47, %v5332_v47  ;;  %v5428_v24 = vsel %vm388_vm0, %v5366_v44, 0.0  ;;  %v9146_v26 = vpop.permute.xlu1 %4079 }
 0x3fe   : > { %v5426_v31 = vsel %vm388_vm0, %v5365_v48, 0.0 }
 0x3ff   : > { %v5427_v2 = vadd.f32 %v5426_v31, %v5425_v46 }
 0x401   : > { %v5429_v12 = vadd.f32 %v5428_v24, %v5427_v2  ;;  %v9148_v7 = vpop.permute.xlu1 %4127 }
 0x403   : > { %v5430_v50 = vrot.slane %v5429_v12, 4 }
 0x405   : > { %v5431_v30 = vadd.f32 %v5430_v50, %v5429_v12 }
 0x407   : > { %v5432_v57 = vrot.slane %v5431_v30, 2  ;;  %v9163_v10 = vpop.permute.xlu1 %4082 }
 0x409   : > { %v5433_v45 = vadd.f32 %v5432_v57, %v5431_v30 }
 0x40a   : > { %6337 = shalt.err (!%p6334_p6)
}
 0x40b   : > { %s6338_s23 = scalar_lea.hbm %s9160_s21, 16  ;;  %s6342_s30 = scalar_lea.hbm %s9384_s5, 32 }
 0x40c   : > { %p6339_p7 = scmp.ne.s32.totalorder %s9160_s21, %s6338_s23  ;;  %p6343_p11 = scmp.lt.s32.totalorder %s9160_s21, %s9384_s5 }
 0x40d   : > { %p6344_p12 = scmp.lt.s32.totalorder %s6342_s30, %s6338_s23 }
 0x40e   : > { %p6340_p9 = pnand %p6339_p7, %p6546_p4 }
 0x40f   : > { %p6345_p13 = por %p6344_p12, %p6343_p11 }
 0x410   : > { %p6341_p10 = pneg %p6340_p9 }
 0x412   : > { %p6346_p0 = pnand %p6345_p13, %p6341_p10 }
 0x414   : > { %6349 = shalt.err (!%p6346_p0)
}
 0x415   : > { %s9609_s0 = scalar_lea.sflag [#allocation5], %s9152_s17  ;;  %vm4970_vm12 = vcmask 253952   ;;  %v4256_v61 = vrot.slane %v8939_v22, %v8839_v36  ;;  %v4261_v0 = vrot.slane %v8960_v62, %v8843_v63  ;;  %v4195_v14 = vadd.s32 4294967224, %v9526_v55  ;;  %s9190_s1 = scalar_lea.vmem [#allocation6], %s9021_s20  ;;  %v9196_v39 = vpop.permute.xlu1 %4130 }
 0x416   : > { %6120 = dma.vmem_to_hbm [thread:$0]  (%p6546_p4), %s5493_s22, 16, %s9160_s21, %s9609_s0   ;;  %v5434_v52 = vrot.slane %v5433_v45, 1  ;;  %4971 = vst.msk [vmem:[%s9190_s1] sm:$0x1] %vm4970_vm12, %v9502_v28  ;;  %v4202_v21 = vadd.s32 4294967216, %v9526_v55  ;;  %v4266_v36 = vrot.slane %v8978_v4, %v8854_v59  ;;  %v4209_v22 = vadd.s32 4294967208, %v9526_v55 }
 0x417   : > { %v4257_v63 = vsel %vm4151_vm4, %v4256_v61, %v8903_v17  ;;  %v4271_v62 = vrot.slane %v8997_v1, %v8863_v20  ;;  %vm4200_vm13 = vcmask 654912   ;;  %v4216_v13 = vadd.s32 4294967200, %v9526_v55  ;;  %s5508_s8 = sshll.u32 %s9190_s1, 4  ;;  %s9610_s15 = sshll.u32 %s6448_s27, 4  ;;  %s9248_s8 = int_to_ptr.vmem [resolvable:$true] %s5508_s8 }
 0x418   : > { %v4262_v28 = vsel %vm4158_vm5, %v4261_v0, %v4257_v63  ;;  %v9208_v18 = vsub.s32 %v4195_v14, %v9571_v25  ;;  %v4223_v32 = vadd.s32 4294967192, %v9526_v55  ;;  %v5435_v59 = vadd.f32 %v5434_v52, %v5433_v45  ;;  %s9246_s10 = scalar_lea.hbm %s9386_s7, %s9610_s15  ;;  %s6350_s27 = scalar_lea.vmem %s9248_s8, 16 }
 0x419   : > { %v4276_v4 = vrot.slane %v9012_v19, %v8872_v35  ;;  %v9214_v17 = vsub.s32 %v4202_v21, %v9571_v25  ;;  %vm4207_vm14 = vcmask 720512   ;;  %v4230_v20 = vadd.s32 4294967184, %v9526_v55  ;;  %v9231_v5 = vpop.permute.xlu1 %4085  ;;  %p6351_p1 = scmp.ne.s32.totalorder %s9248_s8, %s6350_s27  ;;  %s6462_s23 = smov [#allocation6]  }
 0x41a   : > { %v4267_v1 = vsel %vm4165_vm6, %v4266_v36, %v4262_v28  ;;  %v4281_v54 = vrot.slane %v9030_v6, %v8886_v40  ;;  %v9222_v11 = vsub.s32 %v4209_v22, %v9571_v25  ;;  %v4237_v60 = vadd.s32 4294967176, %v9526_v55  ;;  %s6354_s16 = sshll.u32 %s6462_s23, 4  ;;  %s6355_s16 = int_to_ptr.vmem [resolvable:$false] %s6354_s16 }
 0x41b   : > { %v4272_v35 = vsel %vm4172_vm7, %v4271_v62, %v4267_v1  ;;  %v4286_v19 = vrot.slane %v9045_v27, %v8889_v56  ;;  %vm4214_vm15 = vcmask 786112   ;;  %v9229_v3 = vsub.s32 %v4216_v13, %v9571_v25  ;;  %p6352_p2 = pnand %p6351_p1, %p6546_p4  ;;  %s6356_s18 = scalar_lea.vmem %s6355_s16, 32 }
 0x41c   : > { %v4199_v40 = vrot.slane %v9055_v23, %v9208_v18  ;;  %v4291_v6 = vrot.slane %v9068_v49, %v9208_v18  ;;  %v9239_v55 = vsub.s32 %v4223_v32, %v9571_v25  ;;  %v4277_v27 = vsel %vm4179_vm8, %v4276_v4, %v4272_v35  ;;  %p6357_p5 = scmp.lt.s32.totalorder %s9248_s8, %s6355_s16  ;;  %p6358_p6 = scmp.lt.s32.totalorder %s6356_s18, %s6350_s27 }
 0x41d   : > { %v5334_v8 = vld [vmem:[%s9190_s1] sm:$0x1]  ;;  %v4206_v23 = vrot.slane %v9076_v58, %v9214_v17  ;;  %v4296_v49 = vrot.slane %v9086_v16, %v9214_v17  ;;  %v4233_v29 = vsub.s32 %v4230_v20, %v9571_v25  ;;  %v4282_v34 = vsel %vm4186_vm9, %v4281_v54, %v4277_v27  ;;  %p6353_p3 = pneg %p6352_p2 }
 0x41e   : > { %v5436_v56 = vadd.f32 %v5435_v59, %v5334_v8  ;;  %v4213_v53 = vrot.slane %v9126_v41, %v9222_v11  ;;  %vm4221_vm2 = vcmask 851712   ;;  %v4240_v15 = vsub.s32 %v4237_v60, %v9571_v25  ;;  %v4122_v16 = vpop.permute.xlu0 %4121  ;;  %p6359_p7 = por %p6358_p6, %p6357_p5 }
 0x41f   : > { %v4287_v37 = vsel %vm4193_vm10, %v4286_v19, %v4282_v34  ;;  %v4220_v58 = vrot.slane %v9134_v38, %v9229_v3  ;;  %vm4228_vm3 = vcmask 917312   ;;  %vm4235_vm1 = vcmask 982912  }
 0x420   : > { %5438 = vst.msk [vmem:[%s9190_s1] sm:$0x1] %vm4970_vm12, %v5436_v56  ;;  %p6360_p9 = pnand %p6359_p7, %p6353_p3 }
 0x422   : > { %6363 = shalt.err (!%p6360_p9)
}
 0x423   : > { %s6364_s30 = scalar_lea.hbm %s9246_s10, 16  ;;  %s6368_s15 = scalar_lea.hbm %s9386_s7, 32 }
 0x424   : > { %p6365_p10 = scmp.ne.s32.totalorder %s9246_s10, %s6364_s30  ;;  %p6369_p13 = scmp.lt.s32.totalorder %s9246_s10, %s9386_s7 }
 0x425   : > { %p6370_p0 = scmp.lt.s32.totalorder %s6368_s15, %s6364_s30 }
 0x426   : > { %p6366_p11 = pnand %p6365_p10, %p6546_p4 }
 0x427   : > { %p6371_p1 = por %p6370_p0, %p6369_p13 }
 0x428   : > { %p6367_p12 = pneg %p6366_p11 }
 0x42a   : > { %p6372_p2 = pnand %p6371_p1, %p6367_p12 }
 0x42c   : > { %6375 = shalt.err (!%p6372_p2)
}
 0x42d   : > { %s9611_s27 = scalar_lea.sflag [#allocation5], %s9152_s17  ;;  %v4201_v25 = vsel %vm4200_vm13, %v4199_v40, %v8916_v33  ;;  %v4292_v41 = vsel %vm4200_vm13, %v4291_v6, %v4287_v37  ;;  %v4227_v38 = vrot.slane %v9146_v26, %v9239_v55  ;;  %v4301_v51 = vrot.slane %v4122_v16, %v9222_v11  ;;  %v4134_v48 = vpop.permute.xlu1 %4133  ;;  %s5685_s17 = sshll.u32 %s9021_s20, 1 }
 0x42e   : > { %6121 = dma.vmem_to_hbm [thread:$0]  (%p6546_p4), %s9248_s8, 16, %s9246_s10, %s9611_s27   ;;  %v4208_v43 = vsel %vm4207_vm14, %v4206_v23, %v4201_v25  ;;  %v4297_v47 = vsel %vm4207_vm14, %v4296_v49, %v4292_v41  ;;  %v4306_v46 = vrot.slane %v9142_v42, %v9229_v3  ;;  %v4234_v44 = vrot.slane %v9163_v10, %v4233_v29 }
 0x42f   : > { %v4215_v33 = vsel %vm4214_vm15, %v4213_v53, %v4208_v43  ;;  %v4311_v31 = vrot.slane %v9148_v7, %v9239_v55  ;;  %v4241_v2 = vrot.slane %v9231_v5, %v4240_v15  ;;  %v4302_v24 = vsel %vm4214_vm15, %v4301_v51, %v4297_v47  ;;  %s305_s8 = scalar_lea.vmem [#allocation2], %s5685_s17  ;;  %s5477_s18 = scalar_lea.hbm %s9383_s4, %s6570_s19 }
 0x430   : > { %v4222_v12 = vsel %vm4221_vm2, %v4220_v58, %v4215_v33  ;;  %v4316_v26 = vrot.slane %v9196_v39, %v4233_v29  ;;  %vm4242_vm4 = vcmask 1048512   ;;  %v4307_v42 = vsel %vm4221_vm2, %v4306_v46, %v4302_v24  ;;  %s5479_s10 = sshll.u32 %s305_s8, 4  ;;  %s5446_s30 = scalar_lea.sflag [#allocation3], %s9021_s20  ;;  %s5480_s10 = int_to_ptr.vmem [resolvable:$true] %s5479_s10 }
 0x431   : > { %v4229_v50 = vsel %vm4228_vm3, %v4227_v38, %v4222_v12  ;;  %v4321_v30 = vrot.slane %v4134_v48, %v4240_v15  ;;  %v4312_v57 = vsel %vm4228_vm3, %v4311_v31, %v4307_v42  ;;  %v9612_v52 = vlaneseq  ;;  %s6376_s0 = scalar_lea.vmem %s5480_s10, 32  ;;  %s6463_s1 = smov [#allocation2]  }
 0x432   : > { %v4236_v7 = vsel %vm4235_vm1, %v4234_v44, %v4229_v50  ;;  %v4317_v10 = vsel %vm4235_vm1, %v4316_v26, %v4312_v57  ;;  %p6377_p3 = scmp.ne.s32.totalorder %s5480_s10, %s6376_s0  ;;  %s6380_s15 = sshll.u32 %s6463_s1, 4  ;;  %s6381_s15 = int_to_ptr.vmem [resolvable:$false] %s6380_s15 }
 0x433   : > { %v4243_v45 = vsel %vm4242_vm4, %v4241_v2, %v4236_v7  ;;  %v4322_v61 = vsel %vm4242_vm4, %v4321_v30, %v4317_v10  ;;  %vm4340_vm5 = vcmp.lt.s32.totalorder %v9612_v52, 256  ;;  %s6382_s21 = scalar_lea.vmem %s6381_s15, 64  ;;  %p6383_p7 = scmp.lt.s32.totalorder %s5480_s10, %s6381_s15 }
 0x434   : > { %v4323_v0 = vcombine.low %v4243_v45, %v4322_v61  ;;  %p6378_p5 = pnand %p6377_p3, %p6546_p4  ;;  %p6384_p9 = scmp.lt.s32.totalorder %s6382_s21, %s6376_s0 }
 0x436   : > { %v4330_v14 = vrot.slane %v4323_v0, %v7397_v9  ;;  %p6379_p6 = pneg %p6378_p5  ;;  %p6385_p10 = por %p6384_p9, %p6383_p7 }
 0x438   : > { %v4337_v21 = vrot.slane %v4330_v14, %v7397_v9  ;;  %p6386_p11 = pnand %p6385_p10, %p6379_p6 }
 0x43a   : > { %4342 = vst.msk [vmem:[%s305_s8] sm:$0x3] %vm4340_vm5, %v4337_v21 }
 0x43b   : > { %6389 = shalt.err (!%p6386_p11)
}
 0x43c   : > { %s6390_s22 = scalar_lea.hbm %s5477_s18, 32  ;;  %s6394_s27 = scalar_lea.hbm %s9383_s4, 64 }
 0x43d   : > { %p6391_p12 = scmp.ne.s32.totalorder %s5477_s18, %s6390_s22  ;;  %p6395_p1 = scmp.lt.s32.totalorder %s5477_s18, %s9383_s4 }
 0x43e   : > { %p6396_p2 = scmp.lt.s32.totalorder %s6394_s27, %s6390_s22 }
 0x43f   : > { %p6392_p13 = pnand %p6391_p12, %p6546_p4 }
 0x440   : > { %p6397_p3 = por %p6396_p2, %p6395_p1 }
 0x441   : > { %p6393_p0 = pneg %p6392_p13 }
 0x443   : > { %p6398_p5 = pnand %p6397_p3, %p6393_p0 }
 0x445   : > { %6401 = shalt.err (!%p6398_p5)
}
 0x446   : > { %6119 = dma.vmem_to_hbm [thread:$0]  (%p6546_p4), %s5480_s10, 32, %s5477_s18, %s5446_s30   ;;  %v5077_v39 = vld [vmem:[%s9099_s12] sm:$0xff]  ;;  %v5078_v13 = vld [vmem:[%s9099_s12 + $0x8] sm:$0xff]  ;;  %v5079_v4 = vld [vmem:[%s9099_s12 + $0x10] sm:$0xff] }
 0x447   : > { %v5080_v11 = vld [vmem:[%s9099_s12 + $0x18] sm:$0xff]  ;;  %v5081_v5 = vld [vmem:[%s9099_s12 + $0x20] sm:$0xff]  ;;  %v5082_v56 = vld [vmem:[%s9099_s12 + $0x28] sm:$0xff] }
 0x448   : > { %v5083_v34 = vld [vmem:[%s9099_s12 + $0x30] sm:$0xff]  ;;  %v5084_v16 = vld [vmem:[%s9099_s12 + $0x38] sm:$0xff] }
 0x467   : > { %v5951_v9 = vpop.f32.mrf.mxu1 }
 0x469   : > { %v5952_v36 = vpop.f32.mrf.mxu1 }
 0x46a   : > { %v5953_v22 = vadd.f32 %v5952_v36, %v5951_v9 }
 0x46b   : > { %v5954_v63 = vpop.f32.mrf.mxu1 }
 0x46c   : > { %v5254_v62 = vadd.f32 %v5953_v22, %v5077_v39 }
 0x46d   : > { %v5955_v28 = vpop.f32.mrf.mxu1 }
 0x46e   : > { %5262 = vst.msk [vmem:[%s9099_s12] sm:$0xff] %vm388_vm0, %v5254_v62  ;;  %v5956_v18 = vadd.f32 %v5955_v28, %v5954_v63 }
 0x46f   : > { %v5957_v32 = vpop.f32.mrf.mxu1 }
 0x470   : > { %v5255_v59 = vadd.f32 %v5956_v18, %v5078_v13 }
 0x471   : > { %v5958_v17 = vpop.f32.mrf.mxu1 }
 0x472   : > { %5263 = vst.msk [vmem:[%s9099_s12 + $0x8] sm:$0xff] %vm388_vm0, %v5255_v59  ;;  %v5959_v20 = vadd.f32 %v5958_v17, %v5957_v32 }
 0x473   : > { %v5960_v1 = vpop.f32.mrf.mxu1 }
 0x474   : > { %v5256_v54 = vadd.f32 %v5959_v20, %v5079_v4 }
 0x475   : > { %v5961_v60 = vpop.f32.mrf.mxu1 }
 0x476   : > { %5264 = vst.msk [vmem:[%s9099_s12 + $0x10] sm:$0xff] %vm388_vm0, %v5256_v54  ;;  %v5962_v35 = vadd.f32 %v5961_v60, %v5960_v1 }
 0x477   : > { %v5963_v19 = vpop.f32.mrf.mxu1 }
 0x478   : > { %v5257_v3 = vadd.f32 %v5962_v35, %v5080_v11 }
 0x479   : > { %v5964_v8 = vpop.f32.mrf.mxu1 }
 0x47a   : > { %5265 = vst.msk [vmem:[%s9099_s12 + $0x18] sm:$0xff] %vm388_vm0, %v5257_v3  ;;  %v5965_v40 = vadd.f32 %v5964_v8, %v5963_v19 }
 0x47b   : > { %v5966_v6 = vpop.f32.mrf.mxu1 }
 0x47c   : > { %v5258_v55 = vadd.f32 %v5965_v40, %v5081_v5 }
 0x47d   : > { %v5967_v27 = vpop.f32.mrf.mxu1 }
 0x47e   : > { %5266 = vst.msk [vmem:[%s9099_s12 + $0x20] sm:$0xff] %vm388_vm0, %v5258_v55  ;;  %v5968_v23 = vadd.f32 %v5967_v27, %v5966_v6 }
 0x47f   : > { %v5969_v49 = vpop.f32.mrf.mxu1 }
 0x480   : > { %v5259_v29 = vadd.f32 %v5968_v23, %v5082_v56 }
 0x481   : > { %v5970_v53 = vpop.f32.mrf.mxu1 }
 0x482   : > { %5267 = vst.msk [vmem:[%s9099_s12 + $0x28] sm:$0xff] %vm388_vm0, %v5259_v29  ;;  %v5971_v15 = vadd.f32 %v5970_v53, %v5969_v49 }
 0x483   : > { %v5972_v37 = vpop.f32.mrf.mxu1 }
 0x484   : > { %v5260_v58 = vadd.f32 %v5971_v15, %v5083_v34 }
 0x485   : > { %v5973_v25 = vpop.f32.mrf.mxu1 }
 0x486   : > { %5268 = vst.msk [vmem:[%s9099_s12 + $0x30] sm:$0xff] %vm388_vm0, %v5260_v58  ;;  %v5974_v41 = vadd.f32 %v5973_v25, %v5972_v37 }
 0x488   : > { %v5261_v38 = vadd.f32 %v5974_v41, %v5084_v16 }
 0x48a   : > { %5269 = vst.msk [vmem:[%s9099_s12 + $0x38] sm:$0xff] %vm388_vm0, %v5261_v38 }
 0x48b PF: > { %p6135_p4 = scmp.ge.s32.totalorder %s6456_s29, 2  ;;  %s5529_s11 = sand.u32 1, %s6436_s24  }
 0x48c   : > { %s5530_s10 = scalar_lea.sflag [#allocation3], %s5529_s11 }
 0x48d   : > { %p6126_p6 = pnand %p6135_p4, %p6555_p8 }
 0x48f   : > { %p6127_p7 = pneg %p6126_p6 }
 0x491   : > { %6427 = dma.done.wait (%p6127_p7), %s5530_s10, 32  }
 0x492   : > { %6429 = vsyncadd (%p6127_p7), %s5530_s10, 4294967264  ;;  %s9613_s23 = sadd.s32 4294967294, %s6456_s29  }
 0x493   : > { %s5538_s16 = sand.u32 1, %s9613_s23  }
 0x494   : > { %s5539_s18 = scalar_lea.sflag [#allocation5], %s5538_s16 }
 0x495   : > { %6431 = dma.done.wait (%p6127_p7), %s5539_s18, 32  }
 0x496   : > { %6433 = vsyncadd (%p6127_p7), %s5539_s18, 4294967264  ;;  %s24_s29 = sadd.s32 1, %s6456_s29   ;;  %s9614_s24 = smov %s6440_s25 }
 0x497   : > { %p21_p9 = scmp.ge.s32.totalorder %s24_s29, 4   ;;  %s9615_s25 = smov %s6444_s26 }
 0x498   : > { %s9616_s26 = smov %s6561_s14  ;;  %s9617_s27 = smov %s6452_s28 }
 0x499   : > { %s9618_s28 = smov %s9620_s9  ;;  %23 = sbr.rel (!%p21_p9) target bundleno = 9 (0x9), region = 127 }
 0x49e   :  { %5559 = vsyncpa [#allocation3], 1 }
 0x49f   :  { %5561 = vsyncpa [#allocation3 + $0x1], 1 }
 0x4a0   :  { %5562 = vsyncpa [#allocation5], 1 }
 0x4a1   :  { %5564 = vsyncpa [#allocation5 + $0x1], 1 }

</bundles_post_ra>
